<compile_context>
chip_gen: v7x
topology: tpu7x:2x2x1
jax: 0.10.0
libtpu: 0.0.40
codegen_flags: <defaults>
</compile_context>

<pallas_src>
import functools

import jax
import jax.numpy as jnp
from jax.experimental import pallas as pl
from jax.experimental.pallas import tpu as pltpu


NEG_SLOPE = 0.01  # nn.LeakyReLU default


def _round_up(a, b):
    return ((a + b - 1) // b) * b


def _pick_reduction_tile(k, max_tk=4096):
    """Largest lane-dense (multiple of 128) tile <= max_tk that divides k."""
    best = None
    for d in range(1, max_tk // 128 + 1):
        tk = 128 * d
        if k % tk == 0:
            best = tk
    return best if best is not None else k


def _lrelu(v):
    return jnp.where(v >= 0, v, NEG_SLOPE * v)


# ---------------------------------------------------------------------------
# Kernel 1: l1_d (58752 -> 512), K-tiled with f32 accumulator.
# ---------------------------------------------------------------------------
def _l1d_kernel(x_ref, w_ref, b_ref, o_ref, acc_ref):
    @pl.when(pl.program_id(1) == 0)
    def _():
        acc_ref[...] = jnp.zeros_like(acc_ref)

    acc_ref[...] += jnp.dot(x_ref[...], w_ref[...],
                            preferred_element_type=jnp.float32)

    @pl.when(pl.program_id(1) == pl.num_programs(1) - 1)
    def _():
        h = acc_ref[...] + b_ref[...]
        o_ref[...] = _lrelu(h).astype(o_ref.dtype)


def _l1d_matmul(x_bf16, w_bf16, b_f32, *, tm, tk):
    m, k = x_bf16.shape
    h = w_bf16.shape[1]
    grid = (m // tm, k // tk)
    cost = pl.CostEstimate(
        flops=2 * m * k * h,
        transcendentals=0,
        bytes_accessed=int(x_bf16.size * 2 + w_bf16.size * 2
                           + b_f32.size * 4 + m * h * 4),
    )
    return pl.pallas_call(
        _l1d_kernel,
        out_shape=jax.ShapeDtypeStruct((m, h), jnp.float32),
        grid_spec=pltpu.PrefetchScalarGridSpec(
            num_scalar_prefetch=0,
            grid=grid,
            in_specs=[
                pl.BlockSpec((tm, tk), lambda i, kk: (i, kk)),
                pl.BlockSpec((tk, h), lambda i, kk: (kk, 0)),
                pl.BlockSpec((1, h), lambda i, kk: (0, 0)),
            ],
            out_specs=pl.BlockSpec((tm, h), lambda i, kk: (i, 0)),
            scratch_shapes=[pltpu.VMEM((tm, h), jnp.float32)],
        ),
        compiler_params=pltpu.CompilerParams(
            dimension_semantics=("parallel", "arbitrary"),
            vmem_limit_bytes=32 * 1024 * 1024,
        ),
        cost_estimate=cost,
    )(x_bf16, w_bf16, b_f32)


# ---------------------------------------------------------------------------
# Kernel 2: fused U-Net tail (all small layers), weights resident in VMEM.
# ---------------------------------------------------------------------------
def _unet_tail_kernel(x1_ref,
                      w2d, b2d, w3d, b3d, w4d, b4d,
                      w4ua, w4ub, b4u,
                      w3ua, w3ub, b3u,
                      w2ua, w2ub, b2u,
                      w1u, b1u,
                      o_ref):
    def dot(a, w_ref):
        return jnp.dot(a.astype(jnp.bfloat16), w_ref[...],
                       preferred_element_type=jnp.float32)

    x1 = x1_ref[...]                                           # (tm, 512) f32
    x2 = _lrelu(dot(x1, w2d) + b2d[...])                       # (tm, 256)
    x3 = _lrelu(dot(x2, w3d) + b3d[...])                       # (tm, 128)
    x4 = _lrelu(dot(x3, w4d) + b4d[...])                       # (tm, 64)
    # cat([x4, x3]) @ W  ==  x4 @ W[:64] + x3 @ W[64:]
    x3u = _lrelu(dot(x4, w4ua) + dot(x3, w4ub) + b4u[...])     # (tm, 128)
    x2u = _lrelu(dot(x3u, w3ua) + dot(x2, w3ub) + b3u[...])    # (tm, 256)
    x1u = _lrelu(dot(x2u, w2ua) + dot(x1, w2ub) + b2u[...])    # (tm, 512)
    o_ref[...] = (dot(x1u, w1u) + b1u[...]).astype(o_ref.dtype)  # (tm, 128 pad)


def _unet_tail(x1, weights_and_biases, *, tm):
    m, d1 = x1.shape
    d_out = weights_and_biases[-2].shape[1]  # padded head width (128)
    grid = (m // tm,)

    def full_spec(arr):
        nd = arr.ndim
        return pl.BlockSpec(arr.shape, lambda i, _nd=nd: (0,) * _nd)

    in_specs = [pl.BlockSpec((tm, d1), lambda i: (i, 0))]
    in_specs += [full_spec(a) for a in weights_and_biases]

    return pl.pallas_call(
        _unet_tail_kernel,
        out_shape=jax.ShapeDtypeStruct((m, d_out), jnp.float32),
        grid_spec=pltpu.PrefetchScalarGridSpec(
            num_scalar_prefetch=0,
            grid=grid,
            in_specs=in_specs,
            out_specs=pl.BlockSpec((tm, d_out), lambda i: (i, 0)),
        ),
        compiler_params=pltpu.CompilerParams(
            dimension_semantics=("parallel",),
            vmem_limit_bytes=32 * 1024 * 1024,
        ),
    )(x1, *weights_and_biases)


# ---------------------------------------------------------------------------
# Wrapper
# ---------------------------------------------------------------------------
@functools.partial(jax.jit, static_argnames=("tm",))
def linear_unet_forward(x, params, *, tm=256):
    """x: (bs, n, c) with n*c == in_features of l1_d. Returns (bs, 2)."""
    bs = x.shape[0]
    xf = x.reshape(bs, -1).astype(jnp.float32)
    m, k_in = xf.shape

    # Row tiling: never drop trailing rows — pad to a multiple of the tile.
    tm_eff = min(tm, _round_up(m, 8))
    m_pad = _round_up(m, tm_eff)
    if m_pad != m:
        xf = jnp.pad(xf, ((0, m_pad - m), (0, 0)))

    # ---- Kernel 1: l1_d ----
    w1, b1 = params["l1_d"]
    tk = _pick_reduction_tile(k_in)
    x1 = _l1d_matmul(
        xf.astype(jnp.bfloat16),
        w1.astype(jnp.bfloat16),
        b1.reshape(1, -1).astype(jnp.float32),
        tm=tm_eff, tk=tk,
    )  # (m_pad, 512) f32, LeakyReLU already applied

    # ---- Kernel 2: remaining layers ----
    bf = lambda a: a.astype(jnp.bfloat16)
    rowf32 = lambda a: a.reshape(1, -1).astype(jnp.float32)

    w2d, b2d = params["l2_d"]
    w3d, b3d = params["l3_d"]
    w4d, b4d = params["l4_d"]
    w4u, b4u = params["l4_u"]
    w3u, b3u = params["l3_u"]
    w2u, b2u = params["l2_u"]
    w1u, b1u = params["l1_u"]

    d2, d3, d4 = w2d.shape[1], w3d.shape[1], w4d.shape[1]
    w4ua, w4ub = w4u[:d4], w4u[d4:]
    w3ua, w3ub = w3u[:d3], w3u[d3:]
    w2ua, w2ub = w2u[:d2], w2u[d2:]

    # Pad the 2-wide head to 128 lanes for unmasked lane-dense stores.
    n_out = w1u.shape[1]
    pad_out = _round_up(max(n_out, 128), 128)
    w1u_p = jnp.zeros((w1u.shape[0], pad_out), w1u.dtype).at[:, :n_out].set(w1u)
    b1u_p = jnp.zeros((pad_out,), b1u.dtype).at[:n_out].set(b1u)

    wbs = (
        bf(w2d), rowf32(b2d), bf(w3d), rowf32(b3d), bf(w4d), rowf32(b4d),
        bf(w4ua), bf(w4ub), rowf32(b4u),
        bf(w3ua), bf(w3ub), rowf32(b3u),
        bf(w2ua), bf(w2ub), rowf32(b2u),
        bf(w1u_p), rowf32(b1u_p),
    )
    out_padded = _unet_tail(x1, wbs, tm=tm_eff)  # (m_pad, 128)
    return out_padded[:m, :n_out]


# ---------------------------------------------------------------------------
# Reference (pure JAX, mirrors the kernel's bf16-in / f32-accumulate matmuls)
# ---------------------------------------------------------------------------
def _reference(x, params):
    def dot(a, w):
        return jnp.dot(a.astype(jnp.bfloat16), w.astype(jnp.bfloat16),
                       preferred_element_type=jnp.float32)

    bs = x.shape[0]
    xf = x.reshape(bs, -1).astype(jnp.float32)
    w, b = params["l1_d"]; x1 = _lrelu(dot(xf, w) + b)
    w, b = params["l2_d"]; x2 = _lrelu(dot(x1, w) + b)
    w, b = params["l3_d"]; x3 = _lrelu(dot(x2, w) + b)
    w, b = params["l4_d"]; x4 = _lrelu(dot(x3, w) + b)
    w, b = params["l4_u"]; x3 = _lrelu(dot(jnp.concatenate([x4, x3], axis=1), w) + b)
    w, b = params["l3_u"]; x2 = _lrelu(dot(jnp.concatenate([x3, x2], axis=1), w) + b)
    w, b = params["l2_u"]; x1 = _lrelu(dot(jnp.concatenate([x2, x1], axis=1), w) + b)
    w, b = params["l1_u"]
    return dot(x1, w) + b


def _init_params(key, dtype=jnp.float32):
    # Weights stored as (in_features, out_features) = PyTorch weight transposed.
    dims = [
        ("l1_d", 58752, 512),
        ("l2_d", 512, 256),
        ("l3_d", 256, 128),
        ("l4_d", 128, 64),
        ("l4_u", 64 + 128, 128),
        ("l3_u", 128 + 256, 256),
        ("l2_u", 256 + 512, 512),
        ("l1_u", 512, 2),
    ]
    params = {}
    keys = jax.random.split(key, len(dims))
    for kk, (name, fin, fout) in zip(keys, dims):
        kw, kb = jax.random.split(kk)
        s = 1.0 / (fin ** 0.5)
        w = jax.random.uniform(kw, (fin, fout), dtype, -s, s)
        b = jax.random.uniform(kb, (fout,), dtype, -s, s)
        params[name] = (w, b)
    return params


if __name__ == "__main__":
    key = jax.random.PRNGKey(0)
    kx, kp = jax.random.split(key)

    # The module hard-codes in_features = 58752 = n * c; keep bs small.
    bs, n, c = 2, 459, 128
    x = jax.random.normal(kx, (bs, n, c), dtype=jnp.float32)
    params = _init_params(kp)

    out = linear_unet_forward(x, params, tm=256)
    out = jax.block_until_ready(out)

    ref = jax.block_until_ready(_reference(x, params))

    assert out.shape == (bs, 2), out.shape
    err = float(jnp.max(jnp.abs(out - ref)))
    assert err < 1e-2, f"max abs diff {err}"

    print("KERNEL_OK")
</pallas_src>

<mosaic_0001>
module attributes {stable_mosaic.version = 11 : i64} {
  func.func @_l1d_kernel(%arg0: i32, %arg1: i32, %arg2: memref<8x3456xbf16, #tpu.memory_space<vmem>>, %arg3: memref<3456x512xbf16, #tpu.memory_space<vmem>>, %arg4: memref<1x512xf32, #tpu.memory_space<vmem>>, %arg5: memref<8x512xf32, #tpu.memory_space<vmem>>, %arg6: memref<8x512xf32, #tpu.memory_space<vmem>>) attributes {dimension_semantics = [#tpu.dimension_semantics<parallel>, #tpu.dimension_semantics<arbitrary>], iteration_bounds = array<i64: 1, 17>, scalar_prefetch = 0 : i64, scratch_operands = 1 : i64, tpu.core_type = #tpu.core_type<tc>, window_params = [{transform_indices = @transform_0, window_bounds = array<i64: 8, 3456>}, {transform_indices = @transform_1, window_bounds = array<i64: 3456, 512>}, {pipeline_mode = #tpu.pipeline_mode<synchronous>, transform_indices = @transform_2, window_bounds = array<i64: 1, 512>}, {transform_indices = @transform_3, window_bounds = array<i64: 8, 512>}]} {
    %c0_i32 = arith.constant 0 : i32
    %0 = arith.cmpi eq, %arg1, %c0_i32 : i32
    %1 = arith.extui %0 : i1 to i32
    %c0_i32_0 = arith.constant 0 : i32
    %2 = arith.cmpi ne, %1, %c0_i32_0 : i32
    scf.if %2 {
      %cst_9 = arith.constant 0.000000e+00 : f32
      %12 = vector.broadcast %cst_9 : f32 to vector<8x512xf32>
      %c0_10 = arith.constant 0 : index
      %c0_11 = arith.constant 0 : index
      %13 = vector.load %arg6[%c0_10, %c0_11] : memref<8x512xf32, #tpu.memory_space<vmem>>, vector<8x512xf32>
      tpu.vector_store %arg6[%c0_10, %c0_11], %12 {strides = array<i32>} : memref<8x512xf32, #tpu.memory_space<vmem>>, vector<8x512xf32>,
    } else {
    }
    %c0 = arith.constant 0 : index
    %c0_1 = arith.constant 0 : index
    %3 = vector.load %arg6[%c0, %c0_1] : memref<8x512xf32, #tpu.memory_space<vmem>>, vector<8x512xf32>
    %c0_2 = arith.constant 0 : index
    %c0_3 = arith.constant 0 : index
    %4 = vector.load %arg2[%c0_2, %c0_3] : memref<8x3456xbf16, #tpu.memory_space<vmem>>, vector<8x3456xbf16>
    %c0_4 = arith.constant 0 : index
    %c0_5 = arith.constant 0 : index
    %5 = vector.load %arg3[%c0_4, %c0_5] : memref<3456x512xbf16, #tpu.memory_space<vmem>>, vector<3456x512xbf16>
    %cst = arith.constant dense<0.000000e+00> : vector<8x512xf32>
    %6 = tpu.matmul %4, %5, %cst {dimension_numbers = #tpu.dot_dimension_numbers<[1], [0], [0], [1], [0, 0, 1, 1], [], []>} : vector<8x3456xbf16>, vector<3456x512xbf16>, vector<8x512xf32> -> vector<8x512xf32>
    %7 = arith.addf %3, %6 : vector<8x512xf32>
    %c0_6 = arith.constant 0 : index
    %c0_7 = arith.constant 0 : index
    %8 = vector.load %arg6[%c0_6, %c0_7] : memref<8x512xf32, #tpu.memory_space<vmem>>, vector<8x512xf32>
    tpu.vector_store %arg6[%c0_6, %c0_7], %7 {strides = array<i32>} : memref<8x512xf32, #tpu.memory_space<vmem>>, vector<8x512xf32>,
    %c16_i32 = arith.constant 16 : i32
    %9 = arith.cmpi eq, %arg1, %c16_i32 : i32
    %10 = arith.extui %9 : i1 to i32
    %c0_i32_8 = arith.constant 0 : i32
    %11 = arith.cmpi ne, %10, %c0_i32_8 : i32
    scf.if %11 {
      %c0_9 = arith.constant 0 : index
      %c0_10 = arith.constant 0 : index
      %12 = vector.load %arg6[%c0_9, %c0_10] : memref<8x512xf32, #tpu.memory_space<vmem>>, vector<8x512xf32>
      %c0_11 = arith.constant 0 : index
      %c0_12 = arith.constant 0 : index
      %13 = vector.load %arg4[%c0_11, %c0_12] : memref<1x512xf32, #tpu.memory_space<vmem>>, vector<1x512xf32>
      %14 = vector.broadcast %13 : vector<1x512xf32> to vector<8x512xf32>
      %15 = arith.addf %12, %14 : vector<8x512xf32>
      %cst_13 = arith.constant 0.000000e+00 : f32
      %16 = vector.broadcast %cst_13 : f32 to vector<8x512xf32>
      %17 = arith.cmpf oge, %15, %16 : vector<8x512xf32>
      %cst_14 = arith.constant 0.00999999977 : f32
      %18 = vector.broadcast %cst_14 : f32 to vector<8x512xf32>
      %19 = arith.mulf %18, %15 : vector<8x512xf32>
      %20 = arith.select %17, %15, %19 : vector<8x512xi1>, vector<8x512xf32>
      %c0_15 = arith.constant 0 : index
      %c0_16 = arith.constant 0 : index
      %21 = vector.load %arg5[%c0_15, %c0_16] : memref<8x512xf32, #tpu.memory_space<vmem>>, vector<8x512xf32>
      tpu.vector_store %arg5[%c0_15, %c0_16], %20 {strides = array<i32>} : memref<8x512xf32, #tpu.memory_space<vmem>>, vector<8x512xf32>,
    } else {
    }
    return
  }
  func.func @transform_0(%arg0: i32, %arg1: i32) -> (i32, i32) {
    %c0_i32 = arith.constant 0 : i32
    return %arg0, %arg1 : i32, i32
  }
  func.func @transform_1(%arg0: i32, %arg1: i32) -> (i32, i32) {
    %c0_i32 = arith.constant 0 : i32
    %c0_i32_0 = arith.constant 0 : i32
    return %arg1, %c0_i32 : i32, i32
  }
  func.func @transform_2(%arg0: i32, %arg1: i32) -> (i32, i32) {
    %c0_i32 = arith.constant 0 : i32
    %c0_i32_0 = arith.constant 0 : i32
    %c0_i32_1 = arith.constant 0 : i32
    return %c0_i32, %c0_i32_0 : i32, i32
  }
  func.func @transform_3(%arg0: i32, %arg1: i32) -> (i32, i32) {
    %c0_i32 = arith.constant 0 : i32
    %c0_i32_0 = arith.constant 0 : i32
    return %arg0, %c0_i32 : i32, i32
  }
}

module attributes {stable_mosaic.version = 11 : i64} {
  func.func @_unet_tail_kernel(%arg0: i32, %arg1: memref<8x512xf32, #tpu.memory_space<vmem>>, %arg2: memref<512x256xbf16, #tpu.memory_space<vmem>>, %arg3: memref<1x256xf32, #tpu.memory_space<vmem>>, %arg4: memref<256x128xbf16, #tpu.memory_space<vmem>>, %arg5: memref<1x128xf32, #tpu.memory_space<vmem>>, %arg6: memref<128x64xbf16, #tpu.memory_space<vmem>>, %arg7: memref<1x64xf32, #tpu.memory_space<vmem>>, %arg8: memref<64x128xbf16, #tpu.memory_space<vmem>>, %arg9: memref<128x128xbf16, #tpu.memory_space<vmem>>, %arg10: memref<1x128xf32, #tpu.memory_space<vmem>>, %arg11: memref<128x256xbf16, #tpu.memory_space<vmem>>, %arg12: memref<256x256xbf16, #tpu.memory_space<vmem>>, %arg13: memref<1x256xf32, #tpu.memory_space<vmem>>, %arg14: memref<256x512xbf16, #tpu.memory_space<vmem>>, %arg15: memref<512x512xbf16, #tpu.memory_space<vmem>>, %arg16: memref<1x512xf32, #tpu.memory_space<vmem>>, %arg17: memref<512x128xbf16, #tpu.memory_space<vmem>>, %arg18: memref<1x128xf32, #tpu.memory_space<vmem>>, %arg19: memref<8x128xf32, #tpu.memory_space<vmem>>) attributes {dimension_semantics = [#tpu.dimension_semantics<parallel>], iteration_bounds = array<i64: 1>, scalar_prefetch = 0 : i64, scratch_operands = 0 : i64, tpu.core_type = #tpu.core_type<tc>, window_params = [{transform_indices = @transform_0, window_bounds = array<i64: 8, 512>}, {pipeline_mode = #tpu.pipeline_mode<synchronous>, transform_indices = @transform_1, window_bounds = array<i64: 512, 256>}, {pipeline_mode = #tpu.pipeline_mode<synchronous>, transform_indices = @transform_2, window_bounds = array<i64: 1, 256>}, {pipeline_mode = #tpu.pipeline_mode<synchronous>, transform_indices = @transform_3, window_bounds = array<i64: 256, 128>}, {pipeline_mode = #tpu.pipeline_mode<synchronous>, transform_indices = @transform_4, window_bounds = array<i64: 1, 128>}, {pipeline_mode = #tpu.pipeline_mode<synchronous>, transform_indices = @transform_5, window_bounds = array<i64: 128, 64>}, {pipeline_mode = #tpu.pipeline_mode<synchronous>, transform_indices = @transform_6, window_bounds = array<i64: 1, 64>}, {pipeline_mode = #tpu.pipeline_mode<synchronous>, transform_indices = @transform_7, window_bounds = array<i64: 64, 128>}, {pipeline_mode = #tpu.pipeline_mode<synchronous>, transform_indices = @transform_8, window_bounds = array<i64: 128, 128>}, {pipeline_mode = #tpu.pipeline_mode<synchronous>, transform_indices = @transform_9, window_bounds = array<i64: 1, 128>}, {pipeline_mode = #tpu.pipeline_mode<synchronous>, transform_indices = @transform_10, window_bounds = array<i64: 128, 256>}, {pipeline_mode = #tpu.pipeline_mode<synchronous>, transform_indices = @transform_11, window_bounds = array<i64: 256, 256>}, {pipeline_mode = #tpu.pipeline_mode<synchronous>, transform_indices = @transform_12, window_bounds = array<i64: 1, 256>}, {pipeline_mode = #tpu.pipeline_mode<synchronous>, transform_indices = @transform_13, window_bounds = array<i64: 256, 512>}, {pipeline_mode = #tpu.pipeline_mode<synchronous>, transform_indices = @transform_14, window_bounds = array<i64: 512, 512>}, {pipeline_mode = #tpu.pipeline_mode<synchronous>, transform_indices = @transform_15, window_bounds = array<i64: 1, 512>}, {pipeline_mode = #tpu.pipeline_mode<synchronous>, transform_indices = @transform_16, window_bounds = array<i64: 512, 128>}, {pipeline_mode = #tpu.pipeline_mode<synchronous>, transform_indices = @transform_17, window_bounds = array<i64: 1, 128>}, {transform_indices = @transform_18, window_bounds = array<i64: 8, 128>}]} {
    %c0 = arith.constant 0 : index
    %c0_0 = arith.constant 0 : index
    %0 = vector.load %arg1[%c0, %c0_0] : memref<8x512xf32, #tpu.memory_space<vmem>>, vector<8x512xf32>
    %1 = arith.truncf %0 : vector<8x512xf32> to vector<8x512xbf16>
    %c0_1 = arith.constant 0 : index
    %c0_2 = arith.constant 0 : index
    %2 = vector.load %arg2[%c0_1, %c0_2] : memref<512x256xbf16, #tpu.memory_space<vmem>>, vector<512x256xbf16>
    %cst = arith.constant dense<0.000000e+00> : vector<8x256xf32>
    %3 = tpu.matmul %1, %2, %cst {dimension_numbers = #tpu.dot_dimension_numbers<[1], [0], [0], [1], [0, 0, 1, 1], [], []>} : vector<8x512xbf16>, vector<512x256xbf16>, vector<8x256xf32> -> vector<8x256xf32>
    %c0_3 = arith.constant 0 : index
    %c0_4 = arith.constant 0 : index
    %4 = vector.load %arg3[%c0_3, %c0_4] : memref<1x256xf32, #tpu.memory_space<vmem>>, vector<1x256xf32>
    %5 = vector.broadcast %4 : vector<1x256xf32> to vector<8x256xf32>
    %6 = arith.addf %3, %5 : vector<8x256xf32>
    %cst_5 = arith.constant 0.000000e+00 : f32
    %7 = vector.broadcast %cst_5 : f32 to vector<8x256xf32>
    %8 = arith.cmpf oge, %6, %7 : vector<8x256xf32>
    %cst_6 = arith.constant 0.00999999977 : f32
    %9 = vector.broadcast %cst_6 : f32 to vector<8x256xf32>
    %10 = arith.mulf %9, %6 : vector<8x256xf32>
    %11 = arith.select %8, %6, %10 : vector<8x256xi1>, vector<8x256xf32>
    %12 = arith.truncf %11 : vector<8x256xf32> to vector<8x256xbf16>
    %c0_7 = arith.constant 0 : index
    %c0_8 = arith.constant 0 : index
    %13 = vector.load %arg4[%c0_7, %c0_8] : memref<256x128xbf16, #tpu.memory_space<vmem>>, vector<256x128xbf16>
    %cst_9 = arith.constant dense<0.000000e+00> : vector<8x128xf32>
    %14 = tpu.matmul %12, %13, %cst_9 {dimension_numbers = #tpu.dot_dimension_numbers<[1], [0], [0], [1], [0, 0, 1, 1], [], []>} : vector<8x256xbf16>, vector<256x128xbf16>, vector<8x128xf32> -> vector<8x128xf32>
    %c0_10 = arith.constant 0 : index
    %c0_11 = arith.constant 0 : index
    %15 = vector.load %arg5[%c0_10, %c0_11] : memref<1x128xf32, #tpu.memory_space<vmem>>, vector<1x128xf32>
    %16 = vector.broadcast %15 : vector<1x128xf32> to vector<8x128xf32>
    %17 = arith.addf %14, %16 : vector<8x128xf32>
    %cst_12 = arith.constant 0.000000e+00 : f32
    %18 = vector.broadcast %cst_12 : f32 to vector<8x128xf32>
    %19 = arith.cmpf oge, %17, %18 : vector<8x128xf32>
    %cst_13 = arith.constant 0.00999999977 : f32
    %20 = vector.broadcast %cst_13 : f32 to vector<8x128xf32>
    %21 = arith.mulf %20, %17 : vector<8x128xf32>
    %22 = arith.select %19, %17, %21 : vector<8x128xi1>, vector<8x128xf32>
    %23 = arith.truncf %22 : vector<8x128xf32> to vector<8x128xbf16>
    %c0_14 = arith.constant 0 : index
    %c0_15 = arith.constant 0 : index
    %24 = vector.load %arg6[%c0_14, %c0_15] : memref<128x64xbf16, #tpu.memory_space<vmem>>, vector<128x64xbf16>
    %cst_16 = arith.constant dense<0.000000e+00> : vector<8x64xf32>
    %25 = tpu.matmul %23, %24, %cst_16 {dimension_numbers = #tpu.dot_dimension_numbers<[1], [0], [0], [1], [0, 0, 1, 1], [], []>} : vector<8x128xbf16>, vector<128x64xbf16>, vector<8x64xf32> -> vector<8x64xf32>
    %c0_17 = arith.constant 0 : index
    %c0_18 = arith.constant 0 : index
    %26 = vector.load %arg7[%c0_17, %c0_18] : memref<1x64xf32, #tpu.memory_space<vmem>>, vector<1x64xf32>
    %27 = vector.broadcast %26 : vector<1x64xf32> to vector<8x64xf32>
    %28 = arith.addf %25, %27 : vector<8x64xf32>
    %cst_19 = arith.constant 0.000000e+00 : f32
    %29 = vector.broadcast %cst_19 : f32 to vector<8x64xf32>
    %30 = arith.cmpf oge, %28, %29 : vector<8x64xf32>
    %cst_20 = arith.constant 0.00999999977 : f32
    %31 = vector.broadcast %cst_20 : f32 to vector<8x64xf32>
    %32 = arith.mulf %31, %28 : vector<8x64xf32>
    %33 = arith.select %30, %28, %32 : vector<8x64xi1>, vector<8x64xf32>
    %34 = arith.truncf %33 : vector<8x64xf32> to vector<8x64xbf16>
    %c0_21 = arith.constant 0 : index
    %c0_22 = arith.constant 0 : index
    %35 = vector.load %arg8[%c0_21, %c0_22] : memref<64x128xbf16, #tpu.memory_space<vmem>>, vector<64x128xbf16>
    %cst_23 = arith.constant dense<0.000000e+00> : vector<8x128xf32>
    %36 = tpu.matmul %34, %35, %cst_23 {dimension_numbers = #tpu.dot_dimension_numbers<[1], [0], [0], [1], [0, 0, 1, 1], [], []>} : vector<8x64xbf16>, vector<64x128xbf16>, vector<8x128xf32> -> vector<8x128xf32>
    %37 = arith.truncf %22 : vector<8x128xf32> to vector<8x128xbf16>
    %c0_24 = arith.constant 0 : index
    %c0_25 = arith.constant 0 : index
    %38 = vector.load %arg9[%c0_24, %c0_25] : memref<128x128xbf16, #tpu.memory_space<vmem>>, vector<128x128xbf16>
    %cst_26 = arith.constant dense<0.000000e+00> : vector<8x128xf32>
    %39 = tpu.matmul %37, %38, %cst_26 {dimension_numbers = #tpu.dot_dimension_numbers<[1], [0], [0], [1], [0, 0, 1, 1], [], []>} : vector<8x128xbf16>, vector<128x128xbf16>, vector<8x128xf32> -> vector<8x128xf32>
    %40 = arith.addf %36, %39 : vector<8x128xf32>
    %c0_27 = arith.constant 0 : index
    %c0_28 = arith.constant 0 : index
    %41 = vector.load %arg10[%c0_27, %c0_28] : memref<1x128xf32, #tpu.memory_space<vmem>>, vector<1x128xf32>
    %42 = vector.broadcast %41 : vector<1x128xf32> to vector<8x128xf32>
    %43 = arith.addf %40, %42 : vector<8x128xf32>
    %cst_29 = arith.constant 0.000000e+00 : f32
    %44 = vector.broadcast %cst_29 : f32 to vector<8x128xf32>
    %45 = arith.cmpf oge, %43, %44 : vector<8x128xf32>
    %cst_30 = arith.constant 0.00999999977 : f32
    %46 = vector.broadcast %cst_30 : f32 to vector<8x128xf32>
    %47 = arith.mulf %46, %43 : vector<8x128xf32>
    %48 = arith.select %45, %43, %47 : vector<8x128xi1>, vector<8x128xf32>
    %49 = arith.truncf %48 : vector<8x128xf32> to vector<8x128xbf16>
    %c0_31 = arith.constant 0 : index
    %c0_32 = arith.constant 0 : index
    %50 = vector.load %arg11[%c0_31, %c0_32] : memref<128x256xbf16, #tpu.memory_space<vmem>>, vector<128x256xbf16>
    %cst_33 = arith.constant dense<0.000000e+00> : vector<8x256xf32>
    %51 = tpu.matmul %49, %50, %cst_33 {dimension_numbers = #tpu.dot_dimension_numbers<[1], [0], [0], [1], [0, 0, 1, 1], [], []>} : vector<8x128xbf16>, vector<128x256xbf16>, vector<8x256xf32> -> vector<8x256xf32>
    %52 = arith.truncf %11 : vector<8x256xf32> to vector<8x256xbf16>
    %c0_34 = arith.constant 0 : index
    %c0_35 = arith.constant 0 : index
    %53 = vector.load %arg12[%c0_34, %c0_35] : memref<256x256xbf16, #tpu.memory_space<vmem>>, vector<256x256xbf16>
    %cst_36 = arith.constant dense<0.000000e+00> : vector<8x256xf32>
    %54 = tpu.matmul %52, %53, %cst_36 {dimension_numbers = #tpu.dot_dimension_numbers<[1], [0], [0], [1], [0, 0, 1, 1], [], []>} : vector<8x256xbf16>, vector<256x256xbf16>, vector<8x256xf32> -> vector<8x256xf32>
    %55 = arith.addf %51, %54 : vector<8x256xf32>
    %c0_37 = arith.constant 0 : index
    %c0_38 = arith.constant 0 : index
    %56 = vector.load %arg13[%c0_37, %c0_38] : memref<1x256xf32, #tpu.memory_space<vmem>>, vector<1x256xf32>
    %57 = vector.broadcast %56 : vector<1x256xf32> to vector<8x256xf32>
    %58 = arith.addf %55, %57 : vector<8x256xf32>
    %cst_39 = arith.constant 0.000000e+00 : f32
    %59 = vector.broadcast %cst_39 : f32 to vector<8x256xf32>
    %60 = arith.cmpf oge, %58, %59 : vector<8x256xf32>
    %cst_40 = arith.constant 0.00999999977 : f32
    %61 = vector.broadcast %cst_40 : f32 to vector<8x256xf32>
    %62 = arith.mulf %61, %58 : vector<8x256xf32>
    %63 = arith.select %60, %58, %62 : vector<8x256xi1>, vector<8x256xf32>
    %64 = arith.truncf %63 : vector<8x256xf32> to vector<8x256xbf16>
    %c0_41 = arith.constant 0 : index
    %c0_42 = arith.constant 0 : index
    %65 = vector.load %arg14[%c0_41, %c0_42] : memref<256x512xbf16, #tpu.memory_space<vmem>>, vector<256x512xbf16>
    %cst_43 = arith.constant dense<0.000000e+00> : vector<8x512xf32>
    %66 = tpu.matmul %64, %65, %cst_43 {dimension_numbers = #tpu.dot_dimension_numbers<[1], [0], [0], [1], [0, 0, 1, 1], [], []>} : vector<8x256xbf16>, vector<256x512xbf16>, vector<8x512xf32> -> vector<8x512xf32>
    %67 = arith.truncf %0 : vector<8x512xf32> to vector<8x512xbf16>
    %c0_44 = arith.constant 0 : index
    %c0_45 = arith.constant 0 : index
    %68 = vector.load %arg15[%c0_44, %c0_45] : memref<512x512xbf16, #tpu.memory_space<vmem>>, vector<512x512xbf16>
    %cst_46 = arith.constant dense<0.000000e+00> : vector<8x512xf32>
    %69 = tpu.matmul %67, %68, %cst_46 {dimension_numbers = #tpu.dot_dimension_numbers<[1], [0], [0], [1], [0, 0, 1, 1], [], []>} : vector<8x512xbf16>, vector<512x512xbf16>, vector<8x512xf32> -> vector<8x512xf32>
    %70 = arith.addf %66, %69 : vector<8x512xf32>
    %c0_47 = arith.constant 0 : index
    %c0_48 = arith.constant 0 : index
    %71 = vector.load %arg16[%c0_47, %c0_48] : memref<1x512xf32, #tpu.memory_space<vmem>>, vector<1x512xf32>
    %72 = vector.broadcast %71 : vector<1x512xf32> to vector<8x512xf32>
    %73 = arith.addf %70, %72 : vector<8x512xf32>
    %cst_49 = arith.constant 0.000000e+00 : f32
    %74 = vector.broadcast %cst_49 : f32 to vector<8x512xf32>
    %75 = arith.cmpf oge, %73, %74 : vector<8x512xf32>
    %cst_50 = arith.constant 0.00999999977 : f32
    %76 = vector.broadcast %cst_50 : f32 to vector<8x512xf32>
    %77 = arith.mulf %76, %73 : vector<8x512xf32>
    %78 = arith.select %75, %73, %77 : vector<8x512xi1>, vector<8x512xf32>
    %79 = arith.truncf %78 : vector<8x512xf32> to vector<8x512xbf16>
    %c0_51 = arith.constant 0 : index
    %c0_52 = arith.constant 0 : index
    %80 = vector.load %arg17[%c0_51, %c0_52] : memref<512x128xbf16, #tpu.memory_space<vmem>>, vector<512x128xbf16>
    %cst_53 = arith.constant dense<0.000000e+00> : vector<8x128xf32>
    %81 = tpu.matmul %79, %80, %cst_53 {dimension_numbers = #tpu.dot_dimension_numbers<[1], [0], [0], [1], [0, 0, 1, 1], [], []>} : vector<8x512xbf16>, vector<512x128xbf16>, vector<8x128xf32> -> vector<8x128xf32>
    %c0_54 = arith.constant 0 : index
    %c0_55 = arith.constant 0 : index
    %82 = vector.load %arg18[%c0_54, %c0_55] : memref<1x128xf32, #tpu.memory_space<vmem>>, vector<1x128xf32>
    %83 = vector.broadcast %82 : vector<1x128xf32> to vector<8x128xf32>
    %84 = arith.addf %81, %83 : vector<8x128xf32>
    %c0_56 = arith.constant 0 : index
    %c0_57 = arith.constant 0 : index
    %85 = vector.load %arg19[%c0_56, %c0_57] : memref<8x128xf32, #tpu.memory_space<vmem>>, vector<8x128xf32>
    tpu.vector_store %arg19[%c0_56, %c0_57], %84 {strides = array<i32>} : memref<8x128xf32, #tpu.memory_space<vmem>>, vector<8x128xf32>,
    return
  }
  func.func @transform_0(%arg0: i32) -> (i32, i32) {
    %c0_i32 = arith.constant 0 : i32
    %c0_i32_0 = arith.constant 0 : i32
    return %arg0, %c0_i32 : i32, i32
  }
  func.func @transform_1(%arg0: i32) -> (i32, i32) {
    %c0_i32 = arith.constant 0 : i32
    %c0_i32_0 = arith.constant 0 : i32
    %c0_i32_1 = arith.constant 0 : i32
    return %c0_i32, %c0_i32_0 : i32, i32
  }
  func.func @transform_2(%arg0: i32) -> (i32, i32) {
    %c0_i32 = arith.constant 0 : i32
    %c0_i32_0 = arith.constant 0 : i32
    %c0_i32_1 = arith.constant 0 : i32
    return %c0_i32, %c0_i32_0 : i32, i32
  }
  func.func @transform_3(%arg0: i32) -> (i32, i32) {
    %c0_i32 = arith.constant 0 : i32
    %c0_i32_0 = arith.constant 0 : i32
    %c0_i32_1 = arith.constant 0 : i32
    return %c0_i32, %c0_i32_0 : i32, i32
  }
  func.func @transform_4(%arg0: i32) -> (i32, i32) {
    %c0_i32 = arith.constant 0 : i32
    %c0_i32_0 = arith.constant 0 : i32
    %c0_i32_1 = arith.constant 0 : i32
    return %c0_i32, %c0_i32_0 : i32, i32
  }
  func.func @transform_5(%arg0: i32) -> (i32, i32) {
    %c0_i32 = arith.constant 0 : i32
    %c0_i32_0 = arith.constant 0 : i32
    %c0_i32_1 = arith.constant 0 : i32
    return %c0_i32, %c0_i32_0 : i32, i32
  }
  func.func @transform_6(%arg0: i32) -> (i32, i32) {
    %c0_i32 = arith.constant 0 : i32
    %c0_i32_0 = arith.constant 0 : i32
    %c0_i32_1 = arith.constant 0 : i32
    return %c0_i32, %c0_i32_0 : i32, i32
  }
  func.func @transform_7(%arg0: i32) -> (i32, i32) {
    %c0_i32 = arith.constant 0 : i32
    %c0_i32_0 = arith.constant 0 : i32
    %c0_i32_1 = arith.constant 0 : i32
    return %c0_i32, %c0_i32_0 : i32, i32
  }
  func.func @transform_8(%arg0: i32) -> (i32, i32) {
    %c0_i32 = arith.constant 0 : i32
    %c0_i32_0 = arith.constant 0 : i32
    %c0_i32_1 = arith.constant 0 : i32
    return %c0_i32, %c0_i32_0 : i32, i32
  }
  func.func @transform_9(%arg0: i32) -> (i32, i32) {
    %c0_i32 = arith.constant 0 : i32
    %c0_i32_0 = arith.constant 0 : i32
    %c0_i32_1 = arith.constant 0 : i32
    return %c0_i32, %c0_i32_0 : i32, i32
  }
  func.func @transform_10(%arg0: i32) -> (i32, i32) {
    %c0_i32 = arith.constant 0 : i32
    %c0_i32_0 = arith.constant 0 : i32
    %c0_i32_1 = arith.constant 0 : i32
    return %c0_i32, %c0_i32_0 : i32, i32
  }
  func.func @transform_11(%arg0: i32) -> (i32, i32) {
    %c0_i32 = arith.constant 0 : i32
    %c0_i32_0 = arith.constant 0 : i32
    %c0_i32_1 = arith.constant 0 : i32
    return %c0_i32, %c0_i32_0 : i32, i32
  }
  func.func @transform_12(%arg0: i32) -> (i32, i32) {
    %c0_i32 = arith.constant 0 : i32
    %c0_i32_0 = arith.constant 0 : i32
    %c0_i32_1 = arith.constant 0 : i32
    return %c0_i32, %c0_i32_0 : i32, i32
  }
  func.func @transform_13(%arg0: i32) -> (i32, i32) {
    %c0_i32 = arith.constant 0 : i32
    %c0_i32_0 = arith.constant 0 : i32
    %c0_i32_1 = arith.constant 0 : i32
    return %c0_i32, %c0_i32_0 : i32, i32
  }
  func.func @transform_14(%arg0: i32) -> (i32, i32) {
    %c0_i32 = arith.constant 0 : i32
    %c0_i32_0 = arith.constant 0 : i32
    %c0_i32_1 = arith.constant 0 : i32
    return %c0_i32, %c0_i32_0 : i32, i32
  }
  func.func @transform_15(%arg0: i32) -> (i32, i32) {
    %c0_i32 = arith.constant 0 : i32
    %c0_i32_0 = arith.constant 0 : i32
    %c0_i32_1 = arith.constant 0 : i32
    return %c0_i32, %c0_i32_0 : i32, i32
  }
  func.func @transform_16(%arg0: i32) -> (i32, i32) {
    %c0_i32 = arith.constant 0 : i32
    %c0_i32_0 = arith.constant 0 : i32
    %c0_i32_1 = arith.constant 0 : i32
    return %c0_i32, %c0_i32_0 : i32, i32
  }
  func.func @transform_17(%arg0: i32) -> (i32, i32) {
    %c0_i32 = arith.constant 0 : i32
    %c0_i32_0 = arith.constant 0 : i32
    %c0_i32_1 = arith.constant 0 : i32
    return %c0_i32, %c0_i32_0 : i32, i32
  }
  func.func @transform_18(%arg0: i32) -> (i32, i32) {
    %c0_i32 = arith.constant 0 : i32
    %c0_i32_0 = arith.constant 0 : i32
    return %arg0, %c0_i32 : i32, i32
  }
}

</mosaic_0001>

<bundles_post_ra>
// kernel: linear_unet_forward.2
= control target key start
LH: loop header
LB: loop body
LE: loop exit
PB: predicated region body
PF: predicated region fallthrough
CT: control target
= control target key end

     0   :  { %8 = vsyncpa [#allocation4], 0  ;;  %s10502_s0 = inlined_call_operand.vmem [shape: bf16[8,58752], index: 0, kind: input, shape index: {}]   ;;  %s10503_s1 = inlined_call_operand.hbm [shape: bf16[58752,512], index: 1, kind: input, shape index: {}]   ;;  %s10504_s2 = inlined_call_operand.vmem [shape: f32[1,512], index: 2, kind: input, shape index: {}]   ;;  %s10505_s3 = inlined_call_operand.vmem [shape: f32[8,512], index: 3, kind: output, shape index: {}]  }
   0x1   :  { %10 = vsyncpa [#allocation4 + $0x1], 0  ;;  %s9241_s12 = smov 0   ;;  %s9243_s13 = smov 0  }
   0x2   :  { %s9245_s14 = smov 0   ;;  %s9247_s15 = smov 0  }
   0x3   :  { %s9249_s16 = smov 0   ;;  %s9251_s17 = smov 0  }
   0x4 LB: > { %s6843_s18 = sadd.s32 4294967295, %s9214_s17   ;;  %s25_s19 = sadd.s32 1, %s9210_s16  ;;  %s9214_s17 = sphi %s9251_s17, %s16_s17   ;;  %s9210_s16 = sphi %s9249_s16, %s10512_s16   ;;  %s9206_s15 = sphi %s9247_s15, %s10511_s15   ;;  %s9202_s14 = sphi %s9245_s14, %s10510_s14   ;;  %s9198_s13 = sphi %s9243_s13, %s10509_s13   ;;  %s9194_s12 = sphi %s9241_s12, %s10508_s12  }
   0x5   : > { %p26_p0 = scmp.ge.s32.totalorder %s25_s19, 17  ;;  %s63_s20 = sadd.s32 1, %s9202_s14 }
   0x6   : > { %p70_p1 = scmp.ne.s32.totalorder %s9202_s14, %s9198_s13  ;;  %p71_p2 = scmp.eq.s32.totalorder %s9214_s17, 0 }
   0x7   : > { %s10514_s19 = smov (%p26_p0, %s25_s19), 0  ;;  %p76_p4 = scmp.ne.s32.totalorder %s9198_s13, %s9194_s12 }
   0x8   : > { %p72_p3 = por %p71_p2, %p70_p1  ;;  %s60_s21 = ssub.s32 %s9210_s16, %s10514_s19 }
   0x9   : > { %p77_p5 = scmp.eq.s32.totalorder %s6843_s18, 0  ;;  %p61_p6 = scmp.eq.s32.totalorder %s60_s21, 0 }
   0xa   : > { %p7757_p8 = scmp.lt.s32.totalorder %s9214_s17, 17  ;;  %s163_s24 = sand.u32 1, %s9202_s14  }
   0xb   : > { %p9280_p7 = por %p77_p5, %p76_p4  ;;  %s7748_s25 = smul.u32 110592, %s9210_s16 }
   0xc   : > { %s9286_s23 = scalar_select %p61_p6, %s9202_s14, %s63_s20  }
   0xd   : > { %s7749_s26 = smul.u32 6912, %s163_s24  ;;  %s9293_s29 = scalar_lea.hbm %s10503_s1, %s7748_s25 }
   0xe   : > { %p9295_p9 = pnand %p7757_p8, %p72_p3  ;;  %s9301_s6 = scalar_lea.sflag [#allocation4], %s163_s24 }
   0xf   : > { %s167_s4 = scalar_lea.vmem [#allocation3], %s7749_s26  ;;  %s9134_s7 = scalar_lea.hbm %s9293_s29, 110592 }
  0x10   : > { %s175_s5 = sshll.u32 %s167_s4, 4  ;;  %p9135_p10 = scmp.ne.s32.totalorder %s9293_s29, %s9134_s7  ;;  %s9299_s5 = int_to_ptr.vmem [resolvable:$true] %s175_s5 }
  0x11   : > { %p9136_p11 = pneg %p9295_p9  ;;  %s9139_s10 = scalar_lea.hbm %s10503_s1, 1880064 }
  0x12   : > { %p9140_p0 = scmp.lt.u32.totalorder %s9293_s29, %s10503_s1  ;;  %p9141_p1 = scmp.lt.u32.totalorder %s9139_s10, %s9134_s7 }
  0x13   : > { %p9137_p12 = pnand %p9136_p11, %p9135_p10  ;;  %p9143_p3 = scmp.lt.u32.totalorder %s9134_s7, %s9293_s29 }
  0x14   : > { %p9142_p2 = por %p9141_p1, %p9140_p0 }
  0x15   : > { %p9138_p13 = pneg %p9137_p12 }
  0x16   : > { %p9144_p4 = por %p9143_p3, %p9142_p2 }
  0x18   : > { %p9145_p5 = pnand %p9144_p4, %p9138_p13 }
  0x1a   : > { %9148 = shalt.err (!%p9145_p5)
}
  0x1b   : > { %s9149_s18 = scalar_lea.vmem %s9299_s5, 110592  ;;  %s9216_s20 = smov [#allocation3]  }
  0x1c   : > { %p9150_p6 = scmp.ne.s32.totalorder %s9299_s5, %s9149_s18  ;;  %s9154_s21 = sshll.u32 %s9216_s20, 4  ;;  %s9155_s21 = int_to_ptr.vmem [resolvable:$false] %s9154_s21 }
  0x1d   : > { %s9156_s24 = scalar_lea.vmem %s9155_s21, 221184  ;;  %p9157_p12 = scmp.lt.s32.totalorder %s9299_s5, %s9155_s21 }
  0x1e   : > { %p9152_p8 = pnand %p9150_p6, %p9136_p11  ;;  %p9158_p0 = scmp.lt.s32.totalorder %s9156_s24, %s9149_s18 }
  0x20   : > { %p9153_p10 = pneg %p9152_p8  ;;  %p9159_p1 = por %p9158_p0, %p9157_p12 }
  0x22   : > { %p9160_p2 = pnand %p9159_p1, %p9153_p10 }
  0x24   : > { %9163 = shalt.err (!%p9160_p2)
}
  0x25   : > { %s9217_s25 = smov 256   ;;  %s9218_s26 = smov 16  }
  0x26   : > { %7756 = dma.hbm_to_vmem [thread:$0]  (!%p9295_p9), %s9293_s29, 110592, %s9299_s5, %s9301_s6, %s9217_s25, %s9217_s25, %s9218_s26  }
  0x27   : > { %p6848_p11 = scmp.ge.s32.totalorder %s9214_s17, 1  ;;  %p183_p13 = scmp.lt.s32.totalorder %s9214_s17, 18 }
  0x29   : > { %p184_p3 = pnand %p6848_p11, %p183_p13 }
  0x2a   : > { %s189_s27 = sand.u32 (!%p184_p3), 1, %s9198_s13  }
  0x2b   : > { %187 = sbr.rel (%p184_p3) target bundleno = 1159 (0x487), region = 32  ;;  %s190_s4 = scalar_lea.sflag (!%p184_p3), [#allocation4], %s189_s27 }
  0x2c   : > { %s7750_s28 = smul.u32 (!%p184_p3), 6912, %s189_s27 }
  0x2e   : > { %s9332_s7 = scalar_lea.vmem (!%p184_p3), [#allocation3], %s7750_s28 }
  0x32   : > { %9189 = dma.done.wait (%p9280_p7), %s190_s4, 110592  }
  0x33   : > { %9191 = vsyncadd (%p9280_p7), %s190_s4, 4294856704  ;;  %s225_s8 = smul.u32 27, %s9206_s15  ;;  %p6850_p9 = scmp.ne.s32.totalorder %s9206_s15, 0 }
  0x34   : > { %v9219_v0 = vmov (!%p6850_p9), 0.0  }
  0x35   : > { %p228_p4 = scmp.lt.s32.totalorder %s225_s8, 458  ;;  %245 = sbr.rel (%p6850_p9) target bundleno = 60 (0x3c), region = 40  ;;  %246 = vst [vmem:[#allocation2] sm:$0xff] (!%p6850_p9), %v9219_v0  ;;  %247 = vst [vmem:[#allocation2 + $0x8] sm:$0xff] (!%p6850_p9), %v9219_v0 }
  0x36   : > { %248 = vst [vmem:[#allocation2 + $0x10] sm:$0xff] (!%p6850_p9), %v9219_v0  ;;  %249 = vst [vmem:[#allocation2 + $0x18] sm:$0xff] (!%p6850_p9), %v9219_v0 }
  0x37   : > { %s10516_s8 = smov (!%p228_p4, %s225_s8), 458 }
  0x38   : > { %s6849_s29 = sshll.u32 %s10516_s8, 2 }
  0x39   : > { %s9342_s6 = scalar_lea.vmem %s10502_s0, %s6849_s29 }
  0x3c PF: > { %v7810_v1 = vld [vmem:[%s9332_s7 + $0x4] ss:$16 sps:$4 sm:$0xff]   ;;  %v7814_v3 = vld [vmem:[%s9332_s7] ss:$16 sps:$4 sm:$0xff]   ;;  %v255_v49 = vld [vmem:[%s9342_s6 + $0x8] sm:$0xff]  ;;  %p7742_p7 = scmp.ne.s32.totalorder %s9206_s15, 16 }
  0x3d   : > { %v7812_v2 = vld [vmem:[%s9332_s7 + $0x204] ss:$16 sps:$4 sm:$0xff]   ;;  %5547 = vmatprep.subr.bf16.mxu0 %v7810_v1  ;;  %v7815_v4 = vld [vmem:[%s9332_s7 + $0x200] ss:$16 sps:$4 sm:$0xff]   ;;  %v9397_v52 = vcombine.high %v255_v49, %v255_v49 }
  0x3e   : > { %5588 = vmatprep.subr.bf16.mxu1 %v7812_v2  ;;  %v7816_v5 = vld [vmem:[%s9332_s7 + $0x24] ss:$16 sps:$4 sm:$0xff]   ;;  %5548 = vmatpush1.bf16.msra.mxu0 %v7814_v3  ;;  %v7820_v7 = vld [vmem:[%s9332_s7 + $0x20] ss:$16 sps:$4 sm:$0xff]  }
  0x3f   : > { %5589 = vmatpush1.bf16.msra.mxu1 %v7815_v4  ;;  %v7818_v6 = vld [vmem:[%s9332_s7 + $0x224] ss:$16 sps:$4 sm:$0xff]   ;;  %5549 = vmatprep.subr.bf16.mxu0 %v7816_v5  ;;  %v7821_v8 = vld [vmem:[%s9332_s7 + $0x220] ss:$16 sps:$4 sm:$0xff]  }
  0x40   : > { %5590 = vmatprep.subr.bf16.mxu1 %v7818_v6  ;;  %v7822_v9 = vld [vmem:[%s9332_s7 + $0x44] ss:$16 sps:$4 sm:$0xff]   ;;  %v7826_v11 = vld [vmem:[%s9332_s7 + $0x40] ss:$16 sps:$4 sm:$0xff]   ;;  %5620 = vmatprep.mubr.bf16.mxu1 %v9397_v52 }
  0x41   : > { %v7824_v10 = vld [vmem:[%s9332_s7 + $0x244] ss:$16 sps:$4 sm:$0xff]   ;;  %v7827_v12 = vld [vmem:[%s9332_s7 + $0x240] ss:$16 sps:$4 sm:$0xff]  }
  0x42   : > { %5550 = vmatpush1.bf16.msra.mxu0 %v7820_v7  ;;  %v7828_v13 = vld [vmem:[%s9332_s7 + $0x64] ss:$16 sps:$4 sm:$0xff]   ;;  %v7832_v15 = vld [vmem:[%s9332_s7 + $0x60] ss:$16 sps:$4 sm:$0xff]  }
  0x43   : > { %5591 = vmatpush1.bf16.msra.mxu1 %v7821_v8  ;;  %5551 = vmatprep.subr.bf16.mxu0 %v7822_v9  ;;  %v7830_v14 = vld [vmem:[%s9332_s7 + $0x264] ss:$16 sps:$4 sm:$0xff]   ;;  %v7833_v16 = vld [vmem:[%s9332_s7 + $0x260] ss:$16 sps:$4 sm:$0xff]   ;;  %v9421_v8 = vcombine.low %v255_v49, %v255_v49 }
  0x44   : > { %5592 = vmatprep.subr.bf16.mxu1 %v7824_v10  ;;  %v7834_v17 = vld [vmem:[%s9332_s7 + $0x84] ss:$16 sps:$4 sm:$0xff]   ;;  %v7838_v19 = vld [vmem:[%s9332_s7 + $0x80] ss:$16 sps:$4 sm:$0xff]  }
  0x45   : > { %v7836_v18 = vld [vmem:[%s9332_s7 + $0x284] ss:$16 sps:$4 sm:$0xff]   ;;  %v7839_v20 = vld [vmem:[%s9332_s7 + $0x280] ss:$16 sps:$4 sm:$0xff]  }
  0x46   : > { %5552 = vmatpush1.bf16.msra.mxu0 %v7826_v11  ;;  %v7840_v21 = vld [vmem:[%s9332_s7 + $0xa4] ss:$16 sps:$4 sm:$0xff]   ;;  %v7844_v23 = vld [vmem:[%s9332_s7 + $0xa0] ss:$16 sps:$4 sm:$0xff]  }
  0x47   : > { %5593 = vmatpush1.bf16.msra.mxu1 %v7827_v12  ;;  %5553 = vmatprep.subr.bf16.mxu0 %v7828_v13  ;;  %v7842_v22 = vld [vmem:[%s9332_s7 + $0x2a4] ss:$16 sps:$4 sm:$0xff]   ;;  %v7845_v24 = vld [vmem:[%s9332_s7 + $0x2a0] ss:$16 sps:$4 sm:$0xff]  }
  0x48   : > { %5594 = vmatprep.subr.bf16.mxu1 %v7830_v14  ;;  %v7846_v25 = vld [vmem:[%s9332_s7 + $0xc4] ss:$16 sps:$4 sm:$0xff]   ;;  %v7850_v27 = vld [vmem:[%s9332_s7 + $0xc0] ss:$16 sps:$4 sm:$0xff]  }
  0x49   : > { %v7848_v26 = vld [vmem:[%s9332_s7 + $0x2c4] ss:$16 sps:$4 sm:$0xff]   ;;  %v7851_v28 = vld [vmem:[%s9332_s7 + $0x2c0] ss:$16 sps:$4 sm:$0xff]  }
  0x4a   : > { %5554 = vmatpush1.bf16.msra.mxu0 %v7832_v15  ;;  %v7852_v29 = vld [vmem:[%s9332_s7 + $0xe4] ss:$16 sps:$4 sm:$0xff]   ;;  %v7856_v31 = vld [vmem:[%s9332_s7 + $0xe0] ss:$16 sps:$4 sm:$0xff]  }
  0x4b   : > { %5595 = vmatpush1.bf16.msra.mxu1 %v7833_v16  ;;  %5555 = vmatprep.subr.bf16.mxu0 %v7834_v17  ;;  %v7854_v30 = vld [vmem:[%s9332_s7 + $0x2e4] ss:$16 sps:$4 sm:$0xff]   ;;  %v7857_v32 = vld [vmem:[%s9332_s7 + $0x2e0] ss:$16 sps:$4 sm:$0xff]  }
  0x4c   : > { %5596 = vmatprep.subr.bf16.mxu1 %v7836_v18  ;;  %v7858_v33 = vld [vmem:[%s9332_s7 + $0x104] ss:$16 sps:$4 sm:$0xff]   ;;  %v7862_v35 = vld [vmem:[%s9332_s7 + $0x100] ss:$16 sps:$4 sm:$0xff]  }
  0x4d   : > { %v7860_v34 = vld [vmem:[%s9332_s7 + $0x304] ss:$16 sps:$4 sm:$0xff]   ;;  %v7863_v36 = vld [vmem:[%s9332_s7 + $0x300] ss:$16 sps:$4 sm:$0xff]  }
  0x4e   : > { %5556 = vmatpush1.bf16.msra.mxu0 %v7838_v19  ;;  %v7864_v37 = vld [vmem:[%s9332_s7 + $0x124] ss:$16 sps:$4 sm:$0xff]   ;;  %v7868_v39 = vld [vmem:[%s9332_s7 + $0x120] ss:$16 sps:$4 sm:$0xff]  }
  0x4f   : > { %5597 = vmatpush1.bf16.msra.mxu1 %v7839_v20  ;;  %5557 = vmatprep.subr.bf16.mxu0 %v7840_v21  ;;  %v7866_v38 = vld [vmem:[%s9332_s7 + $0x324] ss:$16 sps:$4 sm:$0xff]   ;;  %v7869_v40 = vld [vmem:[%s9332_s7 + $0x320] ss:$16 sps:$4 sm:$0xff]  }
  0x50   : > { %5598 = vmatprep.subr.bf16.mxu1 %v7842_v22  ;;  %v7870_v41 = vld [vmem:[%s9332_s7 + $0x144] ss:$16 sps:$4 sm:$0xff]   ;;  %v7874_v43 = vld [vmem:[%s9332_s7 + $0x140] ss:$16 sps:$4 sm:$0xff]  }
  0x51   : > { %v7872_v42 = vld [vmem:[%s9332_s7 + $0x344] ss:$16 sps:$4 sm:$0xff]   ;;  %v7875_v44 = vld [vmem:[%s9332_s7 + $0x340] ss:$16 sps:$4 sm:$0xff]  }
  0x52   : > { %5558 = vmatpush1.bf16.msra.mxu0 %v7844_v23  ;;  %v7876_v45 = vld [vmem:[%s9332_s7 + $0x164] ss:$16 sps:$4 sm:$0xff]   ;;  %v7880_v50 = vld [vmem:[%s9332_s7 + $0x160] ss:$16 sps:$4 sm:$0xff]  }
  0x53   : > { %5599 = vmatpush1.bf16.msra.mxu1 %v7845_v24  ;;  %5559 = vmatprep.subr.bf16.mxu0 %v7846_v25  ;;  %v7878_v46 = vld [vmem:[%s9332_s7 + $0x364] ss:$16 sps:$4 sm:$0xff]   ;;  %v7881_v51 = vld [vmem:[%s9332_s7 + $0x360] ss:$16 sps:$4 sm:$0xff]  }
  0x54   : > { %5600 = vmatprep.subr.bf16.mxu1 %v7848_v26  ;;  %v254_v47 = vld [vmem:[%s9342_s6] sm:$0xff] }
  0x55   : > { %v9392_v48 = vcombine.high %v254_v47, %v254_v47  ;;  %v7882_v53 = vld [vmem:[%s9332_s7 + $0x184] ss:$16 sps:$4 sm:$0xff]   ;;  %v7886_v55 = vld [vmem:[%s9332_s7 + $0x180] ss:$16 sps:$4 sm:$0xff]   ;;  %v9419_v7 = vcombine.low %v254_v47, %v254_v47 }
  0x56   : > { %5560 = vmatpush1.bf16.msra.mxu0 %v7850_v27  ;;  %v7884_v54 = vld [vmem:[%s9332_s7 + $0x384] ss:$16 sps:$4 sm:$0xff]   ;;  %v7887_v56 = vld [vmem:[%s9332_s7 + $0x380] ss:$16 sps:$4 sm:$0xff]  }
  0x57   : > { %5601 = vmatpush1.bf16.msra.mxu1 %v7851_v28  ;;  %5561 = vmatprep.subr.bf16.mxu0 %v7852_v29  ;;  %v7888_v57 = vld [vmem:[%s9332_s7 + $0x1a4] ss:$16 sps:$4 sm:$0xff]   ;;  %v7892_v59 = vld [vmem:[%s9332_s7 + $0x1a0] ss:$16 sps:$4 sm:$0xff]  }
  0x58   : > { %5602 = vmatprep.subr.bf16.mxu1 %v7854_v30  ;;  %5579 = vmatprep.mubr.bf16.mxu0 %v9392_v48  ;;  %v7890_v58 = vld [vmem:[%s9332_s7 + $0x3a4] ss:$16 sps:$4 sm:$0xff]   ;;  %v7893_v60 = vld [vmem:[%s9332_s7 + $0x3a0] ss:$16 sps:$4 sm:$0xff]  }
  0x59   : > { %v7894_v61 = vld [vmem:[%s9332_s7 + $0x1c4] ss:$16 sps:$4 sm:$0xff]   ;;  %v7898_v63 = vld [vmem:[%s9332_s7 + $0x1c0] ss:$16 sps:$4 sm:$0xff]  }
  0x5a   : > { %5562 = vmatpush1.bf16.msra.mxu0 %v7856_v31  ;;  %v7896_v62 = vld [vmem:[%s9332_s7 + $0x3c4] ss:$16 sps:$4 sm:$0xff]   ;;  %v7899_v0 = vld [vmem:[%s9332_s7 + $0x3c0] ss:$16 sps:$4 sm:$0xff]  }
  0x5b   : > { %5603 = vmatpush1.bf16.msra.mxu1 %v7857_v32  ;;  %5563 = vmatprep.subr.bf16.mxu0 %v7858_v33  ;;  %v7900_v1 = vld [vmem:[%s9332_s7 + $0x1e4] ss:$16 sps:$4 sm:$0xff]   ;;  %v7904_v3 = vld [vmem:[%s9332_s7 + $0x1e0] ss:$16 sps:$4 sm:$0xff]  }
  0x5c   : > { %5604 = vmatprep.subr.bf16.mxu1 %v7860_v34  ;;  %v7902_v2 = vld [vmem:[%s9332_s7 + $0x3e4] ss:$16 sps:$4 sm:$0xff]   ;;  %v7905_v4 = vld [vmem:[%s9332_s7 + $0x3e0] ss:$16 sps:$4 sm:$0xff]   ;;  %v9453_v34 = vld [vmem:[%s9342_s6 + $0x18] sm:$0xff] }
  0x5d   : > { %v7912_v5 = vld [vmem:[%s9332_s7 + $0x404] ss:$16 sps:$4 sm:$0xff]   ;;  %v7910_v9 = vld [vmem:[%s9332_s7 + $0x400] ss:$16 sps:$4 sm:$0xff]  }
  0x5e   : > { %5564 = vmatpush1.bf16.msra.mxu0 %v7862_v35  ;;  %v7915_v6 = vld [vmem:[%s9332_s7 + $0x604] ss:$16 sps:$4 sm:$0xff]   ;;  %v7913_v10 = vld [vmem:[%s9332_s7 + $0x600] ss:$16 sps:$4 sm:$0xff]  }
  0x5f   : > { %5605 = vmatpush1.bf16.msra.mxu1 %v7863_v36  ;;  %5565 = vmatprep.subr.bf16.mxu0 %v7864_v37  ;;  %v7918_v11 = vld [vmem:[%s9332_s7 + $0x424] ss:$16 sps:$4 sm:$0xff]   ;;  %v7916_v13 = vld [vmem:[%s9332_s7 + $0x420] ss:$16 sps:$4 sm:$0xff]  }
  0x60   : > { %5606 = vmatprep.subr.bf16.mxu1 %v7866_v38  ;;  %v7921_v12 = vld [vmem:[%s9332_s7 + $0x624] ss:$16 sps:$4 sm:$0xff]   ;;  %v7919_v14 = vld [vmem:[%s9332_s7 + $0x620] ss:$16 sps:$4 sm:$0xff]   ;;  %v9463_v38 = vcombine.high %v9453_v34, %v9453_v34 }
  0x61   : > { %v7924_v15 = vld [vmem:[%s9332_s7 + $0x444] ss:$16 sps:$4 sm:$0xff]   ;;  %v7922_v17 = vld [vmem:[%s9332_s7 + $0x440] ss:$16 sps:$4 sm:$0xff]  }
  0x62   : > { %5566 = vmatpush1.bf16.msra.mxu0 %v7868_v39  ;;  %v7927_v16 = vld [vmem:[%s9332_s7 + $0x644] ss:$16 sps:$4 sm:$0xff]   ;;  %v7925_v18 = vld [vmem:[%s9332_s7 + $0x640] ss:$16 sps:$4 sm:$0xff]  }
  0x63   : > { %5607 = vmatpush1.bf16.msra.mxu1 %v7869_v40  ;;  %5567 = vmatprep.subr.bf16.mxu0 %v7870_v41  ;;  %v7930_v19 = vld [vmem:[%s9332_s7 + $0x464] ss:$16 sps:$4 sm:$0xff]   ;;  %v7928_v21 = vld [vmem:[%s9332_s7 + $0x460] ss:$16 sps:$4 sm:$0xff]  }
  0x64   : > { %5608 = vmatprep.subr.bf16.mxu1 %v7872_v42  ;;  %v7933_v20 = vld [vmem:[%s9332_s7 + $0x664] ss:$16 sps:$4 sm:$0xff]   ;;  %v7931_v22 = vld [vmem:[%s9332_s7 + $0x660] ss:$16 sps:$4 sm:$0xff]  }
  0x65   : > { %v7936_v23 = vld [vmem:[%s9332_s7 + $0x484] ss:$16 sps:$4 sm:$0xff]   ;;  %v7934_v25 = vld [vmem:[%s9332_s7 + $0x480] ss:$16 sps:$4 sm:$0xff]  }
  0x66   : > { %5568 = vmatpush1.bf16.msra.mxu0 %v7874_v43  ;;  %v7939_v24 = vld [vmem:[%s9332_s7 + $0x684] ss:$16 sps:$4 sm:$0xff]   ;;  %v7937_v26 = vld [vmem:[%s9332_s7 + $0x680] ss:$16 sps:$4 sm:$0xff]  }
  0x67   : > { %5609 = vmatpush1.bf16.msra.mxu1 %v7875_v44  ;;  %5569 = vmatprep.subr.bf16.mxu0 %v7876_v45  ;;  %v7942_v27 = vld [vmem:[%s9332_s7 + $0x4a4] ss:$16 sps:$4 sm:$0xff]   ;;  %v7940_v29 = vld [vmem:[%s9332_s7 + $0x4a0] ss:$16 sps:$4 sm:$0xff]  }
  0x68   : > { %5610 = vmatprep.subr.bf16.mxu1 %v7878_v46  ;;  %v7945_v28 = vld [vmem:[%s9332_s7 + $0x6a4] ss:$16 sps:$4 sm:$0xff]   ;;  %v7943_v30 = vld [vmem:[%s9332_s7 + $0x6a0] ss:$16 sps:$4 sm:$0xff]  }
  0x69   : > { %v7948_v31 = vld [vmem:[%s9332_s7 + $0x4c4] ss:$16 sps:$4 sm:$0xff]   ;;  %v7946_v35 = vld [vmem:[%s9332_s7 + $0x4c0] ss:$16 sps:$4 sm:$0xff]  }
  0x6a   : > { %5570 = vmatpush1.bf16.msra.mxu0 %v7880_v50  ;;  %v7951_v32 = vld [vmem:[%s9332_s7 + $0x6c4] ss:$16 sps:$4 sm:$0xff]   ;;  %v7949_v36 = vld [vmem:[%s9332_s7 + $0x6c0] ss:$16 sps:$4 sm:$0xff]  }
  0x6b   : > { %5611 = vmatpush1.bf16.msra.mxu1 %v7881_v51  ;;  %5571 = vmatprep.subr.bf16.mxu0 %v7882_v53  ;;  %v9450_v33 = vld [vmem:[%s9342_s6 + $0x10] sm:$0xff] }
  0x6c   : > { %5612 = vmatprep.subr.bf16.mxu1 %v7884_v54  ;;  %v9459_v37 = vcombine.high %v9450_v33, %v9450_v33  ;;  %v7954_v39 = vld [vmem:[%s9332_s7 + $0x4e4] ss:$16 sps:$4 sm:$0xff]   ;;  %v7952_v41 = vld [vmem:[%s9332_s7 + $0x4e0] ss:$16 sps:$4 sm:$0xff]  }
  0x6d   : > { %v7957_v40 = vld [vmem:[%s9332_s7 + $0x6e4] ss:$16 sps:$4 sm:$0xff]   ;;  %v7955_v42 = vld [vmem:[%s9332_s7 + $0x6e0] ss:$16 sps:$4 sm:$0xff]  }
  0x6e   : > { %5572 = vmatpush1.bf16.msra.mxu0 %v7886_v55  ;;  %v7960_v43 = vld [vmem:[%s9332_s7 + $0x504] ss:$16 sps:$4 sm:$0xff]   ;;  %v7958_v45 = vld [vmem:[%s9332_s7 + $0x500] ss:$16 sps:$4 sm:$0xff]  }
  0x6f   : > { %5613 = vmatpush1.bf16.msra.mxu1 %v7887_v56  ;;  %5573 = vmatprep.subr.bf16.mxu0 %v7888_v57  ;;  %v7963_v44 = vld [vmem:[%s9332_s7 + $0x704] ss:$16 sps:$4 sm:$0xff]   ;;  %v7961_v46 = vld [vmem:[%s9332_s7 + $0x700] ss:$16 sps:$4 sm:$0xff]  }
  0x70   : > { %5614 = vmatprep.subr.bf16.mxu1 %v7890_v58  ;;  %v7966_v47 = vld [vmem:[%s9332_s7 + $0x524] ss:$16 sps:$4 sm:$0xff]   ;;  %v7964_v50 = vld [vmem:[%s9332_s7 + $0x520] ss:$16 sps:$4 sm:$0xff]  }
  0x71   : > { %v7969_v49 = vld [vmem:[%s9332_s7 + $0x724] ss:$16 sps:$4 sm:$0xff]   ;;  %v7967_v51 = vld [vmem:[%s9332_s7 + $0x720] ss:$16 sps:$4 sm:$0xff]  }
  0x72   : > { %5574 = vmatpush1.bf16.msra.mxu0 %v7892_v59  ;;  %v7972_v53 = vld [vmem:[%s9332_s7 + $0x544] ss:$16 sps:$4 sm:$0xff]   ;;  %v7970_v55 = vld [vmem:[%s9332_s7 + $0x540] ss:$16 sps:$4 sm:$0xff]  }
  0x73   : > { %5615 = vmatpush1.bf16.msra.mxu1 %v7893_v60  ;;  %5575 = vmatprep.subr.bf16.mxu0 %v7894_v61  ;;  %v7975_v54 = vld [vmem:[%s9332_s7 + $0x744] ss:$16 sps:$4 sm:$0xff]   ;;  %v7973_v56 = vld [vmem:[%s9332_s7 + $0x740] ss:$16 sps:$4 sm:$0xff]  }
  0x74   : > { %5616 = vmatprep.subr.bf16.mxu1 %v7896_v62  ;;  %v7978_v57 = vld [vmem:[%s9332_s7 + $0x564] ss:$16 sps:$4 sm:$0xff]   ;;  %v7976_v59 = vld [vmem:[%s9332_s7 + $0x560] ss:$16 sps:$4 sm:$0xff]  }
  0x75   : > { %v7981_v58 = vld [vmem:[%s9332_s7 + $0x764] ss:$16 sps:$4 sm:$0xff]   ;;  %v7979_v60 = vld [vmem:[%s9332_s7 + $0x760] ss:$16 sps:$4 sm:$0xff]  }
  0x76   : > { %5576 = vmatpush1.bf16.msra.mxu0 %v7898_v63  ;;  %v7984_v61 = vld [vmem:[%s9332_s7 + $0x584] ss:$16 sps:$4 sm:$0xff]   ;;  %v7982_v63 = vld [vmem:[%s9332_s7 + $0x580] ss:$16 sps:$4 sm:$0xff]  }
  0x77   : > { %5617 = vmatpush1.bf16.msra.mxu1 %v7899_v0  ;;  %5577 = vmatprep.subr.bf16.mxu0 %v7900_v1  ;;  %v7987_v62 = vld [vmem:[%s9332_s7 + $0x784] ss:$16 sps:$4 sm:$0xff]   ;;  %v7985_v0 = vld [vmem:[%s9332_s7 + $0x780] ss:$16 sps:$4 sm:$0xff]  }
  0x78   : > { %5618 = vmatprep.subr.bf16.mxu1 %v7902_v2  ;;  %v7990_v1 = vld [vmem:[%s9332_s7 + $0x5a4] ss:$16 sps:$4 sm:$0xff]  }
  0x79   : > { %v7993_v2 = vld [vmem:[%s9332_s7 + $0x7a4] ss:$16 sps:$4 sm:$0xff]  }
  0x7a   : > { %5578 = vmatpush1.bf16.msra.mxu0 %v7904_v3  ;;  %v7988_v3 = vld [vmem:[%s9332_s7 + $0x5a0] ss:$16 sps:$4 sm:$0xff]  }
  0x7b   : > { %5619 = vmatpush1.bf16.msra.mxu1 %v7905_v4  ;;  %5629 = vmatprep.subr.bf16.mxu0 %v7912_v5  ;;  %v7991_v4 = vld [vmem:[%s9332_s7 + $0x7a0] ss:$16 sps:$4 sm:$0xff]   ;;  %v7996_v5 = vld [vmem:[%s9332_s7 + $0x5c4] ss:$16 sps:$4 sm:$0xff]  }
  0x7c   : > { %5670 = vmatprep.subr.bf16.mxu1 %v7915_v6  ;;  %v7999_v6 = vld [vmem:[%s9332_s7 + $0x7c4] ss:$16 sps:$4 sm:$0xff]  }
  0x7d   : > { %5580 = vmatmul.mubr.bf16.vlgmr.msra.gmra.mrb[0].mxu0 %v9419_v7 }
  0x7e   : > { %5621 = vmatmul.mubr.bf16.vlgmr.msra.gmra.mrb[0].mxu1 %v9421_v8  ;;  %5630 = vmatpush1.bf16.msra.mxu0 %v7910_v9  ;;  %v7994_v9 = vld [vmem:[%s9332_s7 + $0x5c0] ss:$16 sps:$4 sm:$0xff]  }
  0x7f   : > { %5671 = vmatpush1.bf16.msra.mxu1 %v7913_v10  ;;  %5631 = vmatprep.subr.bf16.mxu0 %v7918_v11  ;;  %v7997_v10 = vld [vmem:[%s9332_s7 + $0x7c0] ss:$16 sps:$4 sm:$0xff]   ;;  %v8002_v11 = vld [vmem:[%s9332_s7 + $0x5e4] ss:$16 sps:$4 sm:$0xff]  }
  0x80   : > { %5672 = vmatprep.subr.bf16.mxu1 %v7921_v12  ;;  %5661 = vmatprep.mubr.bf16.mxu0 %v9459_v37  ;;  %v8005_v12 = vld [vmem:[%s9332_s7 + $0x7e4] ss:$16 sps:$4 sm:$0xff]  }
  0x81   : > { %5702 = vmatprep.mubr.bf16.mxu1 %v9463_v38 }
  0x82   : > { %5632 = vmatpush1.bf16.msra.mxu0 %v7916_v13  ;;  %v8000_v13 = vld [vmem:[%s9332_s7 + $0x5e0] ss:$16 sps:$4 sm:$0xff]  }
  0x83   : > { %5673 = vmatpush1.bf16.msra.mxu1 %v7919_v14  ;;  %5633 = vmatprep.subr.bf16.mxu0 %v7924_v15  ;;  %v8003_v14 = vld [vmem:[%s9332_s7 + $0x7e0] ss:$16 sps:$4 sm:$0xff]   ;;  %v8012_v15 = vld [vmem:[%s9332_s7 + $0x804] ss:$16 sps:$4 sm:$0xff]  }
  0x84   : > { %5674 = vmatprep.subr.bf16.mxu1 %v7927_v16  ;;  %v8015_v16 = vld [vmem:[%s9332_s7 + $0xa04] ss:$16 sps:$4 sm:$0xff]  }
  0x86   : > { %5634 = vmatpush1.bf16.msra.mxu0 %v7922_v17  ;;  %v9507_v17 = vcombine.low %v9450_v33, %v9450_v33  ;;  %v8030_v33 = vld [vmem:[%s9332_s7 + $0x864] ss:$16 sps:$4 sm:$0xff]  }
  0x87   : > { %5675 = vmatpush1.bf16.msra.mxu1 %v7925_v18  ;;  %5635 = vmatprep.subr.bf16.mxu0 %v7930_v19  ;;  %v9511_v18 = vcombine.low %v9453_v34, %v9453_v34  ;;  %v8010_v19 = vld [vmem:[%s9332_s7 + $0x800] ss:$16 sps:$4 sm:$0xff]   ;;  %v8033_v34 = vld [vmem:[%s9332_s7 + $0xa64] ss:$16 sps:$4 sm:$0xff]  }
  0x88   : > { %5676 = vmatprep.subr.bf16.mxu1 %v7933_v20  ;;  %v8013_v20 = vld [vmem:[%s9332_s7 + $0xa00] ss:$16 sps:$4 sm:$0xff]  }
  0x8a   : > { %5636 = vmatpush1.bf16.msra.mxu0 %v7928_v21  ;;  %v8018_v21 = vld [vmem:[%s9332_s7 + $0x824] ss:$16 sps:$4 sm:$0xff]  }
  0x8b   : > { %5677 = vmatpush1.bf16.msra.mxu1 %v7931_v22  ;;  %5637 = vmatprep.subr.bf16.mxu0 %v7936_v23  ;;  %v8021_v22 = vld [vmem:[%s9332_s7 + $0xa24] ss:$16 sps:$4 sm:$0xff]  }
  0x8c   : > { %5678 = vmatprep.subr.bf16.mxu1 %v7939_v24  ;;  %v9518_v23 = vld [vmem:[%s9342_s6 + $0x20] sm:$0xff]  ;;  %v9521_v24 = vld [vmem:[%s9342_s6 + $0x28] sm:$0xff] }
  0x8e   : > { %5638 = vmatpush1.bf16.msra.mxu0 %v7934_v25  ;;  %v9525_v25 = vcombine.high %v9518_v23, %v9518_v23 }
  0x8f   : > { %5679 = vmatpush1.bf16.msra.mxu1 %v7937_v26  ;;  %5639 = vmatprep.subr.bf16.mxu0 %v7942_v27  ;;  %v9529_v26 = vcombine.high %v9521_v24, %v9521_v24  ;;  %v8016_v27 = vld [vmem:[%s9332_s7 + $0x820] ss:$16 sps:$4 sm:$0xff]  }
  0x90   : > { %5680 = vmatprep.subr.bf16.mxu1 %v7945_v28  ;;  %v8019_v28 = vld [vmem:[%s9332_s7 + $0xa20] ss:$16 sps:$4 sm:$0xff]  }
  0x92   : > { %5640 = vmatpush1.bf16.msra.mxu0 %v7940_v29  ;;  %v8024_v29 = vld [vmem:[%s9332_s7 + $0x844] ss:$16 sps:$4 sm:$0xff]  }
  0x93   : > { %5681 = vmatpush1.bf16.msra.mxu1 %v7943_v30  ;;  %5641 = vmatprep.subr.bf16.mxu0 %v7948_v31  ;;  %v8027_v30 = vld [vmem:[%s9332_s7 + $0xa44] ss:$16 sps:$4 sm:$0xff]   ;;  %v8022_v31 = vld [vmem:[%s9332_s7 + $0x840] ss:$16 sps:$4 sm:$0xff]  }
  0x94   : > { %5682 = vmatprep.subr.bf16.mxu1 %v7951_v32  ;;  %v8025_v32 = vld [vmem:[%s9332_s7 + $0xa40] ss:$16 sps:$4 sm:$0xff]  }
  0x96   : > { %5642 = vmatpush1.bf16.msra.mxu0 %v7946_v35  ;;  %v8028_v35 = vld [vmem:[%s9332_s7 + $0x860] ss:$16 sps:$4 sm:$0xff]  }
  0x97   : > { %5683 = vmatpush1.bf16.msra.mxu1 %v7949_v36  ;;  %5643 = vmatprep.subr.bf16.mxu0 %v7954_v39  ;;  %v8031_v36 = vld [vmem:[%s9332_s7 + $0xa60] ss:$16 sps:$4 sm:$0xff]   ;;  %v8036_v39 = vld [vmem:[%s9332_s7 + $0x884] ss:$16 sps:$4 sm:$0xff]  }
  0x98   : > { %5684 = vmatprep.subr.bf16.mxu1 %v7957_v40  ;;  %v8039_v40 = vld [vmem:[%s9332_s7 + $0xa84] ss:$16 sps:$4 sm:$0xff]  }
  0x9a   : > { %5644 = vmatpush1.bf16.msra.mxu0 %v7952_v41  ;;  %v8034_v41 = vld [vmem:[%s9332_s7 + $0x880] ss:$16 sps:$4 sm:$0xff]  }
  0x9b   : > { %5685 = vmatpush1.bf16.msra.mxu1 %v7955_v42  ;;  %5645 = vmatprep.subr.bf16.mxu0 %v7960_v43  ;;  %v8037_v42 = vld [vmem:[%s9332_s7 + $0xa80] ss:$16 sps:$4 sm:$0xff]   ;;  %v8042_v43 = vld [vmem:[%s9332_s7 + $0x8a4] ss:$16 sps:$4 sm:$0xff]  }
  0x9c   : > { %5686 = vmatprep.subr.bf16.mxu1 %v7963_v44  ;;  %v8045_v44 = vld [vmem:[%s9332_s7 + $0xaa4] ss:$16 sps:$4 sm:$0xff]  }
  0x9e   : > { %5646 = vmatpush1.bf16.msra.mxu0 %v7958_v45  ;;  %v8040_v45 = vld [vmem:[%s9332_s7 + $0x8a0] ss:$16 sps:$4 sm:$0xff]  }
  0x9f   : > { %5687 = vmatpush1.bf16.msra.mxu1 %v7961_v46  ;;  %5647 = vmatprep.subr.bf16.mxu0 %v7966_v47  ;;  %v8043_v46 = vld [vmem:[%s9332_s7 + $0xaa0] ss:$16 sps:$4 sm:$0xff]   ;;  %v8048_v47 = vld [vmem:[%s9332_s7 + $0x8c4] ss:$16 sps:$4 sm:$0xff]  }
  0xa0   : > { %5688 = vmatprep.subr.bf16.mxu1 %v7969_v49  ;;  %v8051_v49 = vld [vmem:[%s9332_s7 + $0xac4] ss:$16 sps:$4 sm:$0xff]  }
  0xa2   : > { %5648 = vmatpush1.bf16.msra.mxu0 %v7964_v50  ;;  %v8046_v50 = vld [vmem:[%s9332_s7 + $0x8c0] ss:$16 sps:$4 sm:$0xff]  }
  0xa3   : > { %5689 = vmatpush1.bf16.msra.mxu1 %v7967_v51  ;;  %5649 = vmatprep.subr.bf16.mxu0 %v7972_v53  ;;  %v8049_v51 = vld [vmem:[%s9332_s7 + $0xac0] ss:$16 sps:$4 sm:$0xff]   ;;  %v8054_v53 = vld [vmem:[%s9332_s7 + $0x8e4] ss:$16 sps:$4 sm:$0xff]  }
  0xa4   : > { %5690 = vmatprep.subr.bf16.mxu1 %v7975_v54  ;;  %v8057_v54 = vld [vmem:[%s9332_s7 + $0xae4] ss:$16 sps:$4 sm:$0xff]  }
  0xa6   : > { %5650 = vmatpush1.bf16.msra.mxu0 %v7970_v55  ;;  %v8052_v55 = vld [vmem:[%s9332_s7 + $0x8e0] ss:$16 sps:$4 sm:$0xff]  }
  0xa7   : > { %5691 = vmatpush1.bf16.msra.mxu1 %v7973_v56  ;;  %5651 = vmatprep.subr.bf16.mxu0 %v7978_v57  ;;  %v8055_v56 = vld [vmem:[%s9332_s7 + $0xae0] ss:$16 sps:$4 sm:$0xff]   ;;  %v8060_v57 = vld [vmem:[%s9332_s7 + $0x904] ss:$16 sps:$4 sm:$0xff]  }
  0xa8   : > { %5692 = vmatprep.subr.bf16.mxu1 %v7981_v58  ;;  %v8063_v58 = vld [vmem:[%s9332_s7 + $0xb04] ss:$16 sps:$4 sm:$0xff]  }
  0xaa   : > { %5652 = vmatpush1.bf16.msra.mxu0 %v7976_v59  ;;  %v8058_v59 = vld [vmem:[%s9332_s7 + $0x900] ss:$16 sps:$4 sm:$0xff]  }
  0xab   : > { %5693 = vmatpush1.bf16.msra.mxu1 %v7979_v60  ;;  %5653 = vmatprep.subr.bf16.mxu0 %v7984_v61  ;;  %v8061_v60 = vld [vmem:[%s9332_s7 + $0xb00] ss:$16 sps:$4 sm:$0xff]   ;;  %v8066_v61 = vld [vmem:[%s9332_s7 + $0x924] ss:$16 sps:$4 sm:$0xff]  }
  0xac   : > { %5694 = vmatprep.subr.bf16.mxu1 %v7987_v62  ;;  %v8069_v62 = vld [vmem:[%s9332_s7 + $0xb24] ss:$16 sps:$4 sm:$0xff]  }
  0xae   : > { %5654 = vmatpush1.bf16.msra.mxu0 %v7982_v63  ;;  %v8064_v63 = vld [vmem:[%s9332_s7 + $0x920] ss:$16 sps:$4 sm:$0xff]  }
  0xaf   : > { %5695 = vmatpush1.bf16.msra.mxu1 %v7985_v0  ;;  %5655 = vmatprep.subr.bf16.mxu0 %v7990_v1  ;;  %v8067_v0 = vld [vmem:[%s9332_s7 + $0xb20] ss:$16 sps:$4 sm:$0xff]   ;;  %v8072_v1 = vld [vmem:[%s9332_s7 + $0x944] ss:$16 sps:$4 sm:$0xff]  }
  0xb0   : > { %5696 = vmatprep.subr.bf16.mxu1 %v7993_v2  ;;  %v8075_v2 = vld [vmem:[%s9332_s7 + $0xb44] ss:$16 sps:$4 sm:$0xff]  }
  0xb2   : > { %5656 = vmatpush1.bf16.msra.mxu0 %v7988_v3  ;;  %v8070_v3 = vld [vmem:[%s9332_s7 + $0x940] ss:$16 sps:$4 sm:$0xff]  }
  0xb3   : > { %5697 = vmatpush1.bf16.msra.mxu1 %v7991_v4  ;;  %5657 = vmatprep.subr.bf16.mxu0 %v7996_v5  ;;  %v8073_v4 = vld [vmem:[%s9332_s7 + $0xb40] ss:$16 sps:$4 sm:$0xff]   ;;  %v8078_v5 = vld [vmem:[%s9332_s7 + $0x964] ss:$16 sps:$4 sm:$0xff]  }
  0xb4   : > { %5698 = vmatprep.subr.bf16.mxu1 %v7999_v6  ;;  %v8081_v6 = vld [vmem:[%s9332_s7 + $0xb64] ss:$16 sps:$4 sm:$0xff]  }
  0xb6   : > { %5658 = vmatpush1.bf16.msra.mxu0 %v7994_v9  ;;  %v8076_v9 = vld [vmem:[%s9332_s7 + $0x960] ss:$16 sps:$4 sm:$0xff]  }
  0xb7   : > { %5699 = vmatpush1.bf16.msra.mxu1 %v7997_v10  ;;  %5659 = vmatprep.subr.bf16.mxu0 %v8002_v11  ;;  %v8079_v10 = vld [vmem:[%s9332_s7 + $0xb60] ss:$16 sps:$4 sm:$0xff]   ;;  %v8084_v11 = vld [vmem:[%s9332_s7 + $0x984] ss:$16 sps:$4 sm:$0xff]  }
  0xb8   : > { %5700 = vmatprep.subr.bf16.mxu1 %v8005_v12  ;;  %v8087_v12 = vld [vmem:[%s9332_s7 + $0xb84] ss:$16 sps:$4 sm:$0xff]  }
  0xba   : > { %5660 = vmatpush1.bf16.msra.mxu0 %v8000_v13  ;;  %v8082_v13 = vld [vmem:[%s9332_s7 + $0x980] ss:$16 sps:$4 sm:$0xff]  }
  0xbb   : > { %5701 = vmatpush1.bf16.msra.mxu1 %v8003_v14  ;;  %5711 = vmatprep.subr.bf16.mxu0 %v8012_v15  ;;  %v8085_v14 = vld [vmem:[%s9332_s7 + $0xb80] ss:$16 sps:$4 sm:$0xff]   ;;  %v8090_v15 = vld [vmem:[%s9332_s7 + $0x9a4] ss:$16 sps:$4 sm:$0xff]  }
  0xbc   : > { %5752 = vmatprep.subr.bf16.mxu1 %v8015_v16  ;;  %v8093_v16 = vld [vmem:[%s9332_s7 + $0xba4] ss:$16 sps:$4 sm:$0xff]  }
  0xbd   : > { %5662 = vmatmul.mubr.bf16.vlgmr.msra.gmra.mrb[4].mxu0 %v9507_v17 }
  0xbe   : > { %5703 = vmatmul.mubr.bf16.vlgmr.msra.gmra.mrb[4].mxu1 %v9511_v18  ;;  %5712 = vmatpush1.bf16.msra.mxu0 %v8010_v19  ;;  %v8088_v19 = vld [vmem:[%s9332_s7 + $0x9a0] ss:$16 sps:$4 sm:$0xff]  }
  0xbf   : > { %5753 = vmatpush1.bf16.msra.mxu1 %v8013_v20  ;;  %5713 = vmatprep.subr.bf16.mxu0 %v8018_v21  ;;  %v8091_v20 = vld [vmem:[%s9332_s7 + $0xba0] ss:$16 sps:$4 sm:$0xff]   ;;  %v8096_v21 = vld [vmem:[%s9332_s7 + $0x9c4] ss:$16 sps:$4 sm:$0xff]  }
  0xc0   : > { %5754 = vmatprep.subr.bf16.mxu1 %v8021_v22  ;;  %5743 = vmatprep.mubr.bf16.mxu0 %v9525_v25  ;;  %v8099_v22 = vld [vmem:[%s9332_s7 + $0xbc4] ss:$16 sps:$4 sm:$0xff]  }
  0xc1   : > { %5784 = vmatprep.mubr.bf16.mxu1 %v9529_v26 }
  0xc2   : > { %5714 = vmatpush1.bf16.msra.mxu0 %v8016_v27  ;;  %v8094_v27 = vld [vmem:[%s9332_s7 + $0x9c0] ss:$16 sps:$4 sm:$0xff]  }
  0xc3   : > { %5755 = vmatpush1.bf16.msra.mxu1 %v8019_v28  ;;  %5715 = vmatprep.subr.bf16.mxu0 %v8024_v29  ;;  %v8097_v28 = vld [vmem:[%s9332_s7 + $0xbc0] ss:$16 sps:$4 sm:$0xff]   ;;  %v8102_v29 = vld [vmem:[%s9332_s7 + $0x9e4] ss:$16 sps:$4 sm:$0xff]  }
  0xc4   : > { %5756 = vmatprep.subr.bf16.mxu1 %v8027_v30  ;;  %v8105_v30 = vld [vmem:[%s9332_s7 + $0xbe4] ss:$16 sps:$4 sm:$0xff]  }
  0xc6   : > { %5716 = vmatpush1.bf16.msra.mxu0 %v8022_v31  ;;  %v8100_v31 = vld [vmem:[%s9332_s7 + $0x9e0] ss:$16 sps:$4 sm:$0xff]  }
  0xc7   : > { %5757 = vmatpush1.bf16.msra.mxu1 %v8025_v32  ;;  %5717 = vmatprep.subr.bf16.mxu0 %v8030_v33  ;;  %v8103_v32 = vld [vmem:[%s9332_s7 + $0xbe0] ss:$16 sps:$4 sm:$0xff]   ;;  %v8112_v33 = vld [vmem:[%s9332_s7 + $0xc04] ss:$16 sps:$4 sm:$0xff]  }
  0xc8   : > { %5758 = vmatprep.subr.bf16.mxu1 %v8033_v34  ;;  %v8115_v34 = vld [vmem:[%s9332_s7 + $0xe04] ss:$16 sps:$4 sm:$0xff]  }
  0xca   : > { %5718 = vmatpush1.bf16.msra.mxu0 %v8028_v35  ;;  %v8110_v35 = vld [vmem:[%s9332_s7 + $0xc00] ss:$16 sps:$4 sm:$0xff]  }
  0xcb   : > { %5759 = vmatpush1.bf16.msra.mxu1 %v8031_v36  ;;  %5719 = vmatprep.subr.bf16.mxu0 %v8036_v39  ;;  %v8113_v36 = vld [vmem:[%s9332_s7 + $0xe00] ss:$16 sps:$4 sm:$0xff]   ;;  %v9599_v39 = vcombine.low %v9518_v23, %v9518_v23 }
  0xcc   : > { %5760 = vmatprep.subr.bf16.mxu1 %v8039_v40  ;;  %v9603_v40 = vcombine.low %v9521_v24, %v9521_v24 }
  0xce   : > { %5720 = vmatpush1.bf16.msra.mxu0 %v8034_v41  ;;  %v9606_v41 = vld [vmem:[%s9342_s6 + $0x30] sm:$0xff] }
  0xcf   : > { %5761 = vmatpush1.bf16.msra.mxu1 %v8037_v42  ;;  %5721 = vmatprep.subr.bf16.mxu0 %v8042_v43  ;;  %v9609_v42 = vld [vmem:[%s9342_s6 + $0x38] sm:$0xff]  ;;  %v8118_v43 = vld [vmem:[%s9332_s7 + $0xc24] ss:$16 sps:$4 sm:$0xff]   ;;  %v9615_v23 = vcombine.high %v9606_v41, %v9606_v41 }
  0xd0   : > { %5762 = vmatprep.subr.bf16.mxu1 %v8045_v44  ;;  %v8121_v44 = vld [vmem:[%s9332_s7 + $0xe24] ss:$16 sps:$4 sm:$0xff]   ;;  %v9619_v24 = vcombine.high %v9609_v42, %v9609_v42 }
  0xd2   : > { %5722 = vmatpush1.bf16.msra.mxu0 %v8040_v45  ;;  %v8116_v45 = vld [vmem:[%s9332_s7 + $0xc20] ss:$16 sps:$4 sm:$0xff]  }
  0xd3   : > { %5763 = vmatpush1.bf16.msra.mxu1 %v8043_v46  ;;  %5723 = vmatprep.subr.bf16.mxu0 %v8048_v47  ;;  %v8119_v46 = vld [vmem:[%s9332_s7 + $0xe20] ss:$16 sps:$4 sm:$0xff]   ;;  %v8124_v47 = vld [vmem:[%s9332_s7 + $0xc44] ss:$16 sps:$4 sm:$0xff]  }
  0xd4   : > { %5764 = vmatprep.subr.bf16.mxu1 %v8051_v49  ;;  %v8127_v49 = vld [vmem:[%s9332_s7 + $0xe44] ss:$16 sps:$4 sm:$0xff]  }
  0xd6   : > { %5724 = vmatpush1.bf16.msra.mxu0 %v8046_v50  ;;  %v8122_v50 = vld [vmem:[%s9332_s7 + $0xc40] ss:$16 sps:$4 sm:$0xff]  }
  0xd7   : > { %5765 = vmatpush1.bf16.msra.mxu1 %v8049_v51  ;;  %5725 = vmatprep.subr.bf16.mxu0 %v8054_v53  ;;  %v8125_v51 = vld [vmem:[%s9332_s7 + $0xe40] ss:$16 sps:$4 sm:$0xff]   ;;  %v8130_v53 = vld [vmem:[%s9332_s7 + $0xc64] ss:$16 sps:$4 sm:$0xff]  }
  0xd8   : > { %5766 = vmatprep.subr.bf16.mxu1 %v8057_v54  ;;  %v8133_v54 = vld [vmem:[%s9332_s7 + $0xe64] ss:$16 sps:$4 sm:$0xff]  }
  0xda   : > { %5726 = vmatpush1.bf16.msra.mxu0 %v8052_v55  ;;  %v8128_v55 = vld [vmem:[%s9332_s7 + $0xc60] ss:$16 sps:$4 sm:$0xff]  }
  0xdb   : > { %5767 = vmatpush1.bf16.msra.mxu1 %v8055_v56  ;;  %5727 = vmatprep.subr.bf16.mxu0 %v8060_v57  ;;  %v8131_v56 = vld [vmem:[%s9332_s7 + $0xe60] ss:$16 sps:$4 sm:$0xff]   ;;  %v8136_v57 = vld [vmem:[%s9332_s7 + $0xc84] ss:$16 sps:$4 sm:$0xff]  }
  0xdc   : > { %5768 = vmatprep.subr.bf16.mxu1 %v8063_v58  ;;  %v8139_v58 = vld [vmem:[%s9332_s7 + $0xe84] ss:$16 sps:$4 sm:$0xff]  }
  0xde   : > { %5728 = vmatpush1.bf16.msra.mxu0 %v8058_v59  ;;  %v8134_v59 = vld [vmem:[%s9332_s7 + $0xc80] ss:$16 sps:$4 sm:$0xff]  }
  0xdf   : > { %5769 = vmatpush1.bf16.msra.mxu1 %v8061_v60  ;;  %5729 = vmatprep.subr.bf16.mxu0 %v8066_v61  ;;  %v8137_v60 = vld [vmem:[%s9332_s7 + $0xe80] ss:$16 sps:$4 sm:$0xff]   ;;  %v8142_v61 = vld [vmem:[%s9332_s7 + $0xca4] ss:$16 sps:$4 sm:$0xff]  }
  0xe0   : > { %5770 = vmatprep.subr.bf16.mxu1 %v8069_v62  ;;  %v8145_v62 = vld [vmem:[%s9332_s7 + $0xea4] ss:$16 sps:$4 sm:$0xff]  }
  0xe2   : > { %5730 = vmatpush1.bf16.msra.mxu0 %v8064_v63  ;;  %v8140_v63 = vld [vmem:[%s9332_s7 + $0xca0] ss:$16 sps:$4 sm:$0xff]  }
  0xe3   : > { %5771 = vmatpush1.bf16.msra.mxu1 %v8067_v0  ;;  %5731 = vmatprep.subr.bf16.mxu0 %v8072_v1  ;;  %v8143_v0 = vld [vmem:[%s9332_s7 + $0xea0] ss:$16 sps:$4 sm:$0xff]   ;;  %v8148_v1 = vld [vmem:[%s9332_s7 + $0xcc4] ss:$16 sps:$4 sm:$0xff]  }
  0xe4   : > { %5772 = vmatprep.subr.bf16.mxu1 %v8075_v2  ;;  %v8151_v2 = vld [vmem:[%s9332_s7 + $0xec4] ss:$16 sps:$4 sm:$0xff]  }
  0xe6   : > { %5732 = vmatpush1.bf16.msra.mxu0 %v8070_v3  ;;  %v8146_v3 = vld [vmem:[%s9332_s7 + $0xcc0] ss:$16 sps:$4 sm:$0xff]  }
  0xe7   : > { %5773 = vmatpush1.bf16.msra.mxu1 %v8073_v4  ;;  %5733 = vmatprep.subr.bf16.mxu0 %v8078_v5  ;;  %v8149_v4 = vld [vmem:[%s9332_s7 + $0xec0] ss:$16 sps:$4 sm:$0xff]   ;;  %v8154_v5 = vld [vmem:[%s9332_s7 + $0xce4] ss:$16 sps:$4 sm:$0xff]  }
  0xe8   : > { %5774 = vmatprep.subr.bf16.mxu1 %v8081_v6  ;;  %v8157_v6 = vld [vmem:[%s9332_s7 + $0xee4] ss:$16 sps:$4 sm:$0xff]  }
  0xea   : > { %5734 = vmatpush1.bf16.msra.mxu0 %v8076_v9  ;;  %v8152_v9 = vld [vmem:[%s9332_s7 + $0xce0] ss:$16 sps:$4 sm:$0xff]  }
  0xeb   : > { %5775 = vmatpush1.bf16.msra.mxu1 %v8079_v10  ;;  %5735 = vmatprep.subr.bf16.mxu0 %v8084_v11  ;;  %v8155_v10 = vld [vmem:[%s9332_s7 + $0xee0] ss:$16 sps:$4 sm:$0xff]   ;;  %v8160_v11 = vld [vmem:[%s9332_s7 + $0xd04] ss:$16 sps:$4 sm:$0xff]  }
  0xec   : > { %5776 = vmatprep.subr.bf16.mxu1 %v8087_v12  ;;  %v8163_v12 = vld [vmem:[%s9332_s7 + $0xf04] ss:$16 sps:$4 sm:$0xff]  }
  0xee   : > { %5736 = vmatpush1.bf16.msra.mxu0 %v8082_v13  ;;  %v8158_v13 = vld [vmem:[%s9332_s7 + $0xd00] ss:$16 sps:$4 sm:$0xff]  }
  0xef   : > { %5777 = vmatpush1.bf16.msra.mxu1 %v8085_v14  ;;  %5737 = vmatprep.subr.bf16.mxu0 %v8090_v15  ;;  %v8161_v14 = vld [vmem:[%s9332_s7 + $0xf00] ss:$16 sps:$4 sm:$0xff]   ;;  %v8166_v15 = vld [vmem:[%s9332_s7 + $0xd24] ss:$16 sps:$4 sm:$0xff]  }
  0xf0   : > { %5778 = vmatprep.subr.bf16.mxu1 %v8093_v16  ;;  %v8169_v16 = vld [vmem:[%s9332_s7 + $0xf24] ss:$16 sps:$4 sm:$0xff]  }
  0xf2   : > { %5738 = vmatpush1.bf16.msra.mxu0 %v8088_v19  ;;  %v8164_v19 = vld [vmem:[%s9332_s7 + $0xd20] ss:$16 sps:$4 sm:$0xff]  }
  0xf3   : > { %5779 = vmatpush1.bf16.msra.mxu1 %v8091_v20  ;;  %5739 = vmatprep.subr.bf16.mxu0 %v8096_v21  ;;  %v8167_v20 = vld [vmem:[%s9332_s7 + $0xf20] ss:$16 sps:$4 sm:$0xff]   ;;  %v8172_v21 = vld [vmem:[%s9332_s7 + $0xd44] ss:$16 sps:$4 sm:$0xff]  }
  0xf4   : > { %5780 = vmatprep.subr.bf16.mxu1 %v8099_v22  ;;  %v8175_v22 = vld [vmem:[%s9332_s7 + $0xf44] ss:$16 sps:$4 sm:$0xff]  }
  0xf6   : > { %5740 = vmatpush1.bf16.msra.mxu0 %v8094_v27  ;;  %v8170_v27 = vld [vmem:[%s9332_s7 + $0xd40] ss:$16 sps:$4 sm:$0xff]  }
  0xf7   : > { %5781 = vmatpush1.bf16.msra.mxu1 %v8097_v28  ;;  %5741 = vmatprep.subr.bf16.mxu0 %v8102_v29  ;;  %v8173_v28 = vld [vmem:[%s9332_s7 + $0xf40] ss:$16 sps:$4 sm:$0xff]   ;;  %v8178_v29 = vld [vmem:[%s9332_s7 + $0xd64] ss:$16 sps:$4 sm:$0xff]  }
  0xf8   : > { %5782 = vmatprep.subr.bf16.mxu1 %v8105_v30  ;;  %v8181_v30 = vld [vmem:[%s9332_s7 + $0xf64] ss:$16 sps:$4 sm:$0xff]  }
  0xfa   : > { %5742 = vmatpush1.bf16.msra.mxu0 %v8100_v31  ;;  %v8176_v31 = vld [vmem:[%s9332_s7 + $0xd60] ss:$16 sps:$4 sm:$0xff]  }
  0xfb   : > { %5783 = vmatpush1.bf16.msra.mxu1 %v8103_v32  ;;  %5793 = vmatprep.subr.bf16.mxu0 %v8112_v33  ;;  %v8179_v32 = vld [vmem:[%s9332_s7 + $0xf60] ss:$16 sps:$4 sm:$0xff]   ;;  %v8184_v33 = vld [vmem:[%s9332_s7 + $0xd84] ss:$16 sps:$4 sm:$0xff]  }
  0xfc   : > { %5834 = vmatprep.subr.bf16.mxu1 %v8115_v34  ;;  %v8187_v34 = vld [vmem:[%s9332_s7 + $0xf84] ss:$16 sps:$4 sm:$0xff]  }
  0xfd   : > { %5744 = vmatmul.mubr.bf16.vlgmr.msra.gmra.mrb[8].mxu0 %v9599_v39 }
  0xfe   : > { %5785 = vmatmul.mubr.bf16.vlgmr.msra.gmra.mrb[8].mxu1 %v9603_v40  ;;  %5794 = vmatpush1.bf16.msra.mxu0 %v8110_v35  ;;  %v8182_v35 = vld [vmem:[%s9332_s7 + $0xd80] ss:$16 sps:$4 sm:$0xff]  }
  0xff   : > { %5835 = vmatpush1.bf16.msra.mxu1 %v8113_v36  ;;  %5795 = vmatprep.subr.bf16.mxu0 %v8118_v43  ;;  %v8185_v36 = vld [vmem:[%s9332_s7 + $0xf80] ss:$16 sps:$4 sm:$0xff]   ;;  %v8190_v43 = vld [vmem:[%s9332_s7 + $0xda4] ss:$16 sps:$4 sm:$0xff]  }
 0x100   : > { %5836 = vmatprep.subr.bf16.mxu1 %v8121_v44  ;;  %5825 = vmatprep.mubr.bf16.mxu0 %v9615_v23  ;;  %v8193_v44 = vld [vmem:[%s9332_s7 + $0xfa4] ss:$16 sps:$4 sm:$0xff]  }
 0x101   : > { %5866 = vmatprep.mubr.bf16.mxu1 %v9619_v24 }
 0x102   : > { %5796 = vmatpush1.bf16.msra.mxu0 %v8116_v45  ;;  %v8188_v45 = vld [vmem:[%s9332_s7 + $0xda0] ss:$16 sps:$4 sm:$0xff]  }
 0x103   : > { %5837 = vmatpush1.bf16.msra.mxu1 %v8119_v46  ;;  %5797 = vmatprep.subr.bf16.mxu0 %v8124_v47  ;;  %v8191_v46 = vld [vmem:[%s9332_s7 + $0xfa0] ss:$16 sps:$4 sm:$0xff]   ;;  %v8196_v47 = vld [vmem:[%s9332_s7 + $0xdc4] ss:$16 sps:$4 sm:$0xff]  }
 0x104   : > { %5838 = vmatprep.subr.bf16.mxu1 %v8127_v49  ;;  %v8199_v49 = vld [vmem:[%s9332_s7 + $0xfc4] ss:$16 sps:$4 sm:$0xff]  }
 0x106   : > { %5798 = vmatpush1.bf16.msra.mxu0 %v8122_v50  ;;  %v8194_v50 = vld [vmem:[%s9332_s7 + $0xdc0] ss:$16 sps:$4 sm:$0xff]  }
 0x107   : > { %5839 = vmatpush1.bf16.msra.mxu1 %v8125_v51  ;;  %5799 = vmatprep.subr.bf16.mxu0 %v8130_v53  ;;  %v8197_v51 = vld [vmem:[%s9332_s7 + $0xfc0] ss:$16 sps:$4 sm:$0xff]   ;;  %v8202_v53 = vld [vmem:[%s9332_s7 + $0xde4] ss:$16 sps:$4 sm:$0xff]  }
 0x108   : > { %5840 = vmatprep.subr.bf16.mxu1 %v8133_v54  ;;  %v8205_v54 = vld [vmem:[%s9332_s7 + $0xfe4] ss:$16 sps:$4 sm:$0xff]  }
 0x10a   : > { %5800 = vmatpush1.bf16.msra.mxu0 %v8128_v55  ;;  %v8200_v55 = vld [vmem:[%s9332_s7 + $0xde0] ss:$16 sps:$4 sm:$0xff]  }
 0x10b   : > { %5841 = vmatpush1.bf16.msra.mxu1 %v8131_v56  ;;  %5801 = vmatprep.subr.bf16.mxu0 %v8136_v57  ;;  %v8203_v56 = vld [vmem:[%s9332_s7 + $0xfe0] ss:$16 sps:$4 sm:$0xff]   ;;  %v8212_v57 = vld [vmem:[%s9332_s7 + $0x1004] ss:$16 sps:$4 sm:$0xff]  }
 0x10c   : > { %5842 = vmatprep.subr.bf16.mxu1 %v8139_v58  ;;  %v8215_v58 = vld [vmem:[%s9332_s7 + $0x1204] ss:$16 sps:$4 sm:$0xff]  }
 0x10e   : > { %5802 = vmatpush1.bf16.msra.mxu0 %v8134_v59  ;;  %v9686_v59 = vld [vmem:[%s9342_s6 + $0x40] sm:$0xff] }
 0x10f   : > { %5843 = vmatpush1.bf16.msra.mxu1 %v8137_v60  ;;  %5803 = vmatprep.subr.bf16.mxu0 %v8142_v61  ;;  %v9690_v60 = vcombine.low %v9606_v41, %v9606_v41  ;;  %v9694_v61 = vcombine.low %v9609_v42, %v9609_v42  ;;  %v9705_v41 = vcombine.high %v9686_v59, %v9686_v59 }
 0x110   : > { %5844 = vmatprep.subr.bf16.mxu1 %v8145_v62  ;;  %v9697_v62 = vld [vmem:[%s9342_s6 + $0x48] sm:$0xff] }
 0x111   : > { %v9709_v42 = vcombine.high %v9697_v62, %v9697_v62 }
 0x112   : > { %5804 = vmatpush1.bf16.msra.mxu0 %v8140_v63  ;;  %v8210_v63 = vld [vmem:[%s9332_s7 + $0x1000] ss:$16 sps:$4 sm:$0xff]  }
 0x113   : > { %5845 = vmatpush1.bf16.msra.mxu1 %v8143_v0  ;;  %5805 = vmatprep.subr.bf16.mxu0 %v8148_v1  ;;  %v8213_v0 = vld [vmem:[%s9332_s7 + $0x1200] ss:$16 sps:$4 sm:$0xff]   ;;  %v8218_v1 = vld [vmem:[%s9332_s7 + $0x1024] ss:$16 sps:$4 sm:$0xff]  }
 0x114   : > { %5846 = vmatprep.subr.bf16.mxu1 %v8151_v2  ;;  %v8221_v2 = vld [vmem:[%s9332_s7 + $0x1224] ss:$16 sps:$4 sm:$0xff]  }
 0x116   : > { %5806 = vmatpush1.bf16.msra.mxu0 %v8146_v3  ;;  %v8216_v3 = vld [vmem:[%s9332_s7 + $0x1020] ss:$16 sps:$4 sm:$0xff]  }
 0x117   : > { %5847 = vmatpush1.bf16.msra.mxu1 %v8149_v4  ;;  %5807 = vmatprep.subr.bf16.mxu0 %v8154_v5  ;;  %v8219_v4 = vld [vmem:[%s9332_s7 + $0x1220] ss:$16 sps:$4 sm:$0xff]   ;;  %v8224_v5 = vld [vmem:[%s9332_s7 + $0x1044] ss:$16 sps:$4 sm:$0xff]  }
 0x118   : > { %5848 = vmatprep.subr.bf16.mxu1 %v8157_v6  ;;  %v8227_v6 = vld [vmem:[%s9332_s7 + $0x1244] ss:$16 sps:$4 sm:$0xff]  }
 0x11a   : > { %5808 = vmatpush1.bf16.msra.mxu0 %v8152_v9  ;;  %v8222_v9 = vld [vmem:[%s9332_s7 + $0x1040] ss:$16 sps:$4 sm:$0xff]  }
 0x11b   : > { %5849 = vmatpush1.bf16.msra.mxu1 %v8155_v10  ;;  %5809 = vmatprep.subr.bf16.mxu0 %v8160_v11  ;;  %v8225_v10 = vld [vmem:[%s9332_s7 + $0x1240] ss:$16 sps:$4 sm:$0xff]   ;;  %v8230_v11 = vld [vmem:[%s9332_s7 + $0x1064] ss:$16 sps:$4 sm:$0xff]  }
 0x11c   : > { %5850 = vmatprep.subr.bf16.mxu1 %v8163_v12  ;;  %v8233_v12 = vld [vmem:[%s9332_s7 + $0x1264] ss:$16 sps:$4 sm:$0xff]  }
 0x11e   : > { %5810 = vmatpush1.bf16.msra.mxu0 %v8158_v13  ;;  %v8228_v13 = vld [vmem:[%s9332_s7 + $0x1060] ss:$16 sps:$4 sm:$0xff]  }
 0x11f   : > { %5851 = vmatpush1.bf16.msra.mxu1 %v8161_v14  ;;  %5811 = vmatprep.subr.bf16.mxu0 %v8166_v15  ;;  %v8231_v14 = vld [vmem:[%s9332_s7 + $0x1260] ss:$16 sps:$4 sm:$0xff]   ;;  %v8236_v15 = vld [vmem:[%s9332_s7 + $0x1084] ss:$16 sps:$4 sm:$0xff]  }
 0x120   : > { %5852 = vmatprep.subr.bf16.mxu1 %v8169_v16  ;;  %v8239_v16 = vld [vmem:[%s9332_s7 + $0x1284] ss:$16 sps:$4 sm:$0xff]  }
 0x122   : > { %5812 = vmatpush1.bf16.msra.mxu0 %v8164_v19  ;;  %v8234_v19 = vld [vmem:[%s9332_s7 + $0x1080] ss:$16 sps:$4 sm:$0xff]  }
 0x123   : > { %5853 = vmatpush1.bf16.msra.mxu1 %v8167_v20  ;;  %5813 = vmatprep.subr.bf16.mxu0 %v8172_v21  ;;  %v8237_v20 = vld [vmem:[%s9332_s7 + $0x1280] ss:$16 sps:$4 sm:$0xff]   ;;  %v8242_v21 = vld [vmem:[%s9332_s7 + $0x10a4] ss:$16 sps:$4 sm:$0xff]  }
 0x124   : > { %5854 = vmatprep.subr.bf16.mxu1 %v8175_v22  ;;  %v8245_v22 = vld [vmem:[%s9332_s7 + $0x12a4] ss:$16 sps:$4 sm:$0xff]  }
 0x126   : > { %5814 = vmatpush1.bf16.msra.mxu0 %v8170_v27  ;;  %v8240_v27 = vld [vmem:[%s9332_s7 + $0x10a0] ss:$16 sps:$4 sm:$0xff]  }
 0x127   : > { %5855 = vmatpush1.bf16.msra.mxu1 %v8173_v28  ;;  %5815 = vmatprep.subr.bf16.mxu0 %v8178_v29  ;;  %v8243_v28 = vld [vmem:[%s9332_s7 + $0x12a0] ss:$16 sps:$4 sm:$0xff]   ;;  %v8248_v29 = vld [vmem:[%s9332_s7 + $0x10c4] ss:$16 sps:$4 sm:$0xff]  }
 0x128   : > { %5856 = vmatprep.subr.bf16.mxu1 %v8181_v30  ;;  %v8251_v30 = vld [vmem:[%s9332_s7 + $0x12c4] ss:$16 sps:$4 sm:$0xff]  }
 0x12a   : > { %5816 = vmatpush1.bf16.msra.mxu0 %v8176_v31 }
 0x12b   : > { %5857 = vmatpush1.bf16.msra.mxu1 %v8179_v32  ;;  %5817 = vmatprep.subr.bf16.mxu0 %v8184_v33  ;;  %v8246_v33 = vld [vmem:[%s9332_s7 + $0x10c0] ss:$16 sps:$4 sm:$0xff]  }
 0x12c   : > { %5858 = vmatprep.subr.bf16.mxu1 %v8187_v34  ;;  %v8249_v34 = vld [vmem:[%s9332_s7 + $0x12c0] ss:$16 sps:$4 sm:$0xff]  }
 0x12e   : > { %5818 = vmatpush1.bf16.msra.mxu0 %v8182_v35 }
 0x12f   : > { %5859 = vmatpush1.bf16.msra.mxu1 %v8185_v36  ;;  %5819 = vmatprep.subr.bf16.mxu0 %v8190_v43 }
 0x130   : > { %5860 = vmatprep.subr.bf16.mxu1 %v8193_v44 }
 0x132   : > { %5820 = vmatpush1.bf16.msra.mxu0 %v8188_v45 }
 0x133   : > { %5861 = vmatpush1.bf16.msra.mxu1 %v8191_v46  ;;  %5821 = vmatprep.subr.bf16.mxu0 %v8196_v47 }
 0x134   : > { %5862 = vmatprep.subr.bf16.mxu1 %v8199_v49 }
 0x136   : > { %5822 = vmatpush1.bf16.msra.mxu0 %v8194_v50  ;;  %v8254_v50 = vld [vmem:[%s9332_s7 + $0x10e4] ss:$16 sps:$4 sm:$0xff]  }
 0x137   : > { %5863 = vmatpush1.bf16.msra.mxu1 %v8197_v51  ;;  %5823 = vmatprep.subr.bf16.mxu0 %v8202_v53  ;;  %v8257_v51 = vld [vmem:[%s9332_s7 + $0x12e4] ss:$16 sps:$4 sm:$0xff]   ;;  %v8252_v53 = vld [vmem:[%s9332_s7 + $0x10e0] ss:$16 sps:$4 sm:$0xff]  }
 0x138   : > { %5864 = vmatprep.subr.bf16.mxu1 %v8205_v54  ;;  %v8255_v54 = vld [vmem:[%s9332_s7 + $0x12e0] ss:$16 sps:$4 sm:$0xff]  }
 0x13a   : > { %5824 = vmatpush1.bf16.msra.mxu0 %v8200_v55  ;;  %v8260_v55 = vld [vmem:[%s9332_s7 + $0x1104] ss:$16 sps:$4 sm:$0xff]  }
 0x13b   : > { %5865 = vmatpush1.bf16.msra.mxu1 %v8203_v56  ;;  %5875 = vmatprep.subr.bf16.mxu0 %v8212_v57  ;;  %v8263_v56 = vld [vmem:[%s9332_s7 + $0x1304] ss:$16 sps:$4 sm:$0xff]   ;;  %v8258_v57 = vld [vmem:[%s9332_s7 + $0x1100] ss:$16 sps:$4 sm:$0xff]  }
 0x13c   : > { %5916 = vmatprep.subr.bf16.mxu1 %v8215_v58  ;;  %v8261_v58 = vld [vmem:[%s9332_s7 + $0x1300] ss:$16 sps:$4 sm:$0xff]  }
 0x13d   : > { %5826 = vmatmul.mubr.bf16.vlgmr.msra.gmra.mrb[12].mxu0 %v9690_v60 }
 0x13e   : > { %5867 = vmatmul.mubr.bf16.vlgmr.msra.gmra.mrb[12].mxu1 %v9694_v61  ;;  %5876 = vmatpush1.bf16.msra.mxu0 %v8210_v63  ;;  %v8266_v63 = vld [vmem:[%s9332_s7 + $0x1124] ss:$16 sps:$4 sm:$0xff]  }
 0x13f   : > { %5917 = vmatpush1.bf16.msra.mxu1 %v8213_v0  ;;  %5877 = vmatprep.subr.bf16.mxu0 %v8218_v1  ;;  %v8269_v0 = vld [vmem:[%s9332_s7 + $0x1324] ss:$16 sps:$4 sm:$0xff]   ;;  %v8264_v1 = vld [vmem:[%s9332_s7 + $0x1120] ss:$16 sps:$4 sm:$0xff]  }
 0x140   : > { %5918 = vmatprep.subr.bf16.mxu1 %v8221_v2  ;;  %5907 = vmatprep.mubr.bf16.mxu0 %v9705_v41  ;;  %v8267_v2 = vld [vmem:[%s9332_s7 + $0x1320] ss:$16 sps:$4 sm:$0xff]  }
 0x141   : > { %5948 = vmatprep.mubr.bf16.mxu1 %v9709_v42 }
 0x142   : > { %5878 = vmatpush1.bf16.msra.mxu0 %v8216_v3  ;;  %v8272_v3 = vld [vmem:[%s9332_s7 + $0x1144] ss:$16 sps:$4 sm:$0xff]  }
 0x143   : > { %5919 = vmatpush1.bf16.msra.mxu1 %v8219_v4  ;;  %5879 = vmatprep.subr.bf16.mxu0 %v8224_v5  ;;  %v8275_v4 = vld [vmem:[%s9332_s7 + $0x1344] ss:$16 sps:$4 sm:$0xff]   ;;  %v8270_v5 = vld [vmem:[%s9332_s7 + $0x1140] ss:$16 sps:$4 sm:$0xff]  }
 0x144   : > { %5920 = vmatprep.subr.bf16.mxu1 %v8227_v6  ;;  %v8273_v6 = vld [vmem:[%s9332_s7 + $0x1340] ss:$16 sps:$4 sm:$0xff]  }
 0x146   : > { %5880 = vmatpush1.bf16.msra.mxu0 %v8222_v9  ;;  %v8278_v9 = vld [vmem:[%s9332_s7 + $0x1164] ss:$16 sps:$4 sm:$0xff]  }
 0x147   : > { %5921 = vmatpush1.bf16.msra.mxu1 %v8225_v10  ;;  %5881 = vmatprep.subr.bf16.mxu0 %v8230_v11  ;;  %v8281_v10 = vld [vmem:[%s9332_s7 + $0x1364] ss:$16 sps:$4 sm:$0xff]   ;;  %v8276_v11 = vld [vmem:[%s9332_s7 + $0x1160] ss:$16 sps:$4 sm:$0xff]  }
 0x148   : > { %5922 = vmatprep.subr.bf16.mxu1 %v8233_v12  ;;  %v8279_v12 = vld [vmem:[%s9332_s7 + $0x1360] ss:$16 sps:$4 sm:$0xff]  }
 0x14a   : > { %5882 = vmatpush1.bf16.msra.mxu0 %v8228_v13  ;;  %v8284_v13 = vld [vmem:[%s9332_s7 + $0x1184] ss:$16 sps:$4 sm:$0xff]  }
 0x14b   : > { %5923 = vmatpush1.bf16.msra.mxu1 %v8231_v14  ;;  %5883 = vmatprep.subr.bf16.mxu0 %v8236_v15  ;;  %v8287_v14 = vld [vmem:[%s9332_s7 + $0x1384] ss:$16 sps:$4 sm:$0xff]   ;;  %v8282_v15 = vld [vmem:[%s9332_s7 + $0x1180] ss:$16 sps:$4 sm:$0xff]  }
 0x14c   : > { %5924 = vmatprep.subr.bf16.mxu1 %v8239_v16  ;;  %v8285_v16 = vld [vmem:[%s9332_s7 + $0x1380] ss:$16 sps:$4 sm:$0xff]  }
 0x14e   : > { %5884 = vmatpush1.bf16.msra.mxu0 %v8234_v19  ;;  %v8290_v19 = vld [vmem:[%s9332_s7 + $0x11a4] ss:$16 sps:$4 sm:$0xff]  }
 0x14f   : > { %5925 = vmatpush1.bf16.msra.mxu1 %v8237_v20  ;;  %5885 = vmatprep.subr.bf16.mxu0 %v8242_v21  ;;  %v8293_v20 = vld [vmem:[%s9332_s7 + $0x13a4] ss:$16 sps:$4 sm:$0xff]   ;;  %v8288_v21 = vld [vmem:[%s9332_s7 + $0x11a0] ss:$16 sps:$4 sm:$0xff]  }
 0x150   : > { %5926 = vmatprep.subr.bf16.mxu1 %v8245_v22  ;;  %v5581_v31 = vpop.f32.mrb[0].mxu0  ;;  %v8291_v22 = vld [vmem:[%s9332_s7 + $0x13a0] ss:$16 sps:$4 sm:$0xff]  }
 0x151   : > { %v5622_v32 = vpop.f32.mrb[0].mxu1  ;;  %v5583_v36 = vpop.f32.mrb[1].mxu0 }
 0x152   : > { %v9737_v35 = vadd.f32 %v5622_v32, %v5581_v31  ;;  %v5624_v43 = vpop.f32.mrb[1].mxu1  ;;  %v5585_v45 = vpop.f32.mrb[2].mxu0  ;;  %5886 = vmatpush1.bf16.msra.mxu0 %v8240_v27  ;;  %v8296_v27 = vld [vmem:[%s9332_s7 + $0x11c4] ss:$16 sps:$4 sm:$0xff]  }
 0x153   : > { %v9739_v44 = vadd.f32 %v5624_v43, %v5583_v36  ;;  %v5626_v46 = vpop.f32.mrb[2].mxu1  ;;  %5927 = vmatpush1.bf16.msra.mxu1 %v8243_v28  ;;  %v5586_v47 = vpop.f32.mrb[3].mxu0  ;;  %5887 = vmatprep.subr.bf16.mxu0 %v8248_v29  ;;  %v8299_v28 = vld [vmem:[%s9332_s7 + $0x13c4] ss:$16 sps:$4 sm:$0xff]   ;;  %v8294_v29 = vld [vmem:[%s9332_s7 + $0x11c0] ss:$16 sps:$4 sm:$0xff]  }
 0x154   : > { %v5627_v49 = vpop.f32.mrb[3].mxu1  ;;  %5928 = vmatprep.subr.bf16.mxu1 %v8251_v30  ;;  %v8297_v30 = vld [vmem:[%s9332_s7 + $0x13c0] ss:$16 sps:$4 sm:$0xff]   ;;  %v8302_v31 = vld [vmem:[%s9332_s7 + $0x11e4] ss:$16 sps:$4 sm:$0xff]  }
 0x155   : > { %v8305_v32 = vld [vmem:[%s9332_s7 + $0x13e4] ss:$16 sps:$4 sm:$0xff]   ;;  %v8310_v46 = vld [vmem:[%s9332_s7 + $0x1400] ss:$16 sps:$4 sm:$0xff]   ;;  %v9786_v49 = vcombine.low %v9686_v59, %v9686_v59 }
 0x156   : > { %5888 = vmatpush1.bf16.msra.mxu0 %v8246_v33  ;;  %v8300_v33 = vld [vmem:[%s9332_s7 + $0x11e0] ss:$16 sps:$4 sm:$0xff]   ;;  %v8312_v36 = vld [vmem:[%s9332_s7 + $0x1404] ss:$16 sps:$4 sm:$0xff]  }
 0x157   : > { %5929 = vmatpush1.bf16.msra.mxu1 %v8249_v34  ;;  %5889 = vmatprep.subr.bf16.mxu0 %v8254_v50  ;;  %v8303_v34 = vld [vmem:[%s9332_s7 + $0x13e0] ss:$16 sps:$4 sm:$0xff]   ;;  %v8315_v43 = vld [vmem:[%s9332_s7 + $0x1604] ss:$16 sps:$4 sm:$0xff]   ;;  %v9790_v50 = vcombine.low %v9697_v62, %v9697_v62 }
 0x158   : > { %5930 = vmatprep.subr.bf16.mxu1 %v8257_v51  ;;  %v9780_v45 = vld [vmem:[%s9342_s6 + $0x50] sm:$0xff]  ;;  %v9793_v51 = vld [vmem:[%s9342_s6 + $0x58] sm:$0xff] }
 0x159   : > { %v8313_v47 = vld [vmem:[%s9332_s7 + $0x1600] ss:$16 sps:$4 sm:$0xff]   ;;  %v9803_v59 = vcombine.high %v9793_v51, %v9793_v51 }
 0x15a   : > { %5890 = vmatpush1.bf16.msra.mxu0 %v8252_v53  ;;  %v8318_v53 = vld [vmem:[%s9332_s7 + $0x1424] ss:$16 sps:$4 sm:$0xff]   ;;  %v8316_v62 = vld [vmem:[%s9332_s7 + $0x1420] ss:$16 sps:$4 sm:$0xff]  }
 0x15b   : > { %5931 = vmatpush1.bf16.msra.mxu1 %v8255_v54  ;;  %5891 = vmatprep.subr.bf16.mxu0 %v8260_v55  ;;  %v8321_v54 = vld [vmem:[%s9332_s7 + $0x1624] ss:$16 sps:$4 sm:$0xff]   ;;  %v9799_v55 = vcombine.high %v9780_v45, %v9780_v45 }
 0x15c   : > { %5932 = vmatprep.subr.bf16.mxu1 %v8263_v56  ;;  %v8319_v56 = vld [vmem:[%s9332_s7 + $0x1620] ss:$16 sps:$4 sm:$0xff]  }
 0x15e   : > { %5892 = vmatpush1.bf16.msra.mxu0 %v8258_v57  ;;  %v8324_v57 = vld [vmem:[%s9332_s7 + $0x1444] ss:$16 sps:$4 sm:$0xff]  }
 0x15f   : > { %5933 = vmatpush1.bf16.msra.mxu1 %v8261_v58  ;;  %5893 = vmatprep.subr.bf16.mxu0 %v8266_v63  ;;  %v8327_v58 = vld [vmem:[%s9332_s7 + $0x1644] ss:$16 sps:$4 sm:$0xff]   ;;  %v8322_v63 = vld [vmem:[%s9332_s7 + $0x1440] ss:$16 sps:$4 sm:$0xff]  }
 0x160   : > { %5934 = vmatprep.subr.bf16.mxu1 %v8269_v0  ;;  %v8325_v0 = vld [vmem:[%s9332_s7 + $0x1640] ss:$16 sps:$4 sm:$0xff]  }
 0x162   : > { %5894 = vmatpush1.bf16.msra.mxu0 %v8264_v1  ;;  %v8330_v1 = vld [vmem:[%s9332_s7 + $0x1464] ss:$16 sps:$4 sm:$0xff]  }
 0x163   : > { %5935 = vmatpush1.bf16.msra.mxu1 %v8267_v2  ;;  %5895 = vmatprep.subr.bf16.mxu0 %v8272_v3  ;;  %v8333_v2 = vld [vmem:[%s9332_s7 + $0x1664] ss:$16 sps:$4 sm:$0xff]   ;;  %v8328_v3 = vld [vmem:[%s9332_s7 + $0x1460] ss:$16 sps:$4 sm:$0xff]  }
 0x164   : > { %5936 = vmatprep.subr.bf16.mxu1 %v8275_v4  ;;  %v8331_v4 = vld [vmem:[%s9332_s7 + $0x1660] ss:$16 sps:$4 sm:$0xff]  }
 0x166   : > { %5896 = vmatpush1.bf16.msra.mxu0 %v8270_v5  ;;  %v8336_v5 = vld [vmem:[%s9332_s7 + $0x1484] ss:$16 sps:$4 sm:$0xff]  }
 0x167   : > { %5937 = vmatpush1.bf16.msra.mxu1 %v8273_v6  ;;  %5897 = vmatprep.subr.bf16.mxu0 %v8278_v9  ;;  %v8339_v6 = vld [vmem:[%s9332_s7 + $0x1684] ss:$16 sps:$4 sm:$0xff]   ;;  %v8334_v9 = vld [vmem:[%s9332_s7 + $0x1480] ss:$16 sps:$4 sm:$0xff]  }
 0x168   : > { %5938 = vmatprep.subr.bf16.mxu1 %v8281_v10  ;;  %v8337_v10 = vld [vmem:[%s9332_s7 + $0x1680] ss:$16 sps:$4 sm:$0xff]  }
 0x16a   : > { %5898 = vmatpush1.bf16.msra.mxu0 %v8276_v11  ;;  %v8342_v11 = vld [vmem:[%s9332_s7 + $0x14a4] ss:$16 sps:$4 sm:$0xff]  }
 0x16b   : > { %5939 = vmatpush1.bf16.msra.mxu1 %v8279_v12  ;;  %5899 = vmatprep.subr.bf16.mxu0 %v8284_v13  ;;  %v8345_v12 = vld [vmem:[%s9332_s7 + $0x16a4] ss:$16 sps:$4 sm:$0xff]   ;;  %v8340_v13 = vld [vmem:[%s9332_s7 + $0x14a0] ss:$16 sps:$4 sm:$0xff]  }
 0x16c   : > { %5940 = vmatprep.subr.bf16.mxu1 %v8287_v14  ;;  %v8343_v14 = vld [vmem:[%s9332_s7 + $0x16a0] ss:$16 sps:$4 sm:$0xff]  }
 0x16e   : > { %5900 = vmatpush1.bf16.msra.mxu0 %v8282_v15  ;;  %v8348_v15 = vld [vmem:[%s9332_s7 + $0x14c4] ss:$16 sps:$4 sm:$0xff]  }
 0x16f   : > { %5941 = vmatpush1.bf16.msra.mxu1 %v8285_v16  ;;  %5901 = vmatprep.subr.bf16.mxu0 %v8290_v19  ;;  %v8351_v16 = vld [vmem:[%s9332_s7 + $0x16c4] ss:$16 sps:$4 sm:$0xff]  }
 0x170   : > { %5942 = vmatprep.subr.bf16.mxu1 %v8293_v20 }
 0x172   : > { %5902 = vmatpush1.bf16.msra.mxu0 %v8288_v21  ;;  %v8346_v21 = vld [vmem:[%s9332_s7 + $0x14c0] ss:$16 sps:$4 sm:$0xff]  }
 0x173   : > { %5943 = vmatpush1.bf16.msra.mxu1 %v8291_v22  ;;  %5903 = vmatprep.subr.bf16.mxu0 %v8296_v27  ;;  %v8349_v22 = vld [vmem:[%s9332_s7 + $0x16c0] ss:$16 sps:$4 sm:$0xff]  }
 0x174   : > { %5944 = vmatprep.subr.bf16.mxu1 %v8299_v28 }
 0x176   : > { %5904 = vmatpush1.bf16.msra.mxu0 %v8294_v29 }
 0x177   : > { %5945 = vmatpush1.bf16.msra.mxu1 %v8297_v30  ;;  %5905 = vmatprep.subr.bf16.mxu0 %v8302_v31 }
 0x178   : > { %5946 = vmatprep.subr.bf16.mxu1 %v8305_v32 }
 0x17a   : > { %5906 = vmatpush1.bf16.msra.mxu0 %v8300_v33 }
 0x17b   : > { %5947 = vmatpush1.bf16.msra.mxu1 %v8303_v34  ;;  %5957 = vmatprep.subr.bf16.mxu0 %v8312_v36 }
 0x17c   : > { %5998 = vmatprep.subr.bf16.mxu1 %v8315_v43  ;;  %v8357_v43 = vld [vmem:[%s9332_s7 + $0x16e4] ss:$16 sps:$4 sm:$0xff]  }
 0x17d   : > { %5908 = vmatmul.mubr.bf16.vlgmr.msra.gmra.mrb[16].mxu0 %v9786_v49 }
 0x17e   : > { %5949 = vmatmul.mubr.bf16.vlgmr.msra.gmra.mrb[16].mxu1 %v9790_v50  ;;  %5958 = vmatpush1.bf16.msra.mxu0 %v8310_v46 }
 0x17f   : > { %5999 = vmatpush1.bf16.msra.mxu1 %v8313_v47  ;;  %5959 = vmatprep.subr.bf16.mxu0 %v8318_v53  ;;  %v8355_v47 = vld [vmem:[%s9332_s7 + $0x16e0] ss:$16 sps:$4 sm:$0xff]   ;;  %v8360_v53 = vld [vmem:[%s9332_s7 + $0x1504] ss:$16 sps:$4 sm:$0xff]  }
 0x180   : > { %6000 = vmatprep.subr.bf16.mxu1 %v8321_v54  ;;  %5989 = vmatprep.mubr.bf16.mxu0 %v9799_v55  ;;  %v8363_v54 = vld [vmem:[%s9332_s7 + $0x1704] ss:$16 sps:$4 sm:$0xff]  }
 0x181   : > { %6030 = vmatprep.mubr.bf16.mxu1 %v9803_v59 }
 0x182   : > { %5960 = vmatpush1.bf16.msra.mxu0 %v8316_v62  ;;  %v8358_v62 = vld [vmem:[%s9332_s7 + $0x1500] ss:$16 sps:$4 sm:$0xff]  }
 0x183   : > { %6001 = vmatpush1.bf16.msra.mxu1 %v8319_v56  ;;  %5961 = vmatprep.subr.bf16.mxu0 %v8324_v57  ;;  %v8361_v56 = vld [vmem:[%s9332_s7 + $0x1700] ss:$16 sps:$4 sm:$0xff]   ;;  %v8366_v57 = vld [vmem:[%s9332_s7 + $0x1524] ss:$16 sps:$4 sm:$0xff]  }
 0x184   : > { %6002 = vmatprep.subr.bf16.mxu1 %v8327_v58  ;;  %v8369_v58 = vld [vmem:[%s9332_s7 + $0x1724] ss:$16 sps:$4 sm:$0xff]  }
 0x186   : > { %5962 = vmatpush1.bf16.msra.mxu0 %v8322_v63  ;;  %v8364_v63 = vld [vmem:[%s9332_s7 + $0x1520] ss:$16 sps:$4 sm:$0xff]  }
 0x187   : > { %6003 = vmatpush1.bf16.msra.mxu1 %v8325_v0  ;;  %5963 = vmatprep.subr.bf16.mxu0 %v8330_v1  ;;  %v8367_v0 = vld [vmem:[%s9332_s7 + $0x1720] ss:$16 sps:$4 sm:$0xff]   ;;  %v8372_v1 = vld [vmem:[%s9332_s7 + $0x1544] ss:$16 sps:$4 sm:$0xff]  }
 0x188   : > { %6004 = vmatprep.subr.bf16.mxu1 %v8333_v2  ;;  %v8375_v2 = vld [vmem:[%s9332_s7 + $0x1744] ss:$16 sps:$4 sm:$0xff]  }
 0x18a   : > { %5964 = vmatpush1.bf16.msra.mxu0 %v8328_v3  ;;  %v8370_v3 = vld [vmem:[%s9332_s7 + $0x1540] ss:$16 sps:$4 sm:$0xff]  }
 0x18b   : > { %6005 = vmatpush1.bf16.msra.mxu1 %v8331_v4  ;;  %5965 = vmatprep.subr.bf16.mxu0 %v8336_v5  ;;  %v8373_v4 = vld [vmem:[%s9332_s7 + $0x1740] ss:$16 sps:$4 sm:$0xff]   ;;  %v8378_v5 = vld [vmem:[%s9332_s7 + $0x1564] ss:$16 sps:$4 sm:$0xff]  }
 0x18c   : > { %6006 = vmatprep.subr.bf16.mxu1 %v8339_v6  ;;  %v8381_v6 = vld [vmem:[%s9332_s7 + $0x1764] ss:$16 sps:$4 sm:$0xff]  }
 0x18e   : > { %5966 = vmatpush1.bf16.msra.mxu0 %v8334_v9  ;;  %v8376_v9 = vld [vmem:[%s9332_s7 + $0x1560] ss:$16 sps:$4 sm:$0xff]  }
 0x18f   : > { %6007 = vmatpush1.bf16.msra.mxu1 %v8337_v10  ;;  %5967 = vmatprep.subr.bf16.mxu0 %v8342_v11  ;;  %v8379_v10 = vld [vmem:[%s9332_s7 + $0x1760] ss:$16 sps:$4 sm:$0xff]   ;;  %v8384_v11 = vld [vmem:[%s9332_s7 + $0x1584] ss:$16 sps:$4 sm:$0xff]  }
 0x190   : > { %6008 = vmatprep.subr.bf16.mxu1 %v8345_v12  ;;  %v5663_v19 = vpop.f32.mrb[4].mxu0  ;;  %v8387_v12 = vld [vmem:[%s9332_s7 + $0x1784] ss:$16 sps:$4 sm:$0xff]  }
 0x191   : > { %v5704_v20 = vpop.f32.mrb[4].mxu1  ;;  %v5664_v27 = vadd.f32 %v5663_v19, %v9737_v35  ;;  %v5665_v28 = vpop.f32.mrb[5].mxu0  ;;  %v8354_v35 = vld [vmem:[%s9332_s7 + $0x14e4] ss:$16 sps:$4 sm:$0xff]   ;;  %v8388_v19 = vld [vmem:[%s9332_s7 + $0x15a0] ss:$16 sps:$4 sm:$0xff]  }
 0x192   : > { %v5706_v29 = vpop.f32.mrb[5].mxu1  ;;  %v5666_v30 = vadd.f32 %v5665_v28, %v9739_v44  ;;  %v5667_v31 = vpop.f32.mrb[6].mxu0  ;;  %5968 = vmatpush1.bf16.msra.mxu0 %v8340_v13  ;;  %v8352_v44 = vld [vmem:[%s9332_s7 + $0x14e0] ss:$16 sps:$4 sm:$0xff]  }
 0x193   : > { %v5708_v32 = vpop.f32.mrb[6].mxu1  ;;  %6009 = vmatpush1.bf16.msra.mxu1 %v8343_v14  ;;  %v9833_v33 = vadd.f32 %v5704_v20, %v5664_v27  ;;  %v5668_v34 = vpop.f32.mrb[7].mxu0  ;;  %5969 = vmatprep.subr.bf16.mxu0 %v8348_v15  ;;  %v8382_v13 = vld [vmem:[%s9332_s7 + $0x1580] ss:$16 sps:$4 sm:$0xff]   ;;  %v8390_v15 = vld [vmem:[%s9332_s7 + $0x15a4] ss:$16 sps:$4 sm:$0xff]  }
 0x194   : > { %v5709_v36 = vpop.f32.mrb[7].mxu1  ;;  %6010 = vmatprep.subr.bf16.mxu1 %v8351_v16  ;;  %v9837_v46 = vadd.f32 %v5706_v29, %v5666_v30  ;;  %v8385_v14 = vld [vmem:[%s9332_s7 + $0x1780] ss:$16 sps:$4 sm:$0xff]   ;;  %v8393_v16 = vld [vmem:[%s9332_s7 + $0x17a4] ss:$16 sps:$4 sm:$0xff]  }
 0x195   : > { %v8391_v20 = vld [vmem:[%s9332_s7 + $0x17a0] ss:$16 sps:$4 sm:$0xff]   ;;  %v8402_v29 = vld [vmem:[%s9332_s7 + $0x15e4] ss:$16 sps:$4 sm:$0xff]  }
 0x196   : > { %5970 = vmatpush1.bf16.msra.mxu0 %v8346_v21  ;;  %v8396_v21 = vld [vmem:[%s9332_s7 + $0x15c4] ss:$16 sps:$4 sm:$0xff]   ;;  %v8394_v27 = vld [vmem:[%s9332_s7 + $0x15c0] ss:$16 sps:$4 sm:$0xff]  }
 0x197   : > { %6011 = vmatpush1.bf16.msra.mxu1 %v8349_v22  ;;  %5971 = vmatprep.subr.bf16.mxu0 %v8354_v35  ;;  %v8399_v22 = vld [vmem:[%s9332_s7 + $0x17c4] ss:$16 sps:$4 sm:$0xff]   ;;  %v8397_v28 = vld [vmem:[%s9332_s7 + $0x17c0] ss:$16 sps:$4 sm:$0xff]  }
 0x198   : > { %6012 = vmatprep.subr.bf16.mxu1 %v8357_v43  ;;  %v8405_v30 = vld [vmem:[%s9332_s7 + $0x17e4] ss:$16 sps:$4 sm:$0xff]   ;;  %v8400_v31 = vld [vmem:[%s9332_s7 + $0x15e0] ss:$16 sps:$4 sm:$0xff]  }
 0x199   : > { %v8403_v32 = vld [vmem:[%s9332_s7 + $0x17e0] ss:$16 sps:$4 sm:$0xff]   ;;  %v8412_v34 = vld [vmem:[%s9332_s7 + $0x1804] ss:$16 sps:$4 sm:$0xff]  }
 0x19a   : > { %5972 = vmatpush1.bf16.msra.mxu0 %v8352_v44  ;;  %v8415_v36 = vld [vmem:[%s9332_s7 + $0x1a04] ss:$16 sps:$4 sm:$0xff]   ;;  %v8410_v43 = vld [vmem:[%s9332_s7 + $0x1800] ss:$16 sps:$4 sm:$0xff]  }
 0x19b   : > { %6013 = vmatpush1.bf16.msra.mxu1 %v8355_v47  ;;  %5973 = vmatprep.subr.bf16.mxu0 %v8360_v53  ;;  %v9876_v35 = vld [vmem:[%s9342_s6 + $0x60] sm:$0xff]  ;;  %v9882_v47 = vcombine.low %v9780_v45, %v9780_v45  ;;  %v9886_v53 = vcombine.low %v9793_v51, %v9793_v51 }
 0x19c   : > { %6014 = vmatprep.subr.bf16.mxu1 %v8363_v54  ;;  %v8413_v44 = vld [vmem:[%s9332_s7 + $0x1a00] ss:$16 sps:$4 sm:$0xff]   ;;  %v8418_v54 = vld [vmem:[%s9332_s7 + $0x1824] ss:$16 sps:$4 sm:$0xff]  }
 0x19d   : > { %v8416_v45 = vld [vmem:[%s9332_s7 + $0x1820] ss:$16 sps:$4 sm:$0xff]  }
 0x19e   : > { %5974 = vmatpush1.bf16.msra.mxu0 %v8358_v62  ;;  %v8421_v62 = vld [vmem:[%s9332_s7 + $0x1a24] ss:$16 sps:$4 sm:$0xff]   ;;  %v8419_v51 = vld [vmem:[%s9332_s7 + $0x1a20] ss:$16 sps:$4 sm:$0xff]  }
 0x19f   : > { %6015 = vmatpush1.bf16.msra.mxu1 %v8361_v56  ;;  %5975 = vmatprep.subr.bf16.mxu0 %v8366_v57  ;;  %v9892_v56 = vcombine.high %v9876_v35, %v9876_v35  ;;  %v8424_v57 = vld [vmem:[%s9332_s7 + $0x1844] ss:$16 sps:$4 sm:$0xff]  }
 0x1a0   : > { %6016 = vmatprep.subr.bf16.mxu1 %v8369_v58  ;;  %v8427_v58 = vld [vmem:[%s9332_s7 + $0x1a44] ss:$16 sps:$4 sm:$0xff]  }
 0x1a2   : > { %5976 = vmatpush1.bf16.msra.mxu0 %v8364_v63  ;;  %v9220_v63 = vmov 0  }
 0x1a3   : > { %6017 = vmatpush1.bf16.msra.mxu1 %v8367_v0  ;;  %5977 = vmatprep.subr.bf16.mxu0 %v8372_v1  ;;  %v8422_v0 = vld [vmem:[%s9332_s7 + $0x1840] ss:$16 sps:$4 sm:$0xff]  }
 0x1a4   : > { %6018 = vmatprep.subr.bf16.mxu1 %v8375_v2  ;;  %v8425_v1 = vld [vmem:[%s9332_s7 + $0x1a40] ss:$16 sps:$4 sm:$0xff]   ;;  %v8430_v2 = vld [vmem:[%s9332_s7 + $0x1864] ss:$16 sps:$4 sm:$0xff]  }
 0x1a6   : > { %5978 = vmatpush1.bf16.msra.mxu0 %v8370_v3  ;;  %v8433_v3 = vld [vmem:[%s9332_s7 + $0x1a64] ss:$16 sps:$4 sm:$0xff]  }
 0x1a7   : > { %6019 = vmatpush1.bf16.msra.mxu1 %v8373_v4  ;;  %5979 = vmatprep.subr.bf16.mxu0 %v8378_v5  ;;  %v8428_v4 = vld [vmem:[%s9332_s7 + $0x1860] ss:$16 sps:$4 sm:$0xff]  }
 0x1a8   : > { %6020 = vmatprep.subr.bf16.mxu1 %v8381_v6  ;;  %v8431_v5 = vld [vmem:[%s9332_s7 + $0x1a60] ss:$16 sps:$4 sm:$0xff]   ;;  %v8436_v6 = vld [vmem:[%s9332_s7 + $0x1884] ss:$16 sps:$4 sm:$0xff]  }
 0x1aa   : > { %5980 = vmatpush1.bf16.msra.mxu0 %v8376_v9  ;;  %v8439_v9 = vld [vmem:[%s9332_s7 + $0x1a84] ss:$16 sps:$4 sm:$0xff]  }
 0x1ab   : > { %6021 = vmatpush1.bf16.msra.mxu1 %v8379_v10  ;;  %5981 = vmatprep.subr.bf16.mxu0 %v8384_v11  ;;  %v8434_v10 = vld [vmem:[%s9332_s7 + $0x1880] ss:$16 sps:$4 sm:$0xff]  }
 0x1ac   : > { %6022 = vmatprep.subr.bf16.mxu1 %v8387_v12  ;;  %v8437_v11 = vld [vmem:[%s9332_s7 + $0x1a80] ss:$16 sps:$4 sm:$0xff]   ;;  %v8442_v12 = vld [vmem:[%s9332_s7 + $0x18a4] ss:$16 sps:$4 sm:$0xff]  }
 0x1ae   : > { %5982 = vmatpush1.bf16.msra.mxu0 %v8382_v13  ;;  %v8445_v13 = vld [vmem:[%s9332_s7 + $0x1aa4] ss:$16 sps:$4 sm:$0xff]  }
 0x1af   : > { %6023 = vmatpush1.bf16.msra.mxu1 %v8385_v14  ;;  %5983 = vmatprep.subr.bf16.mxu0 %v8390_v15  ;;  %v8440_v14 = vld [vmem:[%s9332_s7 + $0x18a0] ss:$16 sps:$4 sm:$0xff]  }
 0x1b0   : > { %6024 = vmatprep.subr.bf16.mxu1 %v8393_v16  ;;  %v8443_v15 = vld [vmem:[%s9332_s7 + $0x1aa0] ss:$16 sps:$4 sm:$0xff]   ;;  %v8448_v16 = vld [vmem:[%s9332_s7 + $0x18c4] ss:$16 sps:$4 sm:$0xff]  }
 0x1b2   : > { %5984 = vmatpush1.bf16.msra.mxu0 %v8388_v19  ;;  %v8451_v19 = vld [vmem:[%s9332_s7 + $0x1ac4] ss:$16 sps:$4 sm:$0xff]  }
 0x1b3   : > { %6025 = vmatpush1.bf16.msra.mxu1 %v8391_v20  ;;  %5985 = vmatprep.subr.bf16.mxu0 %v8396_v21 }
 0x1b4   : > { %6026 = vmatprep.subr.bf16.mxu1 %v8399_v22  ;;  %v8446_v22 = vld [vmem:[%s9332_s7 + $0x18c0] ss:$16 sps:$4 sm:$0xff]  }
 0x1b6   : > { %5986 = vmatpush1.bf16.msra.mxu0 %v8394_v27  ;;  %v8449_v27 = vld [vmem:[%s9332_s7 + $0x1ac0] ss:$16 sps:$4 sm:$0xff]  }
 0x1b7   : > { %6027 = vmatpush1.bf16.msra.mxu1 %v8397_v28  ;;  %5987 = vmatprep.subr.bf16.mxu0 %v8402_v29 }
 0x1b8   : > { %6028 = vmatprep.subr.bf16.mxu1 %v8405_v30 }
 0x1ba   : > { %5988 = vmatpush1.bf16.msra.mxu0 %v8400_v31 }
 0x1bb   : > { %6029 = vmatpush1.bf16.msra.mxu1 %v8403_v32  ;;  %6039 = vmatprep.subr.bf16.mxu0 %v8412_v34 }
 0x1bc   : > { %6080 = vmatprep.subr.bf16.mxu1 %v8415_v36 }
 0x1bd   : > { %5990 = vmatmul.mubr.bf16.vlgmr.msra.gmra.mrb[20].mxu0 %v9882_v47 }
 0x1be   : > { %6031 = vmatmul.mubr.bf16.vlgmr.msra.gmra.mrb[20].mxu1 %v9886_v53  ;;  %6040 = vmatpush1.bf16.msra.mxu0 %v8410_v43 }
 0x1bf   : > { %6081 = vmatpush1.bf16.msra.mxu1 %v8413_v44  ;;  %6041 = vmatprep.subr.bf16.mxu0 %v8418_v54  ;;  %v8457_v54 = vld [vmem:[%s9332_s7 + $0x1ae4] ss:$16 sps:$4 sm:$0xff]  }
 0x1c0   : > { %6082 = vmatprep.subr.bf16.mxu1 %v8421_v62  ;;  %6112 = vmatprep.mubr.bf16.mxu1 %v9220_v63 }
 0x1c1   : > { %6071 = vmatprep.mubr.bf16.mxu0 %v9892_v56 }
 0x1c2   : > { %6042 = vmatpush1.bf16.msra.mxu0 %v8416_v45  ;;  %v8455_v45 = vld [vmem:[%s9332_s7 + $0x1ae0] ss:$16 sps:$4 sm:$0xff]  }
 0x1c3   : > { %6083 = vmatpush1.bf16.msra.mxu1 %v8419_v51  ;;  %6043 = vmatprep.subr.bf16.mxu0 %v8424_v57  ;;  %v8460_v51 = vld [vmem:[%s9332_s7 + $0x1904] ss:$16 sps:$4 sm:$0xff]   ;;  %v8461_v57 = vld [vmem:[%s9342_s6 + $0x68] ss:$0 sps:$4 sm:$0xff]  }
 0x1c4   : > { %6084 = vmatprep.subr.bf16.mxu1 %v8427_v58  ;;  %v8464_v58 = vld [vmem:[%s9332_s7 + $0xc] ss:$16 sps:$4 sm:$0xff]  }
 0x1c6   : > { %6044 = vmatpush1.bf16.msra.mxu0 %v8422_v0  ;;  %v8458_v0 = vld [vmem:[%s9332_s7 + $0x1900] ss:$16 sps:$4 sm:$0xff]  }
 0x1c7   : > { %6085 = vmatpush1.bf16.msra.mxu1 %v8425_v1  ;;  %6045 = vmatprep.subr.bf16.mxu0 %v8430_v2  ;;  %v8462_v1 = vld [vmem:[%s9332_s7 + $0x8] ss:$16 sps:$4 sm:$0xff]   ;;  %v8467_v2 = vld [vmem:[%s9332_s7 + $0x1924] ss:$16 sps:$4 sm:$0xff]  }
 0x1c8   : > { %6086 = vmatprep.subr.bf16.mxu1 %v8433_v3  ;;  %v8470_v3 = vld [vmem:[%s9332_s7 + $0x2c] ss:$16 sps:$4 sm:$0xff]  }
 0x1ca   : > { %6046 = vmatpush1.bf16.msra.mxu0 %v8428_v4  ;;  %v8465_v4 = vld [vmem:[%s9332_s7 + $0x1920] ss:$16 sps:$4 sm:$0xff]  }
 0x1cb   : > { %6087 = vmatpush1.bf16.msra.mxu1 %v8431_v5  ;;  %6047 = vmatprep.subr.bf16.mxu0 %v8436_v6  ;;  %v8468_v5 = vld [vmem:[%s9332_s7 + $0x28] ss:$16 sps:$4 sm:$0xff]   ;;  %v8473_v6 = vld [vmem:[%s9332_s7 + $0x1944] ss:$16 sps:$4 sm:$0xff]  }
 0x1cc   : > { %6088 = vmatprep.subr.bf16.mxu1 %v8439_v9  ;;  %v8476_v9 = vld [vmem:[%s9332_s7 + $0x4c] ss:$16 sps:$4 sm:$0xff]  }
 0x1ce   : > { %6048 = vmatpush1.bf16.msra.mxu0 %v8434_v10  ;;  %v8471_v10 = vld [vmem:[%s9332_s7 + $0x1940] ss:$16 sps:$4 sm:$0xff]  }
 0x1cf   : > { %6089 = vmatpush1.bf16.msra.mxu1 %v8437_v11  ;;  %6049 = vmatprep.subr.bf16.mxu0 %v8442_v12  ;;  %v8474_v11 = vld [vmem:[%s9332_s7 + $0x48] ss:$16 sps:$4 sm:$0xff]   ;;  %v8479_v12 = vld [vmem:[%s9332_s7 + $0x1964] ss:$16 sps:$4 sm:$0xff]  }
 0x1d0   : > { %6090 = vmatprep.subr.bf16.mxu1 %v8445_v13  ;;  %v5745_v20 = vpop.f32.mrb[8].mxu0  ;;  %v8482_v13 = vld [vmem:[%s9332_s7 + $0x6c] ss:$16 sps:$4 sm:$0xff]  }
 0x1d1   : > { %v5786_v21 = vpop.f32.mrb[8].mxu1  ;;  %v5746_v28 = vadd.f32 %v5745_v20, %v9833_v33  ;;  %v5747_v29 = vpop.f32.mrb[9].mxu0  ;;  %v8454_v33 = vld [vmem:[%s9332_s7 + $0x18e4] ss:$16 sps:$4 sm:$0xff]   ;;  %v8486_v20 = vld [vmem:[%s9332_s7 + $0x88] ss:$16 sps:$4 sm:$0xff]  }
 0x1d2   : > { %v5788_v30 = vpop.f32.mrb[9].mxu1  ;;  %v5748_v31 = vadd.f32 %v5747_v29, %v9837_v46  ;;  %v5749_v32 = vpop.f32.mrb[10].mxu0  ;;  %6050 = vmatpush1.bf16.msra.mxu0 %v8440_v14  ;;  %v8452_v46 = vld [vmem:[%s9332_s7 + $0x18e0] ss:$16 sps:$4 sm:$0xff]   ;;  %v8497_v29 = vld [vmem:[%s9332_s7 + $0x19c4] ss:$16 sps:$4 sm:$0xff]  }
 0x1d3   : > { %v5790_v34 = vpop.f32.mrb[10].mxu1  ;;  %6091 = vmatpush1.bf16.msra.mxu1 %v8443_v15  ;;  %v9922_v36 = vadd.f32 %v5786_v21, %v5746_v28  ;;  %v5750_v43 = vpop.f32.mrb[11].mxu0  ;;  %6051 = vmatprep.subr.bf16.mxu0 %v8448_v16  ;;  %v8477_v14 = vld [vmem:[%s9332_s7 + $0x1960] ss:$16 sps:$4 sm:$0xff]   ;;  %v8480_v15 = vld [vmem:[%s9332_s7 + $0x68] ss:$16 sps:$4 sm:$0xff]  }
 0x1d4   : > { %v5791_v44 = vpop.f32.mrb[11].mxu1  ;;  %6092 = vmatprep.subr.bf16.mxu1 %v8451_v19  ;;  %v9926_v62 = vadd.f32 %v5788_v30, %v5748_v31  ;;  %v8488_v16 = vld [vmem:[%s9332_s7 + $0x8c] ss:$16 sps:$4 sm:$0xff]   ;;  %v8483_v19 = vld [vmem:[%s9332_s7 + $0x1980] ss:$16 sps:$4 sm:$0xff]  }
 0x1d5   : > { %v8491_v21 = vld [vmem:[%s9332_s7 + $0x19a4] ss:$16 sps:$4 sm:$0xff]   ;;  %v8492_v28 = vld [vmem:[%s9332_s7 + $0xa8] ss:$16 sps:$4 sm:$0xff]   ;;  %v8500_v30 = vld [vmem:[%s9332_s7 + $0xcc] ss:$16 sps:$4 sm:$0xff]  }
 0x1d6   : > { %6052 = vmatpush1.bf16.msra.mxu0 %v8446_v22  ;;  %v8494_v22 = vld [vmem:[%s9332_s7 + $0xac] ss:$16 sps:$4 sm:$0xff]   ;;  %v8495_v31 = vld [vmem:[%s9332_s7 + $0x19c0] ss:$16 sps:$4 sm:$0xff]   ;;  %v8498_v32 = vld [vmem:[%s9332_s7 + $0xc8] ss:$16 sps:$4 sm:$0xff]  }
 0x1d7   : > { %6093 = vmatpush1.bf16.msra.mxu1 %v8449_v27  ;;  %6053 = vmatprep.subr.bf16.mxu0 %v8454_v33  ;;  %v8489_v27 = vld [vmem:[%s9332_s7 + $0x19a0] ss:$16 sps:$4 sm:$0xff]   ;;  %v8503_v34 = vld [vmem:[%s9332_s7 + $0x19e4] ss:$16 sps:$4 sm:$0xff]   ;;  %v8506_v43 = vld [vmem:[%s9332_s7 + $0xec] ss:$16 sps:$4 sm:$0xff]  }
 0x1d8   : > { %6094 = vmatprep.subr.bf16.mxu1 %v8457_v54  ;;  %v8501_v44 = vld [vmem:[%s9332_s7 + $0x19e0] ss:$16 sps:$4 sm:$0xff]   ;;  %v8504_v33 = vld [vmem:[%s9332_s7 + $0xe8] ss:$16 sps:$4 sm:$0xff]   ;;  %v8511_v54 = vld [vmem:[%s9332_s7 + $0x10c] ss:$16 sps:$4 sm:$0xff]  }
 0x1da   : > { %6054 = vmatpush1.bf16.msra.mxu0 %v8452_v46  ;;  %v8514_v46 = vld [vmem:[%s9332_s7 + $0x20c] ss:$16 sps:$4 sm:$0xff]  }
 0x1db   : > { %6095 = vmatpush1.bf16.msra.mxu1 %v8455_v45  ;;  %6055 = vmatprep.subr.bf16.mxu0 %v8460_v51  ;;  %v8509_v45 = vld [vmem:[%s9332_s7 + $0x108] ss:$16 sps:$4 sm:$0xff]  }
 0x1dc   : > { %6121 = vmatprep.subr.bf16.mxu1 %v8464_v58  ;;  %v8512_v51 = vld [vmem:[%s9332_s7 + $0x208] ss:$16 sps:$4 sm:$0xff]   ;;  %v8517_v58 = vld [vmem:[%s9332_s7 + $0x12c] ss:$16 sps:$4 sm:$0xff]  }
 0x1de   : > { %6113 = vmatmul.mubr.bf16.vlgmr.msra.gmra.mrb[24].mxu1 %v8461_v57  ;;  %6056 = vmatpush1.bf16.msra.mxu0 %v8458_v0  ;;  %v9970_v57 = vcombine.low %v9876_v35, %v9876_v35  ;;  %v8520_v0 = vld [vmem:[%s9332_s7 + $0x22c] ss:$16 sps:$4 sm:$0xff]  }
 0x1df   : > { %6122 = vmatpush1.bf16.msra.mxu1 %v8462_v1  ;;  %6057 = vmatprep.subr.bf16.mxu0 %v8467_v2  ;;  %v8515_v1 = vld [vmem:[%s9332_s7 + $0x128] ss:$16 sps:$4 sm:$0xff]   ;;  %v8523_v35 = vld [vmem:[%s9332_s7 + $0x14c] ss:$16 sps:$4 sm:$0xff]  }
 0x1e0   : > { %6123 = vmatprep.subr.bf16.mxu1 %v8470_v3  ;;  %6153 = vmatprep.mubr.bf16.mxu1 %v9392_v48  ;;  %v8485_v48 = vld [vmem:[%s9332_s7 + $0x1984] ss:$16 sps:$4 sm:$0xff]   ;;  %v8518_v2 = vld [vmem:[%s9332_s7 + $0x228] ss:$16 sps:$4 sm:$0xff]   ;;  %v8526_v3 = vld [vmem:[%s9332_s7 + $0x24c] ss:$16 sps:$4 sm:$0xff]  }
 0x1e2   : > { %6058 = vmatpush1.bf16.msra.mxu0 %v8465_v4  ;;  %v8521_v4 = vld [vmem:[%s9332_s7 + $0x148] ss:$16 sps:$4 sm:$0xff]  }
 0x1e3   : > { %6124 = vmatpush1.bf16.msra.mxu1 %v8468_v5  ;;  %6059 = vmatprep.subr.bf16.mxu0 %v8473_v6  ;;  %v8524_v5 = vld [vmem:[%s9332_s7 + $0x248] ss:$16 sps:$4 sm:$0xff]   ;;  %v8529_v6 = vld [vmem:[%s9332_s7 + $0x16c] ss:$16 sps:$4 sm:$0xff]  }
 0x1e4   : > { %6125 = vmatprep.subr.bf16.mxu1 %v8476_v9  ;;  %v8532_v9 = vld [vmem:[%s9332_s7 + $0x26c] ss:$16 sps:$4 sm:$0xff]  }
 0x1e6   : > { %6060 = vmatpush1.bf16.msra.mxu0 %v8471_v10  ;;  %v8527_v10 = vld [vmem:[%s9332_s7 + $0x168] ss:$16 sps:$4 sm:$0xff]  }
 0x1e7   : > { %6126 = vmatpush1.bf16.msra.mxu1 %v8474_v11  ;;  %6061 = vmatprep.subr.bf16.mxu0 %v8479_v12  ;;  %v8530_v11 = vld [vmem:[%s9332_s7 + $0x268] ss:$16 sps:$4 sm:$0xff]   ;;  %v8538_v12 = vld [vmem:[%s9332_s7 + $0x28c] ss:$16 sps:$4 sm:$0xff]  }
 0x1e8   : > { %6127 = vmatprep.subr.bf16.mxu1 %v8482_v13  ;;  %v8533_v13 = vld [vmem:[%s9332_s7 + $0x188] ss:$16 sps:$4 sm:$0xff]  }
 0x1ea   : > { %6062 = vmatpush1.bf16.msra.mxu0 %v8477_v14  ;;  %v8536_v14 = vld [vmem:[%s9332_s7 + $0x288] ss:$16 sps:$4 sm:$0xff]  }
 0x1eb   : > { %6128 = vmatpush1.bf16.msra.mxu1 %v8480_v15  ;;  %6063 = vmatprep.subr.bf16.mxu0 %v8485_v48  ;;  %v8541_v15 = vld [vmem:[%s9332_s7 + $0x1ac] ss:$16 sps:$4 sm:$0xff]  }
 0x1ec   : > { %6129 = vmatprep.subr.bf16.mxu1 %v8488_v16  ;;  %v8544_v48 = vld [vmem:[%s9332_s7 + $0x2ac] ss:$16 sps:$4 sm:$0xff]   ;;  %v8539_v16 = vld [vmem:[%s9332_s7 + $0x1a8] ss:$16 sps:$4 sm:$0xff]  }
 0x1ee   : > { %6064 = vmatpush1.bf16.msra.mxu0 %v8483_v19  ;;  %v8542_v19 = vld [vmem:[%s9332_s7 + $0x2a8] ss:$16 sps:$4 sm:$0xff]  }
 0x1ef   : > { %6130 = vmatpush1.bf16.msra.mxu1 %v8486_v20  ;;  %6065 = vmatprep.subr.bf16.mxu0 %v8491_v21  ;;  %v8547_v20 = vld [vmem:[%s9332_s7 + $0x1cc] ss:$16 sps:$4 sm:$0xff]  }
 0x1f0   : > { %6131 = vmatprep.subr.bf16.mxu1 %v8494_v22  ;;  %v8550_v21 = vld [vmem:[%s9332_s7 + $0x2cc] ss:$16 sps:$4 sm:$0xff]  }
 0x1f2   : > { %6066 = vmatpush1.bf16.msra.mxu0 %v8489_v27 }
 0x1f3   : > { %6132 = vmatpush1.bf16.msra.mxu1 %v8492_v28  ;;  %6067 = vmatprep.subr.bf16.mxu0 %v8497_v29  ;;  %v8545_v28 = vld [vmem:[%s9332_s7 + $0x1c8] ss:$16 sps:$4 sm:$0xff]  }
 0x1f4   : > { %6133 = vmatprep.subr.bf16.mxu1 %v8500_v30  ;;  %v8548_v29 = vld [vmem:[%s9332_s7 + $0x2c8] ss:$16 sps:$4 sm:$0xff]  }
 0x1f6   : > { %6068 = vmatpush1.bf16.msra.mxu0 %v8495_v31 }
 0x1f7   : > { %6134 = vmatpush1.bf16.msra.mxu1 %v8498_v32  ;;  %6069 = vmatprep.subr.bf16.mxu0 %v8503_v34 }
 0x1f8   : > { %6135 = vmatprep.subr.bf16.mxu1 %v8506_v43 }
 0x1fa   : > { %6070 = vmatpush1.bf16.msra.mxu0 %v8501_v44 }
 0x1fb   : > { %6136 = vmatpush1.bf16.msra.mxu1 %v8504_v33  ;;  %6162 = vmatprep.subr.bf16.mxu0 %v8514_v46 }
 0x1fc   : > { %6137 = vmatprep.subr.bf16.mxu1 %v8511_v54 }
 0x1fd   : > { %6072 = vmatmul.mubr.bf16.vlgmr.msra.gmra.mrb[24].mxu0 %v9970_v57 }
 0x1fe   : > { %6163 = vmatpush1.bf16.msra.mxu0 %v8512_v51  ;;  %6194 = vmatprep.mubr.bf16.mxu0 %v9397_v52  ;;  %v8535_v52 = vld [vmem:[%s9332_s7 + $0x18c] ss:$16 sps:$4 sm:$0xff]  }
 0x1ff   : > { %6138 = vmatpush1.bf16.msra.mxu1 %v8509_v45  ;;  %6164 = vmatprep.subr.bf16.mxu0 %v8520_v0  ;;  %v8556_v45 = vld [vmem:[%s9332_s7 + $0x2ec] ss:$16 sps:$4 sm:$0xff]  }
 0x200   : > { %6139 = vmatprep.subr.bf16.mxu1 %v8517_v58  ;;  %v8554_v58 = vld [vmem:[%s9332_s7 + $0x2e8] ss:$16 sps:$4 sm:$0xff]   ;;  %v8559_v0 = vld [vmem:[%s9332_s7 + $0x30c] ss:$16 sps:$4 sm:$0xff]  }
 0x202   : > { %6165 = vmatpush1.bf16.msra.mxu0 %v8518_v2  ;;  %v8557_v2 = vld [vmem:[%s9332_s7 + $0x308] ss:$16 sps:$4 sm:$0xff]  }
 0x203   : > { %6140 = vmatpush1.bf16.msra.mxu1 %v8515_v1  ;;  %6166 = vmatprep.subr.bf16.mxu0 %v8526_v3  ;;  %v8562_v1 = vld [vmem:[%s9332_s7 + $0x40c] ss:$16 sps:$4 sm:$0xff]  }
 0x204   : > { %6141 = vmatprep.subr.bf16.mxu1 %v8523_v35  ;;  %v8560_v35 = vld [vmem:[%s9332_s7 + $0x408] ss:$16 sps:$4 sm:$0xff]   ;;  %v8565_v3 = vld [vmem:[%s9332_s7 + $0x32c] ss:$16 sps:$4 sm:$0xff]  }
 0x206   : > { %6167 = vmatpush1.bf16.msra.mxu0 %v8524_v5  ;;  %v8563_v5 = vld [vmem:[%s9332_s7 + $0x328] ss:$16 sps:$4 sm:$0xff]  }
 0x207   : > { %6142 = vmatpush1.bf16.msra.mxu1 %v8521_v4  ;;  %6168 = vmatprep.subr.bf16.mxu0 %v8532_v9  ;;  %v8568_v4 = vld [vmem:[%s9332_s7 + $0x42c] ss:$16 sps:$4 sm:$0xff]  }
 0x208   : > { %6143 = vmatprep.subr.bf16.mxu1 %v8529_v6  ;;  %v8566_v6 = vld [vmem:[%s9332_s7 + $0x428] ss:$16 sps:$4 sm:$0xff]   ;;  %v8571_v9 = vld [vmem:[%s9332_s7 + $0x34c] ss:$16 sps:$4 sm:$0xff]  }
 0x20a   : > { %6169 = vmatpush1.bf16.msra.mxu0 %v8530_v11  ;;  %v8569_v11 = vld [vmem:[%s9332_s7 + $0x348] ss:$16 sps:$4 sm:$0xff]  }
 0x20b   : > { %6144 = vmatpush1.bf16.msra.mxu1 %v8527_v10  ;;  %6170 = vmatprep.subr.bf16.mxu0 %v8538_v12  ;;  %v8574_v10 = vld [vmem:[%s9332_s7 + $0x44c] ss:$16 sps:$4 sm:$0xff]  }
 0x20c   : > { %6145 = vmatprep.subr.bf16.mxu1 %v8535_v52  ;;  %v8577_v52 = vld [vmem:[%s9332_s7 + $0x36c] ss:$16 sps:$4 sm:$0xff]  }
 0x20d   : > { %v8580_v12 = vld [vmem:[%s9332_s7 + $0x46c] ss:$16 sps:$4 sm:$0xff]  }
 0x20e   : > { %6171 = vmatpush1.bf16.msra.mxu0 %v8536_v14  ;;  %v8578_v14 = vld [vmem:[%s9332_s7 + $0x468] ss:$16 sps:$4 sm:$0xff]  }
 0x20f   : > { %6146 = vmatpush1.bf16.msra.mxu1 %v8533_v13  ;;  %6172 = vmatprep.subr.bf16.mxu0 %v8544_v48  ;;  %v8575_v13 = vld [vmem:[%s9332_s7 + $0x368] ss:$16 sps:$4 sm:$0xff]  }
 0x210   : > { %6147 = vmatprep.subr.bf16.mxu1 %v8541_v15  ;;  %v5827_v22 = vpop.f32.mrb[12].mxu0  ;;  %v8586_v15 = vld [vmem:[%s9332_s7 + $0x48c] ss:$16 sps:$4 sm:$0xff]   ;;  %v8581_v48 = vld [vmem:[%s9332_s7 + $0x388] ss:$16 sps:$4 sm:$0xff]  }
 0x211   : > { %v5868_v27 = vpop.f32.mrb[12].mxu1  ;;  %v5828_v30 = vadd.f32 %v5827_v22, %v9922_v36  ;;  %v5829_v31 = vpop.f32.mrb[13].mxu0  ;;  %v8553_v36 = vld [vmem:[%s9332_s7 + $0x1ec] ss:$16 sps:$4 sm:$0xff]   ;;  %v8590_v22 = vld [vmem:[%s9332_s7 + $0x4a8] ss:$16 sps:$4 sm:$0xff]  }
 0x212   : > { %v5870_v32 = vpop.f32.mrb[13].mxu1  ;;  %v5830_v34 = vadd.f32 %v5829_v31, %v9926_v62  ;;  %v5831_v43 = vpop.f32.mrb[14].mxu0  ;;  %6173 = vmatpush1.bf16.msra.mxu0 %v8542_v19  ;;  %v8551_v62 = vld [vmem:[%s9332_s7 + $0x1e8] ss:$16 sps:$4 sm:$0xff]   ;;  %v8589_v19 = vld [vmem:[%s9332_s7 + $0x3ac] ss:$16 sps:$4 sm:$0xff]  }
 0x213   : > { %v5872_v44 = vpop.f32.mrb[14].mxu1  ;;  %6148 = vmatpush1.bf16.msra.mxu1 %v8539_v16  ;;  %v10000_v33 = vadd.f32 %v5868_v27, %v5828_v30  ;;  %v5832_v54 = vpop.f32.mrb[15].mxu0  ;;  %6174 = vmatprep.subr.bf16.mxu0 %v8550_v21  ;;  %v8584_v16 = vld [vmem:[%s9332_s7 + $0x488] ss:$16 sps:$4 sm:$0xff]   ;;  %v8595_v27 = vld [vmem:[%s9332_s7 + $0x3cc] ss:$16 sps:$4 sm:$0xff]  }
 0x214   : > { %v5873_v46 = vpop.f32.mrb[15].mxu1  ;;  %6149 = vmatprep.subr.bf16.mxu1 %v8547_v20  ;;  %v10004_v51 = vadd.f32 %v5870_v32, %v5830_v34  ;;  %v8592_v20 = vld [vmem:[%s9332_s7 + $0x4ac] ss:$16 sps:$4 sm:$0xff]   ;;  %v8587_v21 = vld [vmem:[%s9332_s7 + $0x3a8] ss:$16 sps:$4 sm:$0xff]  }
 0x215   : > { %v8596_v30 = vld [vmem:[%s9332_s7 + $0x4c8] ss:$16 sps:$4 sm:$0xff]   ;;  %v8601_v31 = vld [vmem:[%s9332_s7 + $0x3ec] ss:$16 sps:$4 sm:$0xff]  }
 0x216   : > { %6175 = vmatpush1.bf16.msra.mxu0 %v8548_v29  ;;  %v8593_v29 = vld [vmem:[%s9332_s7 + $0x3c8] ss:$16 sps:$4 sm:$0xff]   ;;  %v8604_v32 = vld [vmem:[%s9332_s7 + $0x4ec] ss:$16 sps:$4 sm:$0xff]  }
 0x217   : > { %6150 = vmatpush1.bf16.msra.mxu1 %v8545_v28  ;;  %6176 = vmatprep.subr.bf16.mxu0 %v8556_v45  ;;  %v8598_v28 = vld [vmem:[%s9332_s7 + $0x4cc] ss:$16 sps:$4 sm:$0xff]   ;;  %v8599_v34 = vld [vmem:[%s9332_s7 + $0x3e8] ss:$16 sps:$4 sm:$0xff]  }
 0x218   : > { %6151 = vmatprep.subr.bf16.mxu1 %v8553_v36  ;;  %v8602_v43 = vld [vmem:[%s9332_s7 + $0x4e8] ss:$16 sps:$4 sm:$0xff]   ;;  %v8607_v44 = vld [vmem:[%s9332_s7 + $0x50c] ss:$16 sps:$4 sm:$0xff]  }
 0x219   : > { %v8610_v54 = vld [vmem:[%s9332_s7 + $0x60c] ss:$16 sps:$4 sm:$0xff]   ;;  %v8605_v46 = vld [vmem:[%s9332_s7 + $0x508] ss:$16 sps:$4 sm:$0xff]  }
 0x21a   : > { %6177 = vmatpush1.bf16.msra.mxu0 %v8554_v58  ;;  %v8608_v36 = vld [vmem:[%s9332_s7 + $0x608] ss:$16 sps:$4 sm:$0xff]   ;;  %v8613_v45 = vld [vmem:[%s9332_s7 + $0x52c] ss:$16 sps:$4 sm:$0xff]  }
 0x21b   : > { %6152 = vmatpush1.bf16.msra.mxu1 %v8551_v62  ;;  %6178 = vmatprep.subr.bf16.mxu0 %v8559_v0  ;;  %v8616_v62 = vld [vmem:[%s9332_s7 + $0x62c] ss:$16 sps:$4 sm:$0xff]   ;;  %v8611_v58 = vld [vmem:[%s9332_s7 + $0x528] ss:$16 sps:$4 sm:$0xff]  }
 0x21c   : > { %6203 = vmatprep.subr.bf16.mxu1 %v8562_v1  ;;  %v8614_v0 = vld [vmem:[%s9332_s7 + $0x628] ss:$16 sps:$4 sm:$0xff]   ;;  %v8619_v1 = vld [vmem:[%s9332_s7 + $0x54c] ss:$16 sps:$4 sm:$0xff]  }
 0x21e   : > { %6154 = vmatmul.mubr.bf16.vlgmr.msra.gmra.mrb[28].mxu1 %v9419_v7  ;;  %6179 = vmatpush1.bf16.msra.mxu0 %v8557_v2  ;;  %v8572_v7 = vld [vmem:[%s9332_s7 + $0x448] ss:$16 sps:$4 sm:$0xff]   ;;  %v8622_v2 = vld [vmem:[%s9332_s7 + $0x64c] ss:$16 sps:$4 sm:$0xff]  }
 0x21f   : > { %6204 = vmatpush1.bf16.msra.mxu1 %v8560_v35  ;;  %6180 = vmatprep.subr.bf16.mxu0 %v8565_v3  ;;  %v8617_v35 = vld [vmem:[%s9332_s7 + $0x548] ss:$16 sps:$4 sm:$0xff]   ;;  %v8625_v3 = vld [vmem:[%s9332_s7 + $0x56c] ss:$16 sps:$4 sm:$0xff]  }
 0x220   : > { %6205 = vmatprep.subr.bf16.mxu1 %v8568_v4  ;;  %6235 = vmatprep.mubr.bf16.mxu1 %v9459_v37  ;;  %v8583_v37 = vld [vmem:[%s9332_s7 + $0x38c] ss:$16 sps:$4 sm:$0xff]  }
 0x221   : > { %v8628_v4 = vld [vmem:[%s9332_s7 + $0x66c] ss:$16 sps:$4 sm:$0xff]  }
 0x222   : > { %6181 = vmatpush1.bf16.msra.mxu0 %v8563_v5  ;;  %v8623_v5 = vld [vmem:[%s9332_s7 + $0x568] ss:$16 sps:$4 sm:$0xff]  }
 0x223   : > { %6206 = vmatpush1.bf16.msra.mxu1 %v8566_v6  ;;  %6182 = vmatprep.subr.bf16.mxu0 %v8571_v9  ;;  %v8626_v6 = vld [vmem:[%s9332_s7 + $0x668] ss:$16 sps:$4 sm:$0xff]   ;;  %v8634_v9 = vld [vmem:[%s9332_s7 + $0x68c] ss:$16 sps:$4 sm:$0xff]  }
 0x224   : > { %6207 = vmatprep.subr.bf16.mxu1 %v8574_v10  ;;  %v8629_v10 = vld [vmem:[%s9332_s7 + $0x588] ss:$16 sps:$4 sm:$0xff]  }
 0x226   : > { %6183 = vmatpush1.bf16.msra.mxu0 %v8569_v11  ;;  %v8632_v11 = vld [vmem:[%s9332_s7 + $0x688] ss:$16 sps:$4 sm:$0xff]  }
 0x227   : > { %6208 = vmatpush1.bf16.msra.mxu1 %v8572_v7  ;;  %6184 = vmatprep.subr.bf16.mxu0 %v8577_v52  ;;  %v8637_v7 = vld [vmem:[%s9332_s7 + $0x5ac] ss:$16 sps:$4 sm:$0xff]  }
 0x228   : > { %6209 = vmatprep.subr.bf16.mxu1 %v8580_v12  ;;  %v8640_v52 = vld [vmem:[%s9332_s7 + $0x6ac] ss:$16 sps:$4 sm:$0xff]   ;;  %v8635_v12 = vld [vmem:[%s9332_s7 + $0x5a8] ss:$16 sps:$4 sm:$0xff]  }
 0x22a   : > { %6185 = vmatpush1.bf16.msra.mxu0 %v8575_v13  ;;  %v8638_v13 = vld [vmem:[%s9332_s7 + $0x6a8] ss:$16 sps:$4 sm:$0xff]  }
 0x22b   : > { %6210 = vmatpush1.bf16.msra.mxu1 %v8578_v14  ;;  %6186 = vmatprep.subr.bf16.mxu0 %v8583_v37  ;;  %v8643_v14 = vld [vmem:[%s9332_s7 + $0x5cc] ss:$16 sps:$4 sm:$0xff]  }
 0x22c   : > { %6211 = vmatprep.subr.bf16.mxu1 %v8586_v15  ;;  %v8646_v37 = vld [vmem:[%s9332_s7 + $0x6cc] ss:$16 sps:$4 sm:$0xff]  }
 0x22e   : > { %6187 = vmatpush1.bf16.msra.mxu0 %v8581_v48 }
 0x22f   : > { %6212 = vmatpush1.bf16.msra.mxu1 %v8584_v16  ;;  %6188 = vmatprep.subr.bf16.mxu0 %v8589_v19 }
 0x230   : > { %6213 = vmatprep.subr.bf16.mxu1 %v8592_v20 }
 0x232   : > { %6189 = vmatpush1.bf16.msra.mxu0 %v8587_v21 }
 0x233   : > { %6214 = vmatpush1.bf16.msra.mxu1 %v8590_v22  ;;  %6190 = vmatprep.subr.bf16.mxu0 %v8595_v27 }
 0x234   : > { %6215 = vmatprep.subr.bf16.mxu1 %v8598_v28  ;;  %v8641_v28 = vld [vmem:[%s9332_s7 + $0x5c8] ss:$16 sps:$4 sm:$0xff]  }
 0x236   : > { %6191 = vmatpush1.bf16.msra.mxu0 %v8593_v29  ;;  %v8644_v29 = vld [vmem:[%s9332_s7 + $0x6c8] ss:$16 sps:$4 sm:$0xff]  }
 0x237   : > { %6216 = vmatpush1.bf16.msra.mxu1 %v8596_v30  ;;  %6192 = vmatprep.subr.bf16.mxu0 %v8601_v31 }
 0x238   : > { %6217 = vmatprep.subr.bf16.mxu1 %v8604_v32 }
 0x23a   : > { %6193 = vmatpush1.bf16.msra.mxu0 %v8599_v34 }
 0x23b   : > { %6218 = vmatpush1.bf16.msra.mxu1 %v8602_v43  ;;  %6244 = vmatprep.subr.bf16.mxu0 %v8610_v54  ;;  %v8647_v43 = vld [vmem:[%s9332_s7 + $0x5e8] ss:$16 sps:$4 sm:$0xff]   ;;  %v8655_v54 = vld [vmem:[%s9332_s7 + $0x70c] ss:$16 sps:$4 sm:$0xff]  }
 0x23c   : > { %6219 = vmatprep.subr.bf16.mxu1 %v8607_v44  ;;  %v8650_v44 = vld [vmem:[%s9332_s7 + $0x6e8] ss:$16 sps:$4 sm:$0xff]  }
 0x23d   : > { %6195 = vmatmul.mubr.bf16.vlgmr.msra.gmra.mrb[28].mxu0 %v9421_v8  ;;  %v8620_v8 = vld [vmem:[%s9332_s7 + $0x648] ss:$16 sps:$4 sm:$0xff]  }
 0x23e   : > { %6245 = vmatpush1.bf16.msra.mxu0 %v8608_v36  ;;  %6276 = vmatprep.mubr.bf16.mxu0 %v9463_v38  ;;  %v8631_v38 = vld [vmem:[%s9332_s7 + $0x58c] ss:$16 sps:$4 sm:$0xff]   ;;  %v8653_v36 = vld [vmem:[%s9332_s7 + $0x708] ss:$16 sps:$4 sm:$0xff]  }
 0x23f   : > { %6220 = vmatpush1.bf16.msra.mxu1 %v8605_v46  ;;  %6246 = vmatprep.subr.bf16.mxu0 %v8616_v62  ;;  %v8658_v46 = vld [vmem:[%s9332_s7 + $0x80c] ss:$16 sps:$4 sm:$0xff]  }
 0x240   : > { %6221 = vmatprep.subr.bf16.mxu1 %v8613_v45  ;;  %v8656_v45 = vld [vmem:[%s9332_s7 + $0x808] ss:$16 sps:$4 sm:$0xff]   ;;  %v8661_v62 = vld [vmem:[%s9332_s7 + $0x72c] ss:$16 sps:$4 sm:$0xff]  }
 0x242   : > { %6247 = vmatpush1.bf16.msra.mxu0 %v8614_v0  ;;  %v8659_v0 = vld [vmem:[%s9332_s7 + $0x728] ss:$16 sps:$4 sm:$0xff]  }
 0x243   : > { %6222 = vmatpush1.bf16.msra.mxu1 %v8611_v58  ;;  %6248 = vmatprep.subr.bf16.mxu0 %v8622_v2  ;;  %v8664_v58 = vld [vmem:[%s9332_s7 + $0x82c] ss:$16 sps:$4 sm:$0xff]  }
 0x244   : > { %6223 = vmatprep.subr.bf16.mxu1 %v8619_v1  ;;  %v8662_v1 = vld [vmem:[%s9332_s7 + $0x828] ss:$16 sps:$4 sm:$0xff]   ;;  %v8667_v2 = vld [vmem:[%s9332_s7 + $0x74c] ss:$16 sps:$4 sm:$0xff]  }
 0x246   : > { %6249 = vmatpush1.bf16.msra.mxu0 %v8620_v8  ;;  %v8665_v8 = vld [vmem:[%s9332_s7 + $0x748] ss:$16 sps:$4 sm:$0xff]  }
 0x247   : > { %6224 = vmatpush1.bf16.msra.mxu1 %v8617_v35  ;;  %6250 = vmatprep.subr.bf16.mxu0 %v8628_v4  ;;  %v8670_v35 = vld [vmem:[%s9332_s7 + $0x84c] ss:$16 sps:$4 sm:$0xff]  }
 0x248   : > { %6225 = vmatprep.subr.bf16.mxu1 %v8625_v3  ;;  %v8673_v3 = vld [vmem:[%s9332_s7 + $0x76c] ss:$16 sps:$4 sm:$0xff]  }
 0x249   : > { %v8676_v4 = vld [vmem:[%s9332_s7 + $0x86c] ss:$16 sps:$4 sm:$0xff]  }
 0x24a   : > { %6251 = vmatpush1.bf16.msra.mxu0 %v8626_v6  ;;  %v8674_v6 = vld [vmem:[%s9332_s7 + $0x868] ss:$16 sps:$4 sm:$0xff]  }
 0x24b   : > { %6226 = vmatpush1.bf16.msra.mxu1 %v8623_v5  ;;  %6252 = vmatprep.subr.bf16.mxu0 %v8634_v9  ;;  %v8671_v5 = vld [vmem:[%s9332_s7 + $0x768] ss:$16 sps:$4 sm:$0xff]  }
 0x24c   : > { %6227 = vmatprep.subr.bf16.mxu1 %v8631_v38  ;;  %v8682_v38 = vld [vmem:[%s9332_s7 + $0x88c] ss:$16 sps:$4 sm:$0xff]   ;;  %v8677_v9 = vld [vmem:[%s9332_s7 + $0x788] ss:$16 sps:$4 sm:$0xff]  }
 0x24e   : > { %6253 = vmatpush1.bf16.msra.mxu0 %v8632_v11  ;;  %v8685_v11 = vld [vmem:[%s9332_s7 + $0x7ac] ss:$16 sps:$4 sm:$0xff]  }
 0x24f   : > { %6228 = vmatpush1.bf16.msra.mxu1 %v8629_v10  ;;  %6254 = vmatprep.subr.bf16.mxu0 %v8640_v52  ;;  %v8680_v10 = vld [vmem:[%s9332_s7 + $0x888] ss:$16 sps:$4 sm:$0xff]  }
 0x250   : > { %6229 = vmatprep.subr.bf16.mxu1 %v8637_v7  ;;  %v5909_v15 = vpop.f32.mrb[16].mxu0  ;;  %v8688_v7 = vld [vmem:[%s9332_s7 + $0x8ac] ss:$16 sps:$4 sm:$0xff]   ;;  %v8683_v52 = vld [vmem:[%s9332_s7 + $0x7a8] ss:$16 sps:$4 sm:$0xff]  }
 0x251   : > { %v5950_v48 = vpop.f32.mrb[16].mxu1  ;;  %v5910_v16 = vadd.f32 %v5909_v15, %v10000_v33  ;;  %v5911_v19 = vpop.f32.mrb[17].mxu0  ;;  %v8649_v33 = vld [vmem:[%s9332_s7 + $0x5ec] ss:$16 sps:$4 sm:$0xff]   ;;  %v8692_v15 = vld [vmem:[%s9332_s7 + $0x8c8] ss:$16 sps:$4 sm:$0xff]  }
 0x252   : > { %v5952_v20 = vpop.f32.mrb[17].mxu1  ;;  %v5912_v21 = vadd.f32 %v5911_v19, %v10004_v51  ;;  %v5913_v22 = vpop.f32.mrb[18].mxu0  ;;  %6255 = vmatpush1.bf16.msra.mxu0 %v8638_v13  ;;  %v8652_v51 = vld [vmem:[%s9332_s7 + $0x6ec] ss:$16 sps:$4 sm:$0xff]   ;;  %v8695_v19 = vld [vmem:[%s9332_s7 + $0x7e8] ss:$16 sps:$4 sm:$0xff]  }
 0x253   : > { %v5954_v27 = vpop.f32.mrb[18].mxu1  ;;  %6230 = vmatpush1.bf16.msra.mxu1 %v8635_v12  ;;  %v10074_v30 = vadd.f32 %v5950_v48, %v5910_v16  ;;  %v5914_v31 = vpop.f32.mrb[19].mxu0  ;;  %6256 = vmatprep.subr.bf16.mxu0 %v8646_v37  ;;  %v8686_v12 = vld [vmem:[%s9332_s7 + $0x8a8] ss:$16 sps:$4 sm:$0xff]   ;;  %v8691_v13 = vld [vmem:[%s9332_s7 + $0x7cc] ss:$16 sps:$4 sm:$0xff]  }
 0x254   : > { %v5955_v32 = vpop.f32.mrb[19].mxu1  ;;  %6231 = vmatprep.subr.bf16.mxu1 %v8643_v14  ;;  %v10078_v34 = vadd.f32 %v5952_v20, %v5912_v21  ;;  %v8694_v14 = vld [vmem:[%s9332_s7 + $0x8cc] ss:$16 sps:$4 sm:$0xff]   ;;  %v8689_v37 = vld [vmem:[%s9332_s7 + $0x7c8] ss:$16 sps:$4 sm:$0xff]  }
 0x255   : > { %v8697_v48 = vld [vmem:[%s9332_s7 + $0x7ec] ss:$16 sps:$4 sm:$0xff]   ;;  %v8698_v20 = vld [vmem:[%s9332_s7 + $0x8e8] ss:$16 sps:$4 sm:$0xff]  }
 0x256   : > { %6257 = vmatpush1.bf16.msra.mxu0 %v8644_v29  ;;  %v8700_v16 = vld [vmem:[%s9332_s7 + $0x8ec] ss:$16 sps:$4 sm:$0xff]   ;;  %v8701_v27 = vld [vmem:[%s9332_s7 + $0x908] ss:$16 sps:$4 sm:$0xff]  }
 0x257   : > { %6232 = vmatpush1.bf16.msra.mxu1 %v8641_v28  ;;  %6258 = vmatprep.subr.bf16.mxu0 %v8652_v51  ;;  %v8703_v21 = vld [vmem:[%s9332_s7 + $0x90c] ss:$16 sps:$4 sm:$0xff]   ;;  %v8704_v28 = vld [vmem:[%s9332_s7 + $0xa08] ss:$16 sps:$4 sm:$0xff]  }
 0x258   : > { %6233 = vmatprep.subr.bf16.mxu1 %v8649_v33  ;;  %v8706_v22 = vld [vmem:[%s9332_s7 + $0xa0c] ss:$16 sps:$4 sm:$0xff]   ;;  %v8707_v32 = vld [vmem:[%s9332_s7 + $0x928] ss:$16 sps:$4 sm:$0xff]  }
 0x259   : > { %v8709_v29 = vld [vmem:[%s9332_s7 + $0x92c] ss:$16 sps:$4 sm:$0xff]   ;;  %v8710_v33 = vld [vmem:[%s9332_s7 + $0xa28] ss:$16 sps:$4 sm:$0xff]  }
 0x25a   : > { %6259 = vmatpush1.bf16.msra.mxu0 %v8650_v44  ;;  %v8712_v31 = vld [vmem:[%s9332_s7 + $0xa2c] ss:$16 sps:$4 sm:$0xff]   ;;  %v8713_v44 = vld [vmem:[%s9332_s7 + $0x948] ss:$16 sps:$4 sm:$0xff]  }
 0x25b   : > { %6234 = vmatpush1.bf16.msra.mxu1 %v8647_v43  ;;  %6260 = vmatprep.subr.bf16.mxu0 %v8655_v54  ;;  %v8715_v51 = vld [vmem:[%s9332_s7 + $0x94c] ss:$16 sps:$4 sm:$0xff]  }
 0x25c   : > { %6285 = vmatprep.subr.bf16.mxu1 %v8658_v46  ;;  %v8718_v43 = vld [vmem:[%s9332_s7 + $0xa4c] ss:$16 sps:$4 sm:$0xff]  }
 0x25d   : > { %v8721_v54 = vld [vmem:[%s9332_s7 + $0x96c] ss:$16 sps:$4 sm:$0xff]  }
 0x25e   : > { %6236 = vmatmul.mubr.bf16.vlgmr.msra.gmra.mrb[32].mxu1 %v9507_v17  ;;  %6261 = vmatpush1.bf16.msra.mxu0 %v8653_v36  ;;  %v8668_v17 = vld [vmem:[%s9332_s7 + $0x848] ss:$16 sps:$4 sm:$0xff]   ;;  %v8724_v46 = vld [vmem:[%s9332_s7 + $0xa6c] ss:$16 sps:$4 sm:$0xff]  }
 0x25f   : > { %6286 = vmatpush1.bf16.msra.mxu1 %v8656_v45  ;;  %6262 = vmatprep.subr.bf16.mxu0 %v8661_v62  ;;  %v8719_v36 = vld [vmem:[%s9332_s7 + $0x968] ss:$16 sps:$4 sm:$0xff]   ;;  %v8730_v62 = vld [vmem:[%s9332_s7 + $0xa8c] ss:$16 sps:$4 sm:$0xff]  }
 0x260   : > { %6287 = vmatprep.subr.bf16.mxu1 %v8664_v58  ;;  %6317 = vmatprep.mubr.bf16.mxu1 %v9525_v25  ;;  %v8679_v25 = vld [vmem:[%s9332_s7 + $0x78c] ss:$16 sps:$4 sm:$0xff]   ;;  %v8722_v45 = vld [vmem:[%s9332_s7 + $0xa68] ss:$16 sps:$4 sm:$0xff]  }
 0x261   : > { %v8725_v58 = vld [vmem:[%s9332_s7 + $0x988] ss:$16 sps:$4 sm:$0xff]  }
 0x262   : > { %6263 = vmatpush1.bf16.msra.mxu0 %v8659_v0  ;;  %v8728_v0 = vld [vmem:[%s9332_s7 + $0xa88] ss:$16 sps:$4 sm:$0xff]  }
 0x263   : > { %6288 = vmatpush1.bf16.msra.mxu1 %v8662_v1  ;;  %6264 = vmatprep.subr.bf16.mxu0 %v8667_v2  ;;  %v8733_v1 = vld [vmem:[%s9332_s7 + $0x9ac] ss:$16 sps:$4 sm:$0xff]  }
 0x264   : > { %6289 = vmatprep.subr.bf16.mxu1 %v8670_v35  ;;  %v8736_v2 = vld [vmem:[%s9332_s7 + $0xaac] ss:$16 sps:$4 sm:$0xff]   ;;  %v8731_v35 = vld [vmem:[%s9332_s7 + $0x9a8] ss:$16 sps:$4 sm:$0xff]  }
 0x266   : > { %6265 = vmatpush1.bf16.msra.mxu0 %v8665_v8  ;;  %v8734_v8 = vld [vmem:[%s9332_s7 + $0xaa8] ss:$16 sps:$4 sm:$0xff]  }
 0x267   : > { %6290 = vmatpush1.bf16.msra.mxu1 %v8668_v17  ;;  %6266 = vmatprep.subr.bf16.mxu0 %v8673_v3  ;;  %v8739_v17 = vld [vmem:[%s9332_s7 + $0x9cc] ss:$16 sps:$4 sm:$0xff]  }
 0x268   : > { %6291 = vmatprep.subr.bf16.mxu1 %v8676_v4  ;;  %v8742_v3 = vld [vmem:[%s9332_s7 + $0xacc] ss:$16 sps:$4 sm:$0xff]  }
 0x26a   : > { %6267 = vmatpush1.bf16.msra.mxu0 %v8671_v5 }
 0x26b   : > { %6292 = vmatpush1.bf16.msra.mxu1 %v8674_v6  ;;  %6268 = vmatprep.subr.bf16.mxu0 %v8679_v25 }
 0x26c   : > { %6293 = vmatprep.subr.bf16.mxu1 %v8682_v38 }
 0x26e   : > { %6269 = vmatpush1.bf16.msra.mxu0 %v8677_v9 }
 0x26f   : > { %6294 = vmatpush1.bf16.msra.mxu1 %v8680_v10  ;;  %6270 = vmatprep.subr.bf16.mxu0 %v8685_v11 }
 0x270   : > { %6295 = vmatprep.subr.bf16.mxu1 %v8688_v7  ;;  %v8737_v7 = vld [vmem:[%s9332_s7 + $0x9c8] ss:$16 sps:$4 sm:$0xff]  }
 0x272   : > { %6271 = vmatpush1.bf16.msra.mxu0 %v8683_v52  ;;  %v8740_v52 = vld [vmem:[%s9332_s7 + $0xac8] ss:$16 sps:$4 sm:$0xff]  }
 0x273   : > { %6296 = vmatpush1.bf16.msra.mxu1 %v8686_v12  ;;  %6272 = vmatprep.subr.bf16.mxu0 %v8691_v13 }
 0x274   : > { %6297 = vmatprep.subr.bf16.mxu1 %v8694_v14 }
 0x276   : > { %6273 = vmatpush1.bf16.msra.mxu0 %v8689_v37 }
 0x277   : > { %6298 = vmatpush1.bf16.msra.mxu1 %v8692_v15  ;;  %6274 = vmatprep.subr.bf16.mxu0 %v8697_v48  ;;  %v8743_v15 = vld [vmem:[%s9332_s7 + $0x9e8] ss:$16 sps:$4 sm:$0xff]  }
 0x278   : > { %6299 = vmatprep.subr.bf16.mxu1 %v8700_v16  ;;  %v8746_v48 = vld [vmem:[%s9332_s7 + $0xae8] ss:$16 sps:$4 sm:$0xff]   ;;  %v8751_v16 = vld [vmem:[%s9332_s7 + $0xb0c] ss:$16 sps:$4 sm:$0xff]  }
 0x27a   : > { %6275 = vmatpush1.bf16.msra.mxu0 %v8695_v19  ;;  %v8754_v19 = vld [vmem:[%s9332_s7 + $0xc0c] ss:$16 sps:$4 sm:$0xff]  }
 0x27b   : > { %6300 = vmatpush1.bf16.msra.mxu1 %v8698_v20  ;;  %6326 = vmatprep.subr.bf16.mxu0 %v8706_v22  ;;  %v8749_v20 = vld [vmem:[%s9332_s7 + $0xb08] ss:$16 sps:$4 sm:$0xff]   ;;  %v8757_v22 = vld [vmem:[%s9332_s7 + $0xb2c] ss:$16 sps:$4 sm:$0xff]  }
 0x27c   : > { %6301 = vmatprep.subr.bf16.mxu1 %v8703_v21  ;;  %v8752_v21 = vld [vmem:[%s9332_s7 + $0xc08] ss:$16 sps:$4 sm:$0xff]  }
 0x27d   : > { %6277 = vmatmul.mubr.bf16.vlgmr.msra.gmra.mrb[32].mxu0 %v9511_v18  ;;  %v8716_v18 = vld [vmem:[%s9332_s7 + $0xa48] ss:$16 sps:$4 sm:$0xff]  }
 0x27e   : > { %6327 = vmatpush1.bf16.msra.mxu0 %v8704_v28  ;;  %6358 = vmatprep.mubr.bf16.mxu0 %v9529_v26  ;;  %v8727_v26 = vld [vmem:[%s9332_s7 + $0x98c] ss:$16 sps:$4 sm:$0xff]   ;;  %v8755_v28 = vld [vmem:[%s9332_s7 + $0xb28] ss:$16 sps:$4 sm:$0xff]  }
 0x27f   : > { %6302 = vmatpush1.bf16.msra.mxu1 %v8701_v27  ;;  %6328 = vmatprep.subr.bf16.mxu0 %v8712_v31  ;;  %v8760_v27 = vld [vmem:[%s9332_s7 + $0xc2c] ss:$16 sps:$4 sm:$0xff]  }
 0x280   : > { %6303 = vmatprep.subr.bf16.mxu1 %v8709_v29  ;;  %v8758_v29 = vld [vmem:[%s9332_s7 + $0xc28] ss:$16 sps:$4 sm:$0xff]   ;;  %v8763_v31 = vld [vmem:[%s9332_s7 + $0xb4c] ss:$16 sps:$4 sm:$0xff]  }
 0x282   : > { %6329 = vmatpush1.bf16.msra.mxu0 %v8710_v33  ;;  %v8761_v33 = vld [vmem:[%s9332_s7 + $0xb48] ss:$16 sps:$4 sm:$0xff]  }
 0x283   : > { %6304 = vmatpush1.bf16.msra.mxu1 %v8707_v32  ;;  %6330 = vmatprep.subr.bf16.mxu0 %v8718_v43  ;;  %v8766_v32 = vld [vmem:[%s9332_s7 + $0xc4c] ss:$16 sps:$4 sm:$0xff]  }
 0x284   : > { %6305 = vmatprep.subr.bf16.mxu1 %v8715_v51  ;;  %v8769_v51 = vld [vmem:[%s9332_s7 + $0xb6c] ss:$16 sps:$4 sm:$0xff]  }
 0x285   : > { %v8772_v43 = vld [vmem:[%s9332_s7 + $0xc6c] ss:$16 sps:$4 sm:$0xff]  }
 0x286   : > { %6331 = vmatpush1.bf16.msra.mxu0 %v8716_v18  ;;  %v8770_v18 = vld [vmem:[%s9332_s7 + $0xc68] ss:$16 sps:$4 sm:$0xff]  }
 0x287   : > { %6306 = vmatpush1.bf16.msra.mxu1 %v8713_v44  ;;  %6332 = vmatprep.subr.bf16.mxu0 %v8724_v46  ;;  %v8767_v44 = vld [vmem:[%s9332_s7 + $0xb68] ss:$16 sps:$4 sm:$0xff]  }
 0x288   : > { %6307 = vmatprep.subr.bf16.mxu1 %v8721_v54  ;;  %v8778_v54 = vld [vmem:[%s9332_s7 + $0xc8c] ss:$16 sps:$4 sm:$0xff]   ;;  %v8773_v46 = vld [vmem:[%s9332_s7 + $0xb88] ss:$16 sps:$4 sm:$0xff]  }
 0x28a   : > { %6333 = vmatpush1.bf16.msra.mxu0 %v8722_v45  ;;  %v8781_v45 = vld [vmem:[%s9332_s7 + $0xbac] ss:$16 sps:$4 sm:$0xff]  }
 0x28b   : > { %6308 = vmatpush1.bf16.msra.mxu1 %v8719_v36  ;;  %6334 = vmatprep.subr.bf16.mxu0 %v8730_v62  ;;  %v8776_v36 = vld [vmem:[%s9332_s7 + $0xc88] ss:$16 sps:$4 sm:$0xff]  }
 0x28c   : > { %6309 = vmatprep.subr.bf16.mxu1 %v8727_v26  ;;  %v8784_v26 = vld [vmem:[%s9332_s7 + $0xcac] ss:$16 sps:$4 sm:$0xff]   ;;  %v8779_v62 = vld [vmem:[%s9332_s7 + $0xba8] ss:$16 sps:$4 sm:$0xff]  }
 0x28e   : > { %6335 = vmatpush1.bf16.msra.mxu0 %v8728_v0  ;;  %v8787_v0 = vld [vmem:[%s9332_s7 + $0xbcc] ss:$16 sps:$4 sm:$0xff]  }
 0x28f   : > { %6310 = vmatpush1.bf16.msra.mxu1 %v8725_v58  ;;  %6336 = vmatprep.subr.bf16.mxu0 %v8736_v2  ;;  %v8782_v58 = vld [vmem:[%s9332_s7 + $0xca8] ss:$16 sps:$4 sm:$0xff]  }
 0x290   : > { %6311 = vmatprep.subr.bf16.mxu1 %v8733_v1  ;;  %v5991_v4 = vpop.f32.mrb[20].mxu0  ;;  %v8790_v1 = vld [vmem:[%s9332_s7 + $0xccc] ss:$16 sps:$4 sm:$0xff]  }
 0x291   : > { %v6032_v5 = vpop.f32.mrb[20].mxu1  ;;  %v5992_v6 = vadd.f32 %v5991_v4, %v10074_v30  ;;  %v5993_v25 = vpop.f32.mrb[21].mxu0  ;;  %v8745_v30 = vld [vmem:[%s9332_s7 + $0x9ec] ss:$16 sps:$4 sm:$0xff]  }
 0x292   : > { %v6034_v38 = vpop.f32.mrb[21].mxu1  ;;  %v5994_v9 = vadd.f32 %v5993_v25, %v10078_v34  ;;  %v5995_v10 = vpop.f32.mrb[22].mxu0  ;;  %6337 = vmatpush1.bf16.msra.mxu0 %v8734_v8  ;;  %v8748_v34 = vld [vmem:[%s9332_s7 + $0xaec] ss:$16 sps:$4 sm:$0xff]   ;;  %v8791_v25 = vld [vmem:[%s9332_s7 + $0xbe8] ss:$16 sps:$4 sm:$0xff]  }
 0x293   : > { %v6036_v11 = vpop.f32.mrb[22].mxu1  ;;  %6312 = vmatpush1.bf16.msra.mxu1 %v8731_v35  ;;  %v10148_v12 = vadd.f32 %v6032_v5, %v5992_v6  ;;  %v5996_v13 = vpop.f32.mrb[23].mxu0  ;;  %6338 = vmatprep.subr.bf16.mxu0 %v8742_v3  ;;  %v8788_v3 = vld [vmem:[%s9332_s7 + $0xcc8] ss:$16 sps:$4 sm:$0xff]   ;;  %v8793_v5 = vld [vmem:[%s9332_s7 + $0xbec] ss:$16 sps:$4 sm:$0xff]  }
 0x294   : > { %v6037_v14 = vpop.f32.mrb[23].mxu1  ;;  %6313 = vmatprep.subr.bf16.mxu1 %v8739_v17  ;;  %v10152_v37 = vadd.f32 %v6034_v38, %v5994_v9  ;;  %v8785_v17 = vld [vmem:[%s9332_s7 + $0xbc8] ss:$16 sps:$4 sm:$0xff]   ;;  %v8796_v6 = vld [vmem:[%s9332_s7 + $0xcec] ss:$16 sps:$4 sm:$0xff]  }
 0x295   : > { %v8794_v38 = vld [vmem:[%s9332_s7 + $0xce8] ss:$16 sps:$4 sm:$0xff]   ;;  %v8799_v9 = vld [vmem:[%s9332_s7 + $0xd0c] ss:$16 sps:$4 sm:$0xff]  }
 0x296   : > { %6339 = vmatpush1.bf16.msra.mxu0 %v8740_v52  ;;  %v8802_v10 = vld [vmem:[%s9332_s7 + $0xe0c] ss:$16 sps:$4 sm:$0xff]   ;;  %v8797_v11 = vld [vmem:[%s9332_s7 + $0xd08] ss:$16 sps:$4 sm:$0xff]  }
 0x297   : > { %6314 = vmatpush1.bf16.msra.mxu1 %v8737_v7  ;;  %6340 = vmatprep.subr.bf16.mxu0 %v8748_v34  ;;  %v8800_v7 = vld [vmem:[%s9332_s7 + $0xe08] ss:$16 sps:$4 sm:$0xff]   ;;  %v8805_v52 = vld [vmem:[%s9332_s7 + $0xd2c] ss:$16 sps:$4 sm:$0xff]  }
 0x298   : > { %6315 = vmatprep.subr.bf16.mxu1 %v8745_v30  ;;  %v8808_v13 = vld [vmem:[%s9332_s7 + $0xe2c] ss:$16 sps:$4 sm:$0xff]   ;;  %v8803_v14 = vld [vmem:[%s9332_s7 + $0xd28] ss:$16 sps:$4 sm:$0xff]  }
 0x299   : > { %v8806_v30 = vld [vmem:[%s9332_s7 + $0xe28] ss:$16 sps:$4 sm:$0xff]   ;;  %v8811_v34 = vld [vmem:[%s9332_s7 + $0xd4c] ss:$16 sps:$4 sm:$0xff]  }
 0x29a   : > { %6341 = vmatpush1.bf16.msra.mxu0 %v8746_v48  ;;  %v8809_v48 = vld [vmem:[%s9332_s7 + $0xd48] ss:$16 sps:$4 sm:$0xff]  }
 0x29b   : > { %6316 = vmatpush1.bf16.msra.mxu1 %v8743_v15  ;;  %6342 = vmatprep.subr.bf16.mxu0 %v8751_v16  ;;  %v8814_v15 = vld [vmem:[%s9332_s7 + $0xe4c] ss:$16 sps:$4 sm:$0xff]  }
 0x29c   : > { %6367 = vmatprep.subr.bf16.mxu1 %v8754_v19  ;;  %v8817_v16 = vld [vmem:[%s9332_s7 + $0xd6c] ss:$16 sps:$4 sm:$0xff]  }
 0x29d   : > { %v8820_v19 = vld [vmem:[%s9332_s7 + $0xe6c] ss:$16 sps:$4 sm:$0xff]  }
 0x29e   : > { %6318 = vmatmul.mubr.bf16.vlgmr.msra.gmra.mrb[36].mxu1 %v9599_v39  ;;  %6343 = vmatpush1.bf16.msra.mxu0 %v8749_v20  ;;  %v8764_v39 = vld [vmem:[%s9332_s7 + $0xc48] ss:$16 sps:$4 sm:$0xff]  }
 0x29f   : > { %6368 = vmatpush1.bf16.msra.mxu1 %v8752_v21  ;;  %6344 = vmatprep.subr.bf16.mxu0 %v8757_v22  ;;  %v8815_v20 = vld [vmem:[%s9332_s7 + $0xd68] ss:$16 sps:$4 sm:$0xff]   ;;  %v8826_v22 = vld [vmem:[%s9332_s7 + $0xe8c] ss:$16 sps:$4 sm:$0xff]  }
 0x2a0   : > { %6369 = vmatprep.subr.bf16.mxu1 %v8760_v27  ;;  %6399 = vmatprep.mubr.bf16.mxu1 %v9615_v23  ;;  %v8775_v23 = vld [vmem:[%s9332_s7 + $0xb8c] ss:$16 sps:$4 sm:$0xff]   ;;  %v8818_v21 = vld [vmem:[%s9332_s7 + $0xe68] ss:$16 sps:$4 sm:$0xff]  }
 0x2a1   : > { %v8821_v27 = vld [vmem:[%s9332_s7 + $0xd88] ss:$16 sps:$4 sm:$0xff]  }
 0x2a2   : > { %6345 = vmatpush1.bf16.msra.mxu0 %v8755_v28  ;;  %v8824_v28 = vld [vmem:[%s9332_s7 + $0xe88] ss:$16 sps:$4 sm:$0xff]  }
 0x2a3   : > { %6370 = vmatpush1.bf16.msra.mxu1 %v8758_v29  ;;  %6346 = vmatprep.subr.bf16.mxu0 %v8763_v31  ;;  %v8829_v29 = vld [vmem:[%s9332_s7 + $0xdac] ss:$16 sps:$4 sm:$0xff]  }
 0x2a4   : > { %6371 = vmatprep.subr.bf16.mxu1 %v8766_v32  ;;  %v8832_v31 = vld [vmem:[%s9332_s7 + $0xeac] ss:$16 sps:$4 sm:$0xff]   ;;  %v8827_v32 = vld [vmem:[%s9332_s7 + $0xda8] ss:$16 sps:$4 sm:$0xff]  }
 0x2a6   : > { %6347 = vmatpush1.bf16.msra.mxu0 %v8761_v33  ;;  %v8830_v33 = vld [vmem:[%s9332_s7 + $0xea8] ss:$16 sps:$4 sm:$0xff]  }
 0x2a7   : > { %6372 = vmatpush1.bf16.msra.mxu1 %v8764_v39  ;;  %6348 = vmatprep.subr.bf16.mxu0 %v8769_v51  ;;  %v8835_v39 = vld [vmem:[%s9332_s7 + $0xdcc] ss:$16 sps:$4 sm:$0xff]  }
 0x2a8   : > { %6373 = vmatprep.subr.bf16.mxu1 %v8772_v43  ;;  %v8838_v51 = vld [vmem:[%s9332_s7 + $0xecc] ss:$16 sps:$4 sm:$0xff]  }
 0x2aa   : > { %6349 = vmatpush1.bf16.msra.mxu0 %v8767_v44 }
 0x2ab   : > { %6374 = vmatpush1.bf16.msra.mxu1 %v8770_v18  ;;  %6350 = vmatprep.subr.bf16.mxu0 %v8775_v23  ;;  %v250_v23 = vld [vmem:[#allocation2] sm:$0xff] }
 0x2ac   : > { %6375 = vmatprep.subr.bf16.mxu1 %v8778_v54 }
 0x2ae   : > { %6351 = vmatpush1.bf16.msra.mxu0 %v8773_v46 }
 0x2af   : > { %6376 = vmatpush1.bf16.msra.mxu1 %v8776_v36  ;;  %6352 = vmatprep.subr.bf16.mxu0 %v8781_v45  ;;  %v8833_v36 = vld [vmem:[%s9332_s7 + $0xdc8] ss:$16 sps:$4 sm:$0xff]  }
 0x2b0   : > { %6377 = vmatprep.subr.bf16.mxu1 %v8784_v26  ;;  %v8836_v45 = vld [vmem:[%s9332_s7 + $0xec8] ss:$16 sps:$4 sm:$0xff]  }
 0x2b1   : > { %v10184_v2 = vpop.f32.mrb[24].mxu1 }
 0x2b2   : > { %v10186_v35 = vpop.f32.mrb[25].mxu1  ;;  %6353 = vmatpush1.bf16.msra.mxu0 %v8779_v62  ;;  %v251_v62 = vld [vmem:[#allocation2 + $0x8] sm:$0xff] }
 0x2b3   : > { %v6118_v8 = vpop.f32.mrb[26].mxu1  ;;  %6378 = vmatpush1.bf16.msra.mxu1 %v8782_v58  ;;  %6354 = vmatprep.subr.bf16.mxu0 %v8787_v0  ;;  %v8844_v0 = vld [vmem:[%s9332_s7 + $0xeec] ss:$16 sps:$4 sm:$0xff]  }
 0x2b4   : > { %v6119_v4 = vpop.f32.mrb[27].mxu1  ;;  %6379 = vmatprep.subr.bf16.mxu1 %v8790_v1 }
 0x2b5   : > { %v8850_v4 = vld [vmem:[%s9332_s7 + $0x100c] ss:$16 sps:$4 sm:$0xff]  }
 0x2b6   : > { %6355 = vmatpush1.bf16.msra.mxu0 %v8785_v17  ;;  %v8839_v17 = vld [vmem:[%s9332_s7 + $0xde8] ss:$16 sps:$4 sm:$0xff]  }
 0x2b7   : > { %6380 = vmatpush1.bf16.msra.mxu1 %v8788_v3  ;;  %6356 = vmatprep.subr.bf16.mxu0 %v8793_v5  ;;  %v8847_v3 = vld [vmem:[%s9332_s7 + $0xf0c] ss:$16 sps:$4 sm:$0xff]   ;;  %v8848_v5 = vld [vmem:[%s9332_s7 + $0x1008] ss:$16 sps:$4 sm:$0xff]  }
 0x2b8   : > { %6381 = vmatprep.subr.bf16.mxu1 %v8796_v6  ;;  %v8853_v6 = vld [vmem:[%s9332_s7 + $0xf2c] ss:$16 sps:$4 sm:$0xff]  }
 0x2ba   : > { %6357 = vmatpush1.bf16.msra.mxu0 %v8791_v25  ;;  %v8856_v25 = vld [vmem:[%s9332_s7 + $0x102c] ss:$16 sps:$4 sm:$0xff]  }
 0x2bb   : > { %6382 = vmatpush1.bf16.msra.mxu1 %v8794_v38  ;;  %6408 = vmatprep.subr.bf16.mxu0 %v8802_v10  ;;  %v8851_v38 = vld [vmem:[%s9332_s7 + $0xf28] ss:$16 sps:$4 sm:$0xff]   ;;  %v8859_v10 = vld [vmem:[%s9332_s7 + $0xf4c] ss:$16 sps:$4 sm:$0xff]  }
 0x2bc   : > { %6383 = vmatprep.subr.bf16.mxu1 %v8799_v9  ;;  %v8854_v9 = vld [vmem:[%s9332_s7 + $0x1028] ss:$16 sps:$4 sm:$0xff]  }
 0x2bd   : > { %6359 = vmatmul.mubr.bf16.vlgmr.msra.gmra.mrb[36].mxu0 %v9603_v40  ;;  %v8812_v40 = vld [vmem:[%s9332_s7 + $0xe48] ss:$16 sps:$4 sm:$0xff]  }
 0x2be   : > { %6409 = vmatpush1.bf16.msra.mxu0 %v8800_v7  ;;  %6440 = vmatprep.mubr.bf16.mxu0 %v9619_v24  ;;  %v8823_v24 = vld [vmem:[%s9332_s7 + $0xd8c] ss:$16 sps:$4 sm:$0xff]   ;;  %v8857_v7 = vld [vmem:[%s9332_s7 + $0xf48] ss:$16 sps:$4 sm:$0xff]  }
 0x2bf   : > { %6384 = vmatpush1.bf16.msra.mxu1 %v8797_v11  ;;  %6410 = vmatprep.subr.bf16.mxu0 %v8808_v13  ;;  %v8862_v11 = vld [vmem:[%s9332_s7 + $0x104c] ss:$16 sps:$4 sm:$0xff]  }
 0x2c0   : > { %6385 = vmatprep.subr.bf16.mxu1 %v8805_v52  ;;  %v8865_v52 = vld [vmem:[%s9332_s7 + $0xf6c] ss:$16 sps:$4 sm:$0xff]  }
 0x2c1   : > { %v8868_v13 = vld [vmem:[%s9332_s7 + $0x106c] ss:$16 sps:$4 sm:$0xff]  }
 0x2c2   : > { %6411 = vmatpush1.bf16.msra.mxu0 %v8806_v30  ;;  %v8866_v30 = vld [vmem:[%s9332_s7 + $0x1068] ss:$16 sps:$4 sm:$0xff]  }
 0x2c3   : > { %6386 = vmatpush1.bf16.msra.mxu1 %v8803_v14  ;;  %6412 = vmatprep.subr.bf16.mxu0 %v8814_v15  ;;  %v8863_v14 = vld [vmem:[%s9332_s7 + $0xf68] ss:$16 sps:$4 sm:$0xff]  }
 0x2c4   : > { %6387 = vmatprep.subr.bf16.mxu1 %v8811_v34  ;;  %v8874_v34 = vld [vmem:[%s9332_s7 + $0x108c] ss:$16 sps:$4 sm:$0xff]   ;;  %v8869_v15 = vld [vmem:[%s9332_s7 + $0xf88] ss:$16 sps:$4 sm:$0xff]  }
 0x2c6   : > { %6413 = vmatpush1.bf16.msra.mxu0 %v8812_v40  ;;  %v8877_v40 = vld [vmem:[%s9332_s7 + $0xfac] ss:$16 sps:$4 sm:$0xff]  }
 0x2c7   : > { %6388 = vmatpush1.bf16.msra.mxu1 %v8809_v48  ;;  %6414 = vmatprep.subr.bf16.mxu0 %v8820_v19  ;;  %v8872_v48 = vld [vmem:[%s9332_s7 + $0x1088] ss:$16 sps:$4 sm:$0xff]  }
 0x2c8   : > { %6389 = vmatprep.subr.bf16.mxu1 %v8817_v16  ;;  %v8880_v16 = vld [vmem:[%s9332_s7 + $0x10ac] ss:$16 sps:$4 sm:$0xff]   ;;  %v8875_v19 = vld [vmem:[%s9332_s7 + $0xfa8] ss:$16 sps:$4 sm:$0xff]  }
 0x2ca   : > { %6415 = vmatpush1.bf16.msra.mxu0 %v8818_v21  ;;  %v8883_v21 = vld [vmem:[%s9332_s7 + $0xfcc] ss:$16 sps:$4 sm:$0xff]  }
 0x2cb   : > { %6390 = vmatpush1.bf16.msra.mxu1 %v8815_v20  ;;  %6416 = vmatprep.subr.bf16.mxu0 %v8826_v22  ;;  %v8878_v20 = vld [vmem:[%s9332_s7 + $0x10a8] ss:$16 sps:$4 sm:$0xff]  }
 0x2cc   : > { %6391 = vmatprep.subr.bf16.mxu1 %v8823_v24  ;;  %v8886_v24 = vld [vmem:[%s9332_s7 + $0x10cc] ss:$16 sps:$4 sm:$0xff]  }
 0x2ce   : > { %6417 = vmatpush1.bf16.msra.mxu0 %v8824_v28 }
 0x2cf   : > { %6392 = vmatpush1.bf16.msra.mxu1 %v8821_v27  ;;  %6418 = vmatprep.subr.bf16.mxu0 %v8832_v31  ;;  %v8884_v31 = vld [vmem:[%s9332_s7 + $0x10c8] ss:$16 sps:$4 sm:$0xff]  }
 0x2d0   : > { %6393 = vmatprep.subr.bf16.mxu1 %v8829_v29  ;;  %v6073_v43 = vpop.f32.mrb[24].mxu0  ;;  %v8881_v29 = vld [vmem:[%s9332_s7 + $0xfc8] ss:$16 sps:$4 sm:$0xff]  }
 0x2d1   : > { %v6074_v44 = vadd.f32 %v6073_v43, %v10148_v12  ;;  %v6075_v18 = vpop.f32.mrb[25].mxu0  ;;  %v8841_v12 = vld [vmem:[%s9332_s7 + $0xdec] ss:$16 sps:$4 sm:$0xff]   ;;  %v8890_v43 = vld [vmem:[%s9332_s7 + $0x10e8] ss:$16 sps:$4 sm:$0xff]  }
 0x2d2   : > { %v6076_v54 = vadd.f32 %v6075_v18, %v10152_v37  ;;  %v6077_v46 = vpop.f32.mrb[26].mxu0  ;;  %6419 = vmatpush1.bf16.msra.mxu0 %v8830_v33  ;;  %v8889_v33 = vld [vmem:[%s9332_s7 + $0xfec] ss:$16 sps:$4 sm:$0xff]  }
 0x2d3   : > { %6394 = vmatpush1.bf16.msra.mxu1 %v8827_v32  ;;  %v6115_v26 = vadd.f32 %v10184_v2, %v6074_v44  ;;  %v6078_v58 = vpop.f32.mrb[27].mxu0  ;;  %6420 = vmatprep.subr.bf16.mxu0 %v8838_v51  ;;  %v8842_v2 = vld [vmem:[%s9332_s7 + $0xee8] ss:$16 sps:$4 sm:$0xff]   ;;  %v8895_v44 = vld [vmem:[%s9332_s7 + $0x110c] ss:$16 sps:$4 sm:$0xff]  }
 0x2d4   : > { %6395 = vmatprep.subr.bf16.mxu1 %v8835_v39  ;;  %v6117_v37 = vadd.f32 %v10186_v35, %v6076_v54  ;;  %v8845_v35 = vld [vmem:[%s9332_s7 + $0xf08] ss:$16 sps:$4 sm:$0xff]   ;;  %v8892_v39 = vld [vmem:[%s9332_s7 + $0x10ec] ss:$16 sps:$4 sm:$0xff]  }
 0x2d5   : > { %v6695_v1 = vadd.f32 %v6115_v26, %v250_v23  ;;  %v8887_v51 = vld [vmem:[%s9332_s7 + $0xfe8] ss:$16 sps:$4 sm:$0xff]   ;;  %v8898_v18 = vld [vmem:[%s9332_s7 + $0x120c] ss:$16 sps:$4 sm:$0xff]  }
 0x2d6   : > { %v6696_v8 = vadd.f32 %v6117_v37, %v251_v62  ;;  %6421 = vmatpush1.bf16.msra.mxu0 %v8836_v45  ;;  %v8893_v23 = vld [vmem:[%s9332_s7 + $0x1108] ss:$16 sps:$4 sm:$0xff]   ;;  %v8901_v46 = vld [vmem:[%s9332_s7 + $0x112c] ss:$16 sps:$4 sm:$0xff]  }
 0x2d7   : > { %6396 = vmatpush1.bf16.msra.mxu1 %v8833_v36  ;;  %6699 = vst [vmem:[#allocation2] sm:$0xff] %v6695_v1  ;;  %6422 = vmatprep.subr.bf16.mxu0 %v8844_v0  ;;  %v8896_v54 = vld [vmem:[%s9332_s7 + $0x1208] ss:$16 sps:$4 sm:$0xff]   ;;  %v8904_v36 = vld [vmem:[%s9332_s7 + $0x122c] ss:$16 sps:$4 sm:$0xff]  }
 0x2d8   : > { %6397 = vmatprep.subr.bf16.mxu1 %v8841_v12  ;;  %6700 = vst [vmem:[#allocation2 + $0x8] sm:$0xff] %v6696_v8  ;;  %v8899_v45 = vld [vmem:[%s9332_s7 + $0x1128] ss:$16 sps:$4 sm:$0xff]   ;;  %v8907_v62 = vld [vmem:[%s9332_s7 + $0x114c] ss:$16 sps:$4 sm:$0xff]  }
 0x2d9   : > { %v8902_v26 = vld [vmem:[%s9332_s7 + $0x1228] ss:$16 sps:$4 sm:$0xff]   ;;  %v8910_v58 = vld [vmem:[%s9332_s7 + $0x124c] ss:$16 sps:$4 sm:$0xff]  }
 0x2da   : > { %6423 = vmatpush1.bf16.msra.mxu0 %v8842_v2  ;;  %v8905_v12 = vld [vmem:[%s9332_s7 + $0x1148] ss:$16 sps:$4 sm:$0xff]   ;;  %v8913_v0 = vld [vmem:[%s9332_s7 + $0x116c] ss:$16 sps:$4 sm:$0xff]  }
 0x2db   : > { %6398 = vmatpush1.bf16.msra.mxu1 %v8839_v17  ;;  %6424 = vmatprep.subr.bf16.mxu0 %v8847_v3  ;;  %v8916_v37 = vld [vmem:[%s9332_s7 + $0x126c] ss:$16 sps:$4 sm:$0xff]   ;;  %v8911_v1 = vld [vmem:[%s9332_s7 + $0x1168] ss:$16 sps:$4 sm:$0xff]  }
 0x2dc   : > { %6449 = vmatprep.subr.bf16.mxu1 %v8850_v4  ;;  %v8914_v8 = vld [vmem:[%s9332_s7 + $0x1268] ss:$16 sps:$4 sm:$0xff]   ;;  %v8922_v17 = vld [vmem:[%s9332_s7 + $0x128c] ss:$16 sps:$4 sm:$0xff]  }
 0x2dd   : > { %v8917_v2 = vld [vmem:[%s9332_s7 + $0x1188] ss:$16 sps:$4 sm:$0xff]   ;;  %v8925_v4 = vld [vmem:[%s9332_s7 + $0x11ac] ss:$16 sps:$4 sm:$0xff]  }
 0x2de   : > { %6400 = vmatmul.mubr.bf16.vlgmr.msra.gmra.mrb[40].mxu1 %v9690_v60  ;;  %6425 = vmatpush1.bf16.msra.mxu0 %v8845_v35  ;;  %v8860_v60 = vld [vmem:[%s9332_s7 + $0x1048] ss:$16 sps:$4 sm:$0xff]   ;;  %v8928_v35 = vld [vmem:[%s9332_s7 + $0x12ac] ss:$16 sps:$4 sm:$0xff]  }
 0x2df   : > { %6450 = vmatpush1.bf16.msra.mxu1 %v8848_v5  ;;  %6426 = vmatprep.subr.bf16.mxu0 %v8853_v6  ;;  %v8920_v3 = vld [vmem:[%s9332_s7 + $0x1288] ss:$16 sps:$4 sm:$0xff]  }
 0x2e0   : > { %6451 = vmatprep.subr.bf16.mxu1 %v8856_v25  ;;  %6481 = vmatprep.mubr.bf16.mxu1 %v9705_v41  ;;  %v8871_v41 = vld [vmem:[%s9332_s7 + $0xf8c] ss:$16 sps:$4 sm:$0xff]   ;;  %v8923_v5 = vld [vmem:[%s9332_s7 + $0x11a8] ss:$16 sps:$4 sm:$0xff]  }
 0x2e1   : > { %v8926_v6 = vld [vmem:[%s9332_s7 + $0x12a8] ss:$16 sps:$4 sm:$0xff]   ;;  %v8931_v25 = vld [vmem:[%s9332_s7 + $0x11cc] ss:$16 sps:$4 sm:$0xff]  }
 0x2e2   : > { %6427 = vmatpush1.bf16.msra.mxu0 %v8851_v38  ;;  %v8934_v38 = vld [vmem:[%s9332_s7 + $0x12cc] ss:$16 sps:$4 sm:$0xff]  }
 0x2e3   : > { %6452 = vmatpush1.bf16.msra.mxu1 %v8854_v9  ;;  %6428 = vmatprep.subr.bf16.mxu0 %v8859_v10 }
 0x2e4   : > { %6453 = vmatprep.subr.bf16.mxu1 %v8862_v11 }
 0x2e6   : > { %6429 = vmatpush1.bf16.msra.mxu0 %v8857_v7 }
 0x2e7   : > { %6454 = vmatpush1.bf16.msra.mxu1 %v8860_v60  ;;  %6430 = vmatprep.subr.bf16.mxu0 %v8865_v52  ;;  %v8929_v52 = vld [vmem:[%s9332_s7 + $0x11c8] ss:$16 sps:$4 sm:$0xff]  }
 0x2e8   : > { %6455 = vmatprep.subr.bf16.mxu1 %v8868_v13  ;;  %v8932_v13 = vld [vmem:[%s9332_s7 + $0x12c8] ss:$16 sps:$4 sm:$0xff]  }
 0x2ea   : > { %6431 = vmatpush1.bf16.msra.mxu0 %v8863_v14 }
 0x2eb   : > { %6456 = vmatpush1.bf16.msra.mxu1 %v8866_v30  ;;  %6432 = vmatprep.subr.bf16.mxu0 %v8871_v41  ;;  %v8937_v30 = vld [vmem:[%s9332_s7 + $0x11ec] ss:$16 sps:$4 sm:$0xff]  }
 0x2ec   : > { %6457 = vmatprep.subr.bf16.mxu1 %v8874_v34  ;;  %v8940_v41 = vld [vmem:[%s9332_s7 + $0x12ec] ss:$16 sps:$4 sm:$0xff]   ;;  %v8935_v34 = vld [vmem:[%s9332_s7 + $0x11e8] ss:$16 sps:$4 sm:$0xff]  }
 0x2ee   : > { %6433 = vmatpush1.bf16.msra.mxu0 %v8869_v15  ;;  %v8938_v15 = vld [vmem:[%s9332_s7 + $0x12e8] ss:$16 sps:$4 sm:$0xff]  }
 0x2ef   : > { %6458 = vmatpush1.bf16.msra.mxu1 %v8872_v48  ;;  %6434 = vmatprep.subr.bf16.mxu0 %v8877_v40  ;;  %v8943_v48 = vld [vmem:[%s9332_s7 + $0x130c] ss:$16 sps:$4 sm:$0xff]  }
 0x2f0   : > { %6459 = vmatprep.subr.bf16.mxu1 %v8880_v16  ;;  %v8946_v40 = vld [vmem:[%s9332_s7 + $0x140c] ss:$16 sps:$4 sm:$0xff]   ;;  %v8941_v16 = vld [vmem:[%s9332_s7 + $0x1308] ss:$16 sps:$4 sm:$0xff]  }
 0x2f1   : > { %v10260_v22 = vpop.f32.mrb[28].mxu1 }
 0x2f2   : > { %v10262_v27 = vpop.f32.mrb[29].mxu1  ;;  %6435 = vmatpush1.bf16.msra.mxu0 %v8875_v19  ;;  %v8944_v19 = vld [vmem:[%s9332_s7 + $0x1408] ss:$16 sps:$4 sm:$0xff]  }
 0x2f3   : > { %v6159_v28 = vpop.f32.mrb[30].mxu1  ;;  %6460 = vmatpush1.bf16.msra.mxu1 %v8878_v20  ;;  %6436 = vmatprep.subr.bf16.mxu0 %v8883_v21  ;;  %v8949_v20 = vld [vmem:[%s9332_s7 + $0x132c] ss:$16 sps:$4 sm:$0xff]  }
 0x2f4   : > { %v6160_v32 = vpop.f32.mrb[31].mxu1  ;;  %6461 = vmatprep.subr.bf16.mxu1 %v8886_v24  ;;  %v8952_v21 = vld [vmem:[%s9332_s7 + $0x142c] ss:$16 sps:$4 sm:$0xff]   ;;  %v8947_v24 = vld [vmem:[%s9332_s7 + $0x1328] ss:$16 sps:$4 sm:$0xff]  }
 0x2f5   : > { %v8958_v28 = vld [vmem:[%s9332_s7 + $0x144c] ss:$16 sps:$4 sm:$0xff]  }
 0x2f6   : > { %6437 = vmatpush1.bf16.msra.mxu0 %v8881_v29  ;;  %v8953_v29 = vld [vmem:[%s9332_s7 + $0x1348] ss:$16 sps:$4 sm:$0xff]   ;;  %v8964_v32 = vld [vmem:[%s9332_s7 + $0x146c] ss:$16 sps:$4 sm:$0xff]  }
 0x2f7   : > { %6462 = vmatpush1.bf16.msra.mxu1 %v8884_v31  ;;  %6438 = vmatprep.subr.bf16.mxu0 %v8889_v33  ;;  %v8961_v31 = vld [vmem:[%s9332_s7 + $0x136c] ss:$16 sps:$4 sm:$0xff]   ;;  %v8959_v33 = vld [vmem:[%s9332_s7 + $0x1368] ss:$16 sps:$4 sm:$0xff]  }
 0x2f8   : > { %6463 = vmatprep.subr.bf16.mxu1 %v8892_v39  ;;  %v8962_v39 = vld [vmem:[%s9332_s7 + $0x1468] ss:$16 sps:$4 sm:$0xff]  }
 0x2fa   : > { %6439 = vmatpush1.bf16.msra.mxu0 %v8887_v51  ;;  %v8970_v51 = vld [vmem:[%s9332_s7 + $0x148c] ss:$16 sps:$4 sm:$0xff]  }
 0x2fb   : > { %6464 = vmatpush1.bf16.msra.mxu1 %v8890_v43  ;;  %6490 = vmatprep.subr.bf16.mxu0 %v8898_v18  ;;  %v8965_v43 = vld [vmem:[%s9332_s7 + $0x1388] ss:$16 sps:$4 sm:$0xff]   ;;  %v8973_v18 = vld [vmem:[%s9332_s7 + $0x13ac] ss:$16 sps:$4 sm:$0xff]  }
 0x2fc   : > { %6465 = vmatprep.subr.bf16.mxu1 %v8895_v44  ;;  %v8968_v44 = vld [vmem:[%s9332_s7 + $0x1488] ss:$16 sps:$4 sm:$0xff]  }
 0x2fd   : > { %6441 = vmatmul.mubr.bf16.vlgmr.msra.gmra.mrb[40].mxu0 %v9694_v61  ;;  %v8908_v61 = vld [vmem:[%s9332_s7 + $0x1248] ss:$16 sps:$4 sm:$0xff]  }
 0x2fe   : > { %6491 = vmatpush1.bf16.msra.mxu0 %v8896_v54  ;;  %6522 = vmatprep.mubr.bf16.mxu0 %v9709_v42  ;;  %v8919_v42 = vld [vmem:[%s9332_s7 + $0x118c] ss:$16 sps:$4 sm:$0xff]   ;;  %v8971_v54 = vld [vmem:[%s9332_s7 + $0x13a8] ss:$16 sps:$4 sm:$0xff]  }
 0x2ff   : > { %6466 = vmatpush1.bf16.msra.mxu1 %v8893_v23  ;;  %6492 = vmatprep.subr.bf16.mxu0 %v8904_v36  ;;  %v8976_v23 = vld [vmem:[%s9332_s7 + $0x14ac] ss:$16 sps:$4 sm:$0xff]  }
 0x300   : > { %6467 = vmatprep.subr.bf16.mxu1 %v8901_v46  ;;  %v8974_v46 = vld [vmem:[%s9332_s7 + $0x14a8] ss:$16 sps:$4 sm:$0xff]   ;;  %v8979_v36 = vld [vmem:[%s9332_s7 + $0x13cc] ss:$16 sps:$4 sm:$0xff]  }
 0x302   : > { %6493 = vmatpush1.bf16.msra.mxu0 %v8902_v26 }
 0x303   : > { %6468 = vmatpush1.bf16.msra.mxu1 %v8899_v45  ;;  %6494 = vmatprep.subr.bf16.mxu0 %v8910_v58  ;;  %v8982_v45 = vld [vmem:[%s9332_s7 + $0x14cc] ss:$16 sps:$4 sm:$0xff]  }
 0x304   : > { %6469 = vmatprep.subr.bf16.mxu1 %v8907_v62 }
 0x306   : > { %6495 = vmatpush1.bf16.msra.mxu0 %v8908_v61 }
 0x307   : > { %6470 = vmatpush1.bf16.msra.mxu1 %v8905_v12  ;;  %6496 = vmatprep.subr.bf16.mxu0 %v8916_v37  ;;  %v8980_v37 = vld [vmem:[%s9332_s7 + $0x14c8] ss:$16 sps:$4 sm:$0xff]  }
 0x308   : > { %6471 = vmatprep.subr.bf16.mxu1 %v8913_v0  ;;  %v8977_v0 = vld [vmem:[%s9332_s7 + $0x13c8] ss:$16 sps:$4 sm:$0xff]  }
 0x30a   : > { %6497 = vmatpush1.bf16.msra.mxu0 %v8914_v8  ;;  %v8985_v8 = vld [vmem:[%s9332_s7 + $0x13ec] ss:$16 sps:$4 sm:$0xff]  }
 0x30b   : > { %6472 = vmatpush1.bf16.msra.mxu1 %v8911_v1  ;;  %6498 = vmatprep.subr.bf16.mxu0 %v8922_v17  ;;  %v8983_v17 = vld [vmem:[%s9332_s7 + $0x13e8] ss:$16 sps:$4 sm:$0xff]  }
 0x30c   : > { %6473 = vmatprep.subr.bf16.mxu1 %v8919_v42  ;;  %v8988_v42 = vld [vmem:[%s9332_s7 + $0x14ec] ss:$16 sps:$4 sm:$0xff]  }
 0x30e   : > { %6499 = vmatpush1.bf16.msra.mxu0 %v8920_v3  ;;  %v8991_v3 = vld [vmem:[%s9332_s7 + $0x150c] ss:$16 sps:$4 sm:$0xff]  }
 0x30f   : > { %6474 = vmatpush1.bf16.msra.mxu1 %v8917_v2  ;;  %6500 = vmatprep.subr.bf16.mxu0 %v8928_v35  ;;  %v8986_v2 = vld [vmem:[%s9332_s7 + $0x14e8] ss:$16 sps:$4 sm:$0xff]  }
 0x310   : > { %6475 = vmatprep.subr.bf16.mxu1 %v8925_v4  ;;  %v6196_v9 = vpop.f32.mrb[28].mxu0  ;;  %v8994_v4 = vld [vmem:[%s9332_s7 + $0x160c] ss:$16 sps:$4 sm:$0xff]   ;;  %v8989_v35 = vld [vmem:[%s9332_s7 + $0x1508] ss:$16 sps:$4 sm:$0xff]  }
 0x311   : > { %v10299_v10 = vadd.f32 %v6196_v9, %v10260_v22  ;;  %v6198_v11 = vpop.f32.mrb[29].mxu0  ;;  %v8950_v22 = vld [vmem:[%s9332_s7 + $0x1428] ss:$16 sps:$4 sm:$0xff]  }
 0x312   : > { %v10302_v7 = vadd.f32 %v6198_v11, %v10262_v27  ;;  %v6200_v60 = vpop.f32.mrb[30].mxu0  ;;  %6501 = vmatpush1.bf16.msra.mxu0 %v8926_v6  ;;  %v8955_v27 = vld [vmem:[%s9332_s7 + $0x134c] ss:$16 sps:$4 sm:$0xff]   ;;  %v8998_v9 = vld [vmem:[%s9332_s7 + $0x1628] ss:$16 sps:$4 sm:$0xff]  }
 0x313   : > { %6476 = vmatpush1.bf16.msra.mxu1 %v8923_v5  ;;  %v6201_v14 = vpop.f32.mrb[31].mxu0  ;;  %6502 = vmatprep.subr.bf16.mxu0 %v8934_v38  ;;  %v8992_v5 = vld [vmem:[%s9332_s7 + $0x1608] ss:$16 sps:$4 sm:$0xff]   ;;  %v8997_v6 = vld [vmem:[%s9332_s7 + $0x152c] ss:$16 sps:$4 sm:$0xff]  }
 0x314   : > { %6477 = vmatprep.subr.bf16.mxu1 %v8931_v25  ;;  %v9000_v25 = vld [vmem:[%s9332_s7 + $0x162c] ss:$16 sps:$4 sm:$0xff]   ;;  %v8995_v38 = vld [vmem:[%s9332_s7 + $0x1528] ss:$16 sps:$4 sm:$0xff]  }
 0x315   : > { %v9006_v11 = vld [vmem:[%s9332_s7 + $0x164c] ss:$16 sps:$4 sm:$0xff]   ;;  %v9010_v14 = vld [vmem:[%s9332_s7 + $0x1668] ss:$16 sps:$4 sm:$0xff]  }
 0x316   : > { %6503 = vmatpush1.bf16.msra.mxu0 %v8932_v13  ;;  %v9009_v60 = vld [vmem:[%s9332_s7 + $0x156c] ss:$16 sps:$4 sm:$0xff]   ;;  %v9007_v13 = vld [vmem:[%s9332_s7 + $0x1568] ss:$16 sps:$4 sm:$0xff]  }
 0x317   : > { %6478 = vmatpush1.bf16.msra.mxu1 %v8929_v52  ;;  %6504 = vmatprep.subr.bf16.mxu0 %v8940_v41  ;;  %v9012_v52 = vld [vmem:[%s9332_s7 + $0x166c] ss:$16 sps:$4 sm:$0xff]   ;;  %v9013_v41 = vld [vmem:[%s9332_s7 + $0x1588] ss:$16 sps:$4 sm:$0xff]  }
 0x318   : > { %6479 = vmatprep.subr.bf16.mxu1 %v8937_v30  ;;  %v9018_v30 = vld [vmem:[%s9332_s7 + $0x168c] ss:$16 sps:$4 sm:$0xff]  }
 0x31a   : > { %6505 = vmatpush1.bf16.msra.mxu0 %v8938_v15  ;;  %v9021_v15 = vld [vmem:[%s9332_s7 + $0x15ac] ss:$16 sps:$4 sm:$0xff]  }
 0x31b   : > { %6480 = vmatpush1.bf16.msra.mxu1 %v8935_v34  ;;  %6506 = vmatprep.subr.bf16.mxu0 %v8943_v48  ;;  %v9016_v34 = vld [vmem:[%s9332_s7 + $0x1688] ss:$16 sps:$4 sm:$0xff]   ;;  %v9024_v48 = vld [vmem:[%s9332_s7 + $0x16ac] ss:$16 sps:$4 sm:$0xff]  }
 0x31c   : > { %6531 = vmatprep.subr.bf16.mxu1 %v8946_v40  ;;  %v9019_v40 = vld [vmem:[%s9332_s7 + $0x15a8] ss:$16 sps:$4 sm:$0xff]  }
 0x31e   : > { %6482 = vmatmul.mubr.bf16.vlgmr.msra.gmra.mrb[44].mxu1 %v9786_v49  ;;  %6507 = vmatpush1.bf16.msra.mxu0 %v8941_v16  ;;  %v8956_v49 = vld [vmem:[%s9332_s7 + $0x1448] ss:$16 sps:$4 sm:$0xff]  }
 0x31f   : > { %6532 = vmatpush1.bf16.msra.mxu1 %v8944_v19  ;;  %6508 = vmatprep.subr.bf16.mxu0 %v8949_v20  ;;  %v9022_v16 = vld [vmem:[%s9332_s7 + $0x16a8] ss:$16 sps:$4 sm:$0xff]   ;;  %v9027_v19 = vld [vmem:[%s9332_s7 + $0x15cc] ss:$16 sps:$4 sm:$0xff]  }
 0x320   : > { %6533 = vmatprep.subr.bf16.mxu1 %v8952_v21  ;;  %6563 = vmatprep.mubr.bf16.mxu1 %v9799_v55  ;;  %v8967_v55 = vld [vmem:[%s9332_s7 + $0x138c] ss:$16 sps:$4 sm:$0xff]  }
 0x321   : > { %v9030_v20 = vld [vmem:[%s9332_s7 + $0x16cc] ss:$16 sps:$4 sm:$0xff]  }
 0x322   : > { %6509 = vmatpush1.bf16.msra.mxu0 %v8947_v24 }
 0x323   : > { %6534 = vmatpush1.bf16.msra.mxu1 %v8950_v22  ;;  %6510 = vmatprep.subr.bf16.mxu0 %v8955_v27 }
 0x324   : > { %6535 = vmatprep.subr.bf16.mxu1 %v8958_v28 }
 0x326   : > { %6511 = vmatpush1.bf16.msra.mxu0 %v8953_v29  ;;  %v9025_v29 = vld [vmem:[%s9332_s7 + $0x15c8] ss:$16 sps:$4 sm:$0xff]  }
 0x327   : > { %6536 = vmatpush1.bf16.msra.mxu1 %v8956_v49  ;;  %6512 = vmatprep.subr.bf16.mxu0 %v8961_v31  ;;  %v9028_v49 = vld [vmem:[%s9332_s7 + $0x16c8] ss:$16 sps:$4 sm:$0xff]  }
 0x328   : > { %6537 = vmatprep.subr.bf16.mxu1 %v8964_v32  ;;  %v9033_v32 = vld [vmem:[%s9332_s7 + $0x15ec] ss:$16 sps:$4 sm:$0xff]  }
 0x32a   : > { %6513 = vmatpush1.bf16.msra.mxu0 %v8959_v33  ;;  %v9036_v33 = vld [vmem:[%s9332_s7 + $0x16ec] ss:$16 sps:$4 sm:$0xff]  }
 0x32b   : > { %6538 = vmatpush1.bf16.msra.mxu1 %v8962_v39  ;;  %6514 = vmatprep.subr.bf16.mxu0 %v8967_v55  ;;  %v9031_v39 = vld [vmem:[%s9332_s7 + $0x15e8] ss:$16 sps:$4 sm:$0xff]  }
 0x32c   : > { %6539 = vmatprep.subr.bf16.mxu1 %v8970_v51  ;;  %v9034_v55 = vld [vmem:[%s9332_s7 + $0x16e8] ss:$16 sps:$4 sm:$0xff]   ;;  %v9039_v51 = vld [vmem:[%s9332_s7 + $0x170c] ss:$16 sps:$4 sm:$0xff]  }
 0x32e   : > { %6515 = vmatpush1.bf16.msra.mxu0 %v8965_v43  ;;  %v9042_v43 = vld [vmem:[%s9332_s7 + $0x180c] ss:$16 sps:$4 sm:$0xff]  }
 0x32f   : > { %6540 = vmatpush1.bf16.msra.mxu1 %v8968_v44  ;;  %6516 = vmatprep.subr.bf16.mxu0 %v8973_v18  ;;  %v9037_v44 = vld [vmem:[%s9332_s7 + $0x1708] ss:$16 sps:$4 sm:$0xff]  }
 0x330   : > { %6541 = vmatprep.subr.bf16.mxu1 %v8976_v23  ;;  %v9040_v18 = vld [vmem:[%s9332_s7 + $0x1808] ss:$16 sps:$4 sm:$0xff]   ;;  %v9045_v23 = vld [vmem:[%s9332_s7 + $0x172c] ss:$16 sps:$4 sm:$0xff]  }
 0x331   : > { %v6237_v26 = vpop.f32.mrb[32].mxu1 }
 0x332   : > { %v10339_v62 = vadd.f32 %v6237_v26, %v10299_v10  ;;  %v6239_v58 = vpop.f32.mrb[33].mxu1  ;;  %6517 = vmatpush1.bf16.msra.mxu0 %v8971_v54  ;;  %v9003_v10 = vld [vmem:[%s9332_s7 + $0x154c] ss:$16 sps:$4 sm:$0xff]  }
 0x333   : > { %v10342_v12 = vadd.f32 %v6239_v58, %v10302_v7  ;;  %v6241_v61 = vpop.f32.mrb[34].mxu1  ;;  %6542 = vmatpush1.bf16.msra.mxu1 %v8974_v46  ;;  %6518 = vmatprep.subr.bf16.mxu0 %v8979_v36  ;;  %v9001_v7 = vld [vmem:[%s9332_s7 + $0x1548] ss:$16 sps:$4 sm:$0xff]   ;;  %v9048_v54 = vld [vmem:[%s9332_s7 + $0x182c] ss:$16 sps:$4 sm:$0xff]  }
 0x334   : > { %v6242_v1 = vpop.f32.mrb[35].mxu1  ;;  %6543 = vmatprep.subr.bf16.mxu1 %v8982_v45  ;;  %v9043_v46 = vld [vmem:[%s9332_s7 + $0x1728] ss:$16 sps:$4 sm:$0xff]   ;;  %v9051_v45 = vld [vmem:[%s9332_s7 + $0x174c] ss:$16 sps:$4 sm:$0xff]  }
 0x335   : > { %v9046_v36 = vld [vmem:[%s9332_s7 + $0x1828] ss:$16 sps:$4 sm:$0xff]   ;;  %v9054_v26 = vld [vmem:[%s9332_s7 + $0x184c] ss:$16 sps:$4 sm:$0xff]  }
 0x336   : > { %6519 = vmatpush1.bf16.msra.mxu0 %v8977_v0  ;;  %v9057_v58 = vld [vmem:[%s9332_s7 + $0x176c] ss:$16 sps:$4 sm:$0xff]   ;;  %v9055_v61 = vld [vmem:[%s9332_s7 + $0x1768] ss:$16 sps:$4 sm:$0xff]  }
 0x337   : > { %6544 = vmatpush1.bf16.msra.mxu1 %v8980_v37  ;;  %6520 = vmatprep.subr.bf16.mxu0 %v8985_v8  ;;  %v9058_v0 = vld [vmem:[%s9332_s7 + $0x1868] ss:$16 sps:$4 sm:$0xff]   ;;  %v9066_v37 = vld [vmem:[%s9332_s7 + $0x188c] ss:$16 sps:$4 sm:$0xff]  }
 0x338   : > { %6545 = vmatprep.subr.bf16.mxu1 %v8988_v42  ;;  %v9061_v1 = vld [vmem:[%s9332_s7 + $0x1788] ss:$16 sps:$4 sm:$0xff]   ;;  %v9069_v42 = vld [vmem:[%s9332_s7 + $0x17ac] ss:$16 sps:$4 sm:$0xff]  }
 0x339   : > { %v9064_v8 = vld [vmem:[%s9332_s7 + $0x1888] ss:$16 sps:$4 sm:$0xff]  }
 0x33a   : > { %6521 = vmatpush1.bf16.msra.mxu0 %v8983_v17  ;;  %v9072_v17 = vld [vmem:[%s9332_s7 + $0x18ac] ss:$16 sps:$4 sm:$0xff]  }
 0x33b   : > { %6546 = vmatpush1.bf16.msra.mxu1 %v8986_v2  ;;  %6572 = vmatprep.subr.bf16.mxu0 %v8994_v4  ;;  %v9067_v2 = vld [vmem:[%s9332_s7 + $0x17a8] ss:$16 sps:$4 sm:$0xff]   ;;  %v9075_v4 = vld [vmem:[%s9332_s7 + $0x17cc] ss:$16 sps:$4 sm:$0xff]  }
 0x33c   : > { %6547 = vmatprep.subr.bf16.mxu1 %v8991_v3  ;;  %v9070_v3 = vld [vmem:[%s9332_s7 + $0x18a8] ss:$16 sps:$4 sm:$0xff]  }
 0x33d   : > { %6523 = vmatmul.mubr.bf16.vlgmr.msra.gmra.mrb[44].mxu0 %v9790_v50  ;;  %v9004_v50 = vld [vmem:[%s9332_s7 + $0x1648] ss:$16 sps:$4 sm:$0xff]  }
 0x33e   : > { %6573 = vmatpush1.bf16.msra.mxu0 %v8992_v5  ;;  %6604 = vmatprep.mubr.bf16.mxu0 %v9803_v59  ;;  %v9015_v59 = vld [vmem:[%s9332_s7 + $0x158c] ss:$16 sps:$4 sm:$0xff]  }
 0x33f   : > { %6548 = vmatpush1.bf16.msra.mxu1 %v8989_v35  ;;  %6574 = vmatprep.subr.bf16.mxu0 %v9000_v25  ;;  %v9078_v35 = vld [vmem:[%s9332_s7 + $0x18cc] ss:$16 sps:$4 sm:$0xff]  }
 0x340   : > { %6549 = vmatprep.subr.bf16.mxu1 %v8997_v6 }
 0x342   : > { %6575 = vmatpush1.bf16.msra.mxu0 %v8998_v9 }
 0x343   : > { %6550 = vmatpush1.bf16.msra.mxu1 %v8995_v38  ;;  %6576 = vmatprep.subr.bf16.mxu0 %v9006_v11  ;;  %v9076_v11 = vld [vmem:[%s9332_s7 + $0x18c8] ss:$16 sps:$4 sm:$0xff]  }
 0x344   : > { %6551 = vmatprep.subr.bf16.mxu1 %v9003_v10  ;;  %v9073_v10 = vld [vmem:[%s9332_s7 + $0x17c8] ss:$16 sps:$4 sm:$0xff]  }
 0x346   : > { %6577 = vmatpush1.bf16.msra.mxu0 %v9004_v50  ;;  %v9081_v50 = vld [vmem:[%s9332_s7 + $0x17ec] ss:$16 sps:$4 sm:$0xff]  }
 0x347   : > { %6552 = vmatpush1.bf16.msra.mxu1 %v9001_v7  ;;  %6578 = vmatprep.subr.bf16.mxu0 %v9012_v52  ;;  %v9079_v52 = vld [vmem:[%s9332_s7 + $0x17e8] ss:$16 sps:$4 sm:$0xff]  }
 0x348   : > { %6553 = vmatprep.subr.bf16.mxu1 %v9009_v60  ;;  %v9084_v60 = vld [vmem:[%s9332_s7 + $0x18ec] ss:$16 sps:$4 sm:$0xff]  }
 0x34a   : > { %6579 = vmatpush1.bf16.msra.mxu0 %v9010_v14  ;;  %v9087_v14 = vld [vmem:[%s9332_s7 + $0x190c] ss:$16 sps:$4 sm:$0xff]  }
 0x34b   : > { %6554 = vmatpush1.bf16.msra.mxu1 %v9007_v13  ;;  %6580 = vmatprep.subr.bf16.mxu0 %v9018_v30  ;;  %v9082_v13 = vld [vmem:[%s9332_s7 + $0x18e8] ss:$16 sps:$4 sm:$0xff]  }
 0x34c   : > { %6555 = vmatprep.subr.bf16.mxu1 %v9015_v59  ;;  %v9090_v59 = vld [vmem:[%s9332_s7 + $0x1a0c] ss:$16 sps:$4 sm:$0xff]   ;;  %v9085_v30 = vld [vmem:[%s9332_s7 + $0x1908] ss:$16 sps:$4 sm:$0xff]  }
 0x34e   : > { %6581 = vmatpush1.bf16.msra.mxu0 %v9016_v34  ;;  %v9093_v34 = vld [vmem:[%s9332_s7 + $0x192c] ss:$16 sps:$4 sm:$0xff]  }
 0x34f   : > { %6556 = vmatpush1.bf16.msra.mxu1 %v9013_v41  ;;  %6582 = vmatprep.subr.bf16.mxu0 %v9024_v48  ;;  %v9088_v41 = vld [vmem:[%s9332_s7 + $0x1a08] ss:$16 sps:$4 sm:$0xff]  }
 0x350   : > { %6557 = vmatprep.subr.bf16.mxu1 %v9021_v15  ;;  %v6278_v21 = vpop.f32.mrb[32].mxu0  ;;  %v9096_v15 = vld [vmem:[%s9332_s7 + $0x1a2c] ss:$16 sps:$4 sm:$0xff]   ;;  %v9091_v48 = vld [vmem:[%s9332_s7 + $0x1928] ss:$16 sps:$4 sm:$0xff]  }
 0x351   : > { %v10379_v24 = vadd.f32 %v6278_v21, %v10339_v62  ;;  %v6280_v22 = vpop.f32.mrb[33].mxu0  ;;  %v9049_v62 = vld [vmem:[%s9332_s7 + $0x1748] ss:$16 sps:$4 sm:$0xff]   ;;  %v9105_v21 = vld [vmem:[%s9332_s7 + $0x196c] ss:$16 sps:$4 sm:$0xff]  }
 0x352   : > { %v10382_v27 = vadd.f32 %v6280_v22, %v10342_v12  ;;  %v6282_v28 = vpop.f32.mrb[34].mxu0  ;;  %6583 = vmatpush1.bf16.msra.mxu0 %v9022_v16  ;;  %v9060_v12 = vld [vmem:[%s9332_s7 + $0x186c] ss:$16 sps:$4 sm:$0xff]   ;;  %v9103_v22 = vld [vmem:[%s9332_s7 + $0x1968] ss:$16 sps:$4 sm:$0xff]  }
 0x353   : > { %6558 = vmatpush1.bf16.msra.mxu1 %v9019_v40  ;;  %v6283_v31 = vpop.f32.mrb[35].mxu0  ;;  %6584 = vmatprep.subr.bf16.mxu0 %v9030_v20  ;;  %v9094_v40 = vld [vmem:[%s9332_s7 + $0x1a28] ss:$16 sps:$4 sm:$0xff]   ;;  %v9099_v16 = vld [vmem:[%s9332_s7 + $0x194c] ss:$16 sps:$4 sm:$0xff]  }
 0x354   : > { %6559 = vmatprep.subr.bf16.mxu1 %v9027_v19  ;;  %v9102_v19 = vld [vmem:[%s9332_s7 + $0x1a4c] ss:$16 sps:$4 sm:$0xff]   ;;  %v9097_v20 = vld [vmem:[%s9332_s7 + $0x1948] ss:$16 sps:$4 sm:$0xff]  }
 0x355   : > { %v9114_v28 = vld [vmem:[%s9332_s7 + $0x1a8c] ss:$16 sps:$4 sm:$0xff]  }
 0x356   : > { %6585 = vmatpush1.bf16.msra.mxu0 %v9028_v49  ;;  %v9112_v49 = vld [vmem:[%s9332_s7 + $0x1a88] ss:$16 sps:$4 sm:$0xff]   ;;  %v9117_v31 = vld [vmem:[%s9332_s7 + $0x19ac] ss:$16 sps:$4 sm:$0xff]  }
 0x357   : > { %6560 = vmatpush1.bf16.msra.mxu1 %v9025_v29  ;;  %6586 = vmatprep.subr.bf16.mxu0 %v9036_v33  ;;  %v9109_v29 = vld [vmem:[%s9332_s7 + $0x1988] ss:$16 sps:$4 sm:$0xff]  }
 0x358   : > { %6561 = vmatprep.subr.bf16.mxu1 %v9033_v32  ;;  %v9120_v32 = vld [vmem:[%s9332_s7 + $0x1aac] ss:$16 sps:$4 sm:$0xff]   ;;  %v9115_v33 = vld [vmem:[%s9332_s7 + $0x19a8] ss:$16 sps:$4 sm:$0xff]  }
 0x35a   : > { %6587 = vmatpush1.bf16.msra.mxu0 %v9034_v55  ;;  %v9123_v55 = vld [vmem:[%s9332_s7 + $0x19cc] ss:$16 sps:$4 sm:$0xff]  }
 0x35b   : > { %6562 = vmatpush1.bf16.msra.mxu1 %v9031_v39  ;;  %6588 = vmatprep.subr.bf16.mxu0 %v9039_v51  ;;  %v9118_v39 = vld [vmem:[%s9332_s7 + $0x1aa8] ss:$16 sps:$4 sm:$0xff]   ;;  %v9126_v51 = vld [vmem:[%s9332_s7 + $0x1acc] ss:$16 sps:$4 sm:$0xff]  }
 0x35c   : > { %6613 = vmatprep.subr.bf16.mxu1 %v9042_v43 }
 0x35e   : > { %6564 = vmatmul.mubr.bf16.vlgmr.msra.gmra.mrb[48].mxu1 %v9882_v47  ;;  %6589 = vmatpush1.bf16.msra.mxu0 %v9037_v44  ;;  %v9052_v47 = vld [vmem:[%s9332_s7 + $0x1848] ss:$16 sps:$4 sm:$0xff]  }
 0x35f   : > { %6614 = vmatpush1.bf16.msra.mxu1 %v9040_v18  ;;  %6590 = vmatprep.subr.bf16.mxu0 %v9045_v23 }
 0x360   : > { %6615 = vmatprep.subr.bf16.mxu1 %v9048_v54  ;;  %6645 = vmatprep.mubr.bf16.mxu1 %v9892_v56  ;;  %v9063_v56 = vld [vmem:[%s9332_s7 + $0x178c] ss:$16 sps:$4 sm:$0xff]  }
 0x362   : > { %6591 = vmatpush1.bf16.msra.mxu0 %v9043_v46  ;;  %v9121_v46 = vld [vmem:[%s9332_s7 + $0x19c8] ss:$16 sps:$4 sm:$0xff]  }
 0x363   : > { %6616 = vmatpush1.bf16.msra.mxu1 %v9046_v36  ;;  %6592 = vmatprep.subr.bf16.mxu0 %v9051_v45  ;;  %v9124_v36 = vld [vmem:[%s9332_s7 + $0x1ac8] ss:$16 sps:$4 sm:$0xff]  }
 0x364   : > { %6617 = vmatprep.subr.bf16.mxu1 %v9054_v26  ;;  %v9129_v26 = vld [vmem:[%s9332_s7 + $0x19ec] ss:$16 sps:$4 sm:$0xff]  }
 0x366   : > { %6593 = vmatpush1.bf16.msra.mxu0 %v9049_v62  ;;  %v9132_v62 = vld [vmem:[%s9332_s7 + $0x1aec] ss:$16 sps:$4 sm:$0xff]  }
 0x367   : > { %6618 = vmatpush1.bf16.msra.mxu1 %v9052_v47  ;;  %6594 = vmatprep.subr.bf16.mxu0 %v9057_v58  ;;  %v9127_v47 = vld [vmem:[%s9332_s7 + $0x19e8] ss:$16 sps:$4 sm:$0xff]  }
 0x368   : > { %6619 = vmatprep.subr.bf16.mxu1 %v9060_v12  ;;  %v9130_v58 = vld [vmem:[%s9332_s7 + $0x1ae8] ss:$16 sps:$4 sm:$0xff]  }
 0x369   : > { %v9133_v12 = vld [vmem:[%s9342_s6 + $0x68] ss:$0 sps:$4 sm:$0xff]  }
 0x36a   : > { %6595 = vmatpush1.bf16.msra.mxu0 %v9055_v61 }
 0x36b   : > { %6620 = vmatpush1.bf16.msra.mxu1 %v9058_v0  ;;  %6596 = vmatprep.subr.bf16.mxu0 %v9063_v56 }
 0x36c   : > { %6621 = vmatprep.subr.bf16.mxu1 %v9066_v37 }
 0x36e   : > { %6597 = vmatpush1.bf16.msra.mxu0 %v9061_v1 }
 0x36f   : > { %6622 = vmatpush1.bf16.msra.mxu1 %v9064_v8  ;;  %6598 = vmatprep.subr.bf16.mxu0 %v9069_v42 }
 0x370   : > { %6623 = vmatprep.subr.bf16.mxu1 %v9072_v17 }
 0x371   : > { %v6319_v5 = vpop.f32.mrb[36].mxu1 }
 0x372   : > { %v10419_v6 = vadd.f32 %v6319_v5, %v10379_v24  ;;  %v6321_v25 = vpop.f32.mrb[37].mxu1  ;;  %6599 = vmatpush1.bf16.msra.mxu0 %v9067_v2  ;;  %v9108_v24 = vld [vmem:[%s9332_s7 + $0x1a6c] ss:$16 sps:$4 sm:$0xff]  }
 0x373   : > { %v10422_v38 = vadd.f32 %v6321_v25, %v10382_v27  ;;  %v6323_v9 = vpop.f32.mrb[38].mxu1  ;;  %6624 = vmatpush1.bf16.msra.mxu1 %v9070_v3  ;;  %6600 = vmatprep.subr.bf16.mxu0 %v9075_v4  ;;  %v9106_v27 = vld [vmem:[%s9332_s7 + $0x1a68] ss:$16 sps:$4 sm:$0xff]  }
 0x374   : > { %v6324_v7 = vpop.f32.mrb[39].mxu1  ;;  %6625 = vmatprep.subr.bf16.mxu1 %v9078_v35 }
 0x376   : > { %6601 = vmatpush1.bf16.msra.mxu0 %v9073_v10 }
 0x377   : > { %6626 = vmatpush1.bf16.msra.mxu1 %v9076_v11  ;;  %6602 = vmatprep.subr.bf16.mxu0 %v9081_v50 }
 0x378   : > { %6627 = vmatprep.subr.bf16.mxu1 %v9084_v60 }
 0x37a   : > { %6603 = vmatpush1.bf16.msra.mxu0 %v9079_v52 }
 0x37b   : > { %6628 = vmatpush1.bf16.msra.mxu1 %v9082_v13  ;;  %6654 = vmatprep.subr.bf16.mxu0 %v9090_v59 }
 0x37c   : > { %6629 = vmatprep.subr.bf16.mxu1 %v9087_v14 }
 0x37d   : > { %6605 = vmatmul.mubr.bf16.vlgmr.msra.gmra.mrb[48].mxu0 %v9886_v53  ;;  %v9100_v53 = vld [vmem:[%s9332_s7 + $0x1a48] ss:$16 sps:$4 sm:$0xff]  }
 0x37e   : > { %6655 = vmatpush1.bf16.msra.mxu0 %v9088_v41  ;;  %6686 = vmatprep.mubr.bf16.mxu0 %v9220_v63  ;;  %v9111_v63 = vld [vmem:[%s9332_s7 + $0x198c] ss:$16 sps:$4 sm:$0xff]  }
 0x37f   : > { %6630 = vmatpush1.bf16.msra.mxu1 %v9085_v30  ;;  %6656 = vmatprep.subr.bf16.mxu0 %v9096_v15 }
 0x380   : > { %6631 = vmatprep.subr.bf16.mxu1 %v9093_v34 }
 0x382   : > { %6657 = vmatpush1.bf16.msra.mxu0 %v9094_v40 }
 0x383   : > { %6632 = vmatpush1.bf16.msra.mxu1 %v9091_v48  ;;  %6658 = vmatprep.subr.bf16.mxu0 %v9102_v19 }
 0x384   : > { %6633 = vmatprep.subr.bf16.mxu1 %v9099_v16 }
 0x386   : > { %6659 = vmatpush1.bf16.msra.mxu0 %v9100_v53 }
 0x387   : > { %6634 = vmatpush1.bf16.msra.mxu1 %v9097_v20  ;;  %6660 = vmatprep.subr.bf16.mxu0 %v9108_v24 }
 0x388   : > { %6635 = vmatprep.subr.bf16.mxu1 %v9105_v21 }
 0x38a   : > { %6661 = vmatpush1.bf16.msra.mxu0 %v9106_v27 }
 0x38b   : > { %6636 = vmatpush1.bf16.msra.mxu1 %v9103_v22  ;;  %6662 = vmatprep.subr.bf16.mxu0 %v9114_v28 }
 0x38c   : > { %6637 = vmatprep.subr.bf16.mxu1 %v9111_v63  ;;  %v252_v63 = vld [vmem:[#allocation2 + $0x10] sm:$0xff] }
 0x38e   : > { %6663 = vmatpush1.bf16.msra.mxu0 %v9112_v49 }
 0x38f   : > { %6638 = vmatpush1.bf16.msra.mxu1 %v9109_v29  ;;  %6664 = vmatprep.subr.bf16.mxu0 %v9120_v32  ;;  %v253_v32 = vld [vmem:[#allocation2 + $0x18] sm:$0xff] }
 0x390   : > { %6639 = vmatprep.subr.bf16.mxu1 %v9117_v31  ;;  %v6360_v43 = vpop.f32.mrb[36].mxu0 }
 0x391   : > { %v6361_v44 = vadd.f32 %v6360_v43, %v10419_v6  ;;  %v6362_v18 = vpop.f32.mrb[37].mxu0 }
 0x392   : > { %v6363_v23 = vadd.f32 %v6362_v18, %v10422_v38  ;;  %v6364_v54 = vpop.f32.mrb[38].mxu0  ;;  %6665 = vmatpush1.bf16.msra.mxu0 %v9118_v39 }
 0x393   : > { %6640 = vmatpush1.bf16.msra.mxu1 %v9115_v33  ;;  %v6365_v45 = vpop.f32.mrb[39].mxu0  ;;  %6666 = vmatprep.subr.bf16.mxu0 %v9126_v51  ;;  %v6707_v54 = vld [vmem:[#allocation2] sm:$0xff] (!%p7742_p7) }
 0x394   : > { %6641 = vmatprep.subr.bf16.mxu1 %v9123_v55 }
 0x396   : > { %6667 = vmatpush1.bf16.msra.mxu0 %v9124_v36 }
 0x397   : > { %6642 = vmatpush1.bf16.msra.mxu1 %v9121_v46  ;;  %6668 = vmatprep.subr.bf16.mxu0 %v9132_v62  ;;  %v6708_v62 = vld [vmem:[#allocation2 + $0x8] sm:$0xff] (!%p7742_p7) }
 0x398   : > { %6643 = vmatprep.subr.bf16.mxu1 %v9129_v26 }
 0x39a   : > { %6669 = vmatpush1.bf16.msra.mxu0 %v9130_v58 }
 0x39b   : > { %6644 = vmatpush1.bf16.msra.mxu1 %v9127_v47 }
 0x39d   : > { %6687 = vmatmul.mubr.bf16.vlgmr.msra.gmra.mrb[52].mxu0 %v9133_v12 }
 0x39e   : > { %6646 = vmatmul.mubr.bf16.vlgmr.msra.gmra.mrb[52].mxu1 %v9970_v57 }
 0x3b1   : > { %v6401_v61 = vpop.f32.mrb[40].mxu1 }
 0x3b2   : > { %v6402_v0 = vadd.f32 %v6401_v61, %v6361_v44  ;;  %v6403_v56 = vpop.f32.mrb[41].mxu1  ;;  %v6713_v44 = vlaneseq (!%p7742_p7) }
 0x3b3   : > { %v6404_v37 = vadd.f32 %v6403_v56, %v6363_v23  ;;  %v6405_v1 = vpop.f32.mrb[42].mxu1  ;;  %v6711_v23 = vld [vmem:[%s10504_s2] sm:$0xf] (!%p7742_p7) }
 0x3b4   : > { %v6406_v8 = vpop.f32.mrb[43].mxu1  ;;  %v6714_v18 = vshrl.u32 (!%p7742_p7), %v6713_v44, 7 }
 0x3b6   : > { %v6715_v46 = vsub.s32 (!%p7742_p7), 0, %v6714_v18  ;;  %v6719_v36 = vsub.s32 (!%p7742_p7), 1, %v6714_v18  ;;  %v6723_v45 = vsub.s32 (!%p7742_p7), 2, %v6714_v18  ;;  %v6727_v26 = vsub.s32 (!%p7742_p7), 3, %v6714_v18 }
 0x3b8   : > { %v6716_v12 = vrot.slane (!%p7742_p7), %v6711_v23, %v6715_v46  ;;  %v6720_v61 = vrot.slane (!%p7742_p7), %v6711_v23, %v6719_v36  ;;  %v6728_v56 = vrot.slane (!%p7742_p7), %v6711_v23, %v6727_v26 }
 0x3ba   : > { %v6734_v1 = vadd.f32 (!%p7742_p7), %v6720_v61, %v6708_v62 }
 0x3bc   : > { %vm6738_vm1 = vcmp.ge.f32.partialorder (!%p7742_p7), %v6734_v1, 0.0 }
 0x3d0   : > { %v6442_v42 = vpop.f32.mrb[40].mxu0 }
 0x3d1   : > { %v6443_v17 = vadd.f32 %v6442_v42, %v6402_v0  ;;  %v6444_v2 = vpop.f32.mrb[41].mxu0  ;;  %v6724_v0 = vrot.slane (!%p7742_p7), %v6711_v23, %v6723_v45 }
 0x3d2   : > { %v6445_v3 = vadd.f32 %v6444_v2, %v6404_v37  ;;  %v6446_v4 = vpop.f32.mrb[42].mxu0  ;;  %v6733_v37 = vadd.f32 (!%p7742_p7), %v6716_v12, %v6707_v54  ;;  %v6742_v2 = vmul.f32 (!%p7742_p7), 0.01, %v6734_v1 }
 0x3d3   : > { %v6447_v35 = vpop.f32.mrb[43].mxu0 }
 0x3d4   : > { %vm6737_vm0 = vcmp.ge.f32.partialorder (!%p7742_p7), %v6733_v37, 0.0 }
 0x3f1   : > { %v6483_v5 = vpop.f32.mrb[44].mxu1 }
 0x3f2   : > { %v6484_v6 = vadd.f32 %v6483_v5, %v6443_v17  ;;  %v6485_v25 = vpop.f32.mrb[45].mxu1  ;;  %v6741_v17 = vmul.f32 (!%p7742_p7), 0.01, %v6733_v37  ;;  %v6746_v5 = vsel (!%p7742_p7), %vm6738_vm1, %v6734_v1, %v6742_v2 }
 0x3f3   : > { %v6486_v38 = vadd.f32 %v6485_v25, %v6445_v3  ;;  %v6487_v9 = vpop.f32.mrb[46].mxu1  ;;  %6750 = vst [vmem:[%s10505_s3 + $0x8] sm:$0xff] (!%p7742_p7), %v6746_v5 }
 0x3f4   : > { %v6488_v57 = vpop.f32.mrb[47].mxu1  ;;  %v6745_v35 = vsel (!%p7742_p7), %vm6737_vm0, %v6733_v37, %v6741_v17 }
 0x3f5   : > { %6749 = vst [vmem:[%s10505_s3] sm:$0xff] (!%p7742_p7), %v6745_v35 }
 0x410   : > { %v6524_v10 = vpop.f32.mrb[44].mxu0 }
 0x411   : > { %v6525_v11 = vadd.f32 %v6524_v10, %v6484_v6  ;;  %v6526_v7 = vpop.f32.mrb[45].mxu0 }
 0x412   : > { %v6527_v50 = vadd.f32 %v6526_v7, %v6486_v38  ;;  %v6528_v60 = vpop.f32.mrb[46].mxu0 }
 0x413   : > { %v6529_v52 = vpop.f32.mrb[47].mxu0 }
 0x431   : > { %v6565_v13 = vpop.f32.mrb[48].mxu1 }
 0x432   : > { %v6566_v14 = vadd.f32 %v6565_v13, %v6525_v11  ;;  %v6567_v59 = vpop.f32.mrb[49].mxu1 }
 0x433   : > { %v6568_v30 = vadd.f32 %v6567_v59, %v6527_v50  ;;  %v6569_v41 = vpop.f32.mrb[50].mxu1 }
 0x434   : > { %v6570_v34 = vpop.f32.mrb[51].mxu1 }
 0x450   : > { %v6606_v15 = vpop.f32.mrb[48].mxu0 }
 0x451   : > { %v6607_v48 = vadd.f32 %v6606_v15, %v6566_v14  ;;  %v6608_v40 = vpop.f32.mrb[49].mxu0 }
 0x452   : > { %v6609_v16 = vadd.f32 %v6608_v40, %v6568_v30  ;;  %v6610_v19 = vpop.f32.mrb[50].mxu0 }
 0x453   : > { %v6611_v20 = vpop.f32.mrb[51].mxu0 }
 0x470   : > { %v6688_v21 = vpop.f32.mrb[52].mxu0 }
 0x471   : > { %v6647_v53 = vpop.f32.mrb[52].mxu1  ;;  %v6690_v27 = vpop.f32.mrb[53].mxu0 }
 0x472   : > { %v6648_v24 = vadd.f32 %v6647_v53, %v6607_v48  ;;  %v6649_v22 = vpop.f32.mrb[53].mxu1  ;;  %v6692_v49 = vpop.f32.mrb[54].mxu0 }
 0x473   : > { %v6650_v28 = vadd.f32 %v6649_v22, %v6609_v16  ;;  %v6651_v29 = vpop.f32.mrb[54].mxu1  ;;  %v6693_v39 = vpop.f32.mrb[55].mxu0  ;;  %6706 = sbr.rel (%p7742_p7) target bundleno = 1159 (0x487), region = 44 }
 0x474   : > { %v6689_v31 = vadd.f32 %v6688_v21, %v6648_v24  ;;  %v6652_v33 = vpop.f32.mrb[55].mxu1 }
 0x475   : > { %v6691_v55 = vadd.f32 %v6690_v27, %v6650_v28 }
 0x476   : > { %v6697_v51 = vadd.f32 %v6689_v31, %v252_v63 }
 0x477   : > { %v6698_v43 = vadd.f32 %v6691_v55, %v253_v32 }
 0x478   : > { %6701 = vst [vmem:[#allocation2 + $0x10] sm:$0xff] %v6697_v51 }
 0x479   : > { %6702 = vst [vmem:[#allocation2 + $0x18] sm:$0xff] %v6698_v43 }
 0x47f   : > { %v6709_v47 = vld [vmem:[#allocation2 + $0x10] sm:$0xff] }
 0x480   : > { %v6710_v58 = vld [vmem:[#allocation2 + $0x18] sm:$0xff]  ;;  %v6735_v8 = vadd.f32 %v6724_v0, %v6709_v47 }
 0x481   : > { %v6736_v42 = vadd.f32 %v6728_v56, %v6710_v58 }
 0x482   : > { %vm6739_vm2 = vcmp.ge.f32.partialorder %v6735_v8, 0.0  ;;  %v6743_v3 = vmul.f32 0.01, %v6735_v8 }
 0x483   : > { %vm6740_vm3 = vcmp.ge.f32.partialorder %v6736_v42, 0.0  ;;  %v6744_v4 = vmul.f32 0.01, %v6736_v42 }
 0x484   : > { %v6747_v6 = vsel %vm6739_vm2, %v6735_v8, %v6743_v3 }
 0x485   : > { %v6748_v25 = vsel %vm6740_vm3, %v6736_v42, %v6744_v4  ;;  %6751 = vst [vmem:[%s10505_s3 + $0x10] sm:$0xff] %v6747_v6 }
 0x486   : > { %6752 = vst [vmem:[%s10505_s3 + $0x18] sm:$0xff] %v6748_v25 }
 0x487 PF: > { %s16_s17 = sadd.s32 1, %s9214_s17   ;;  %s10508_s12 = smov %s9198_s13 }
 0x488   : > { %p13_p5 = scmp.ge.s32.totalorder %s16_s17, 19   ;;  %s10509_s13 = smov %s9202_s14 }
 0x489   : > { %s10510_s14 = smov %s9286_s23  ;;  %s10511_s15 = smov %s9210_s16 }
 0x48a   : > { %s10512_s16 = smov %s10514_s19  ;;  %15 = sbr.rel (!%p13_p5) target bundleno = 4 (0x4), region = 83 }
 0x491   :  { %6774 = vsyncpa [#allocation4], 1 }
 0x492   :  { %6776 = vsyncpa [#allocation4 + $0x1], 1 }

// kernel: linear_unet_forward.3
= control target key start
LH: loop header
LB: loop body
LE: loop exit
PB: predicated region body
PF: predicated region fallthrough
CT: control target
= control target key end

     0   :  { %vm4272_vm2 = vmmov 0   ;;  %vm984_vm5 = vcmask 523264   ;;  %s5606_s1 = inlined_call_operand.vmem [shape: bf16[512,256], index: 1, kind: input, shape index: {}]   ;;  %s5607_s0 = inlined_call_operand.vmem [shape: f32[8,512], index: 0, kind: input, shape index: {}]   ;;  %s5608_s3 = inlined_call_operand.vmem [shape: bf16[256,128], index: 3, kind: input, shape index: {}]   ;;  %s5609_s5 = inlined_call_operand.vmem [shape: bf16[128,64], index: 5, kind: input, shape index: {}]   ;;  %s5610_s2 = inlined_call_operand.vmem [shape: f32[1,256], index: 2, kind: input, shape index: {}]   ;;  %s5611_s8 = inlined_call_operand.vmem [shape: bf16[128,128], index: 8, kind: input, shape index: {}]   ;;  %s5612_s7 = inlined_call_operand.vmem [shape: bf16[64,128], index: 7, kind: input, shape index: {}]   ;;  %s5613_s4 = inlined_call_operand.vmem [shape: f32[1,128], index: 4, kind: input, shape index: {}]   ;;  %s5614_s11 = inlined_call_operand.vmem [shape: bf16[256,256], index: 11, kind: input, shape index: {}]   ;;  %s5615_s10 = inlined_call_operand.vmem [shape: bf16[128,256], index: 10, kind: input, shape index: {}]   ;;  %s5616_s6 = inlined_call_operand.vmem [shape: f32[1,64], index: 6, kind: input, shape index: {}]   ;;  %s5617_s14 = inlined_call_operand.vmem [shape: bf16[512,512], index: 14, kind: input, shape index: {}]   ;;  %s5618_s9 = inlined_call_operand.vmem [shape: f32[1,128], index: 9, kind: input, shape index: {}]   ;;  %s5619_s13 = inlined_call_operand.vmem [shape: bf16[256,512], index: 13, kind: input, shape index: {}]   ;;  %s5620_s12 = inlined_call_operand.vmem [shape: f32[1,256], index: 12, kind: input, shape index: {}]   ;;  %s5621_s16 = inlined_call_operand.vmem [shape: bf16[512,128], index: 16, kind: input, shape index: {}]   ;;  %s5622_s15 = inlined_call_operand.vmem [shape: f32[1,512], index: 15, kind: input, shape index: {}]   ;;  %s5623_s17 = inlined_call_operand.vmem [shape: f32[1,128], index: 17, kind: input, shape index: {}]   ;;  %s5624_s18 = inlined_call_operand.vmem [shape: f32[8,128], index: 18, kind: output, shape index: {}]  }
   0x1   :  { %5628 = sst [smem:[#allocation2_spill]] %s5606_s1 }
   0x2   :  { %5629 = sst [smem:[#allocation3_spill]] %s5607_s0  ;;  %s5631_s29 = sld [smem:[#allocation2_spill]] }
   0x3   :  { %5630 = sst [smem:[#allocation4_spill]] %s5608_s3  ;;  %s5632_s27 = sld [smem:[#allocation3_spill]] }
   0x4   :  { %s5633_s28 = sld [smem:[#allocation4_spill]] }
   0x8   :  { %v3747_v0 = vld [vmem:[%s5631_s29 + $0x4] ss:$8 sps:$4 sm:$0xff]   ;;  %v3749_v1 = vld [vmem:[%s5631_s29] ss:$8 sps:$4 sm:$0xff]   ;;  %v3750_v2 = vld [vmem:[%s5631_s29 + $0x14] ss:$8 sps:$4 sm:$0xff]  }
   0x9   :  { %464 = vmatprep.subr.bf16.mxu0 %v3747_v0  ;;  %v3752_v3 = vld [vmem:[%s5631_s29 + $0x10] ss:$8 sps:$4 sm:$0xff]   ;;  %v3753_v4 = vld [vmem:[%s5631_s29 + $0x24] ss:$8 sps:$4 sm:$0xff]   ;;  %v3755_v5 = vld [vmem:[%s5631_s29 + $0x20] ss:$8 sps:$4 sm:$0xff]  }
   0xa   :  { %465 = vmatpush1.bf16.msra.mxu0 %v3749_v1  ;;  %v3756_v6 = vld [vmem:[%s5631_s29 + $0x34] ss:$8 sps:$4 sm:$0xff]   ;;  %v3758_v7 = vld [vmem:[%s5631_s29 + $0x30] ss:$8 sps:$4 sm:$0xff]   ;;  %v3759_v8 = vld [vmem:[%s5631_s29 + $0x44] ss:$8 sps:$4 sm:$0xff]  }
   0xb   :  { %466 = vmatprep.subr.bf16.mxu0 %v3750_v2  ;;  %v3761_v9 = vld [vmem:[%s5631_s29 + $0x40] ss:$8 sps:$4 sm:$0xff]   ;;  %v3762_v10 = vld [vmem:[%s5631_s29 + $0x54] ss:$8 sps:$4 sm:$0xff]   ;;  %v3764_v11 = vld [vmem:[%s5631_s29 + $0x50] ss:$8 sps:$4 sm:$0xff]  }
   0xc   :  { %v3765_v12 = vld [vmem:[%s5631_s29 + $0x64] ss:$8 sps:$4 sm:$0xff]   ;;  %v3767_v15 = vld [vmem:[%s5631_s29 + $0x60] ss:$8 sps:$4 sm:$0xff]   ;;  %v3768_v16 = vld [vmem:[%s5631_s29 + $0x74] ss:$8 sps:$4 sm:$0xff]  }
   0xd   :  { %v61_v13 = vld [vmem:[%s5632_s27 + $0x8] sm:$0xff]  ;;  %v3770_v17 = vld [vmem:[%s5631_s29 + $0x70] ss:$8 sps:$4 sm:$0xff]   ;;  %v3774_v20 = vld [vmem:[%s5631_s29 + $0x94] ss:$8 sps:$4 sm:$0xff]  }
   0xe   :  { %467 = vmatpush1.bf16.msra.mxu0 %v3752_v3  ;;  %v4411_v14 = vpack.c.bf16 %v61_v13, %v61_v13  ;;  %v3771_v18 = vld [vmem:[%s5631_s29 + $0x84] ss:$8 sps:$4 sm:$0xff]   ;;  %v3773_v19 = vld [vmem:[%s5631_s29 + $0x80] ss:$8 sps:$4 sm:$0xff]   ;;  %v3776_v21 = vld [vmem:[%s5631_s29 + $0x90] ss:$8 sps:$4 sm:$0xff]  }
   0xf   :  { %468 = vmatprep.subr.bf16.mxu0 %v3753_v4  ;;  %v3777_v22 = vld [vmem:[%s5631_s29 + $0xa4] ss:$8 sps:$4 sm:$0xff]   ;;  %v3779_v23 = vld [vmem:[%s5631_s29 + $0xa0] ss:$8 sps:$4 sm:$0xff]   ;;  %v3780_v24 = vld [vmem:[%s5631_s29 + $0xb4] ss:$8 sps:$4 sm:$0xff]  }
  0x10   :  { %496 = vmatprep.mubr.bf16.mxu0 %v4411_v14  ;;  %v3782_v25 = vld [vmem:[%s5631_s29 + $0xb0] ss:$8 sps:$4 sm:$0xff]   ;;  %v3783_v26 = vld [vmem:[%s5631_s29 + $0xc4] ss:$8 sps:$4 sm:$0xff]   ;;  %v3785_v28 = vld [vmem:[%s5631_s29 + $0xc0] ss:$8 sps:$4 sm:$0xff]  }
  0x11   :  { %v3843_v27 = vld [vmem:[%s5633_s28 + $0x40] sm:$0xff]   ;;  %v3786_v30 = vld [vmem:[%s5631_s29 + $0xd4] ss:$8 sps:$4 sm:$0xff]   ;;  %v3845_v31 = vld [vmem:[%s5633_s28 + $0x48] sm:$0xff]  }
  0x12   :  { %469 = vmatpush1.bf16.msra.mxu0 %v3755_v5  ;;  %v3844_v29 = vld [vmem:[%s5633_s28] sm:$0xff]   ;;  %3597 = vmatprep.subr.bf16.mxu1 %v3843_v27  ;;  %v3846_v32 = vld [vmem:[%s5633_s28 + $0x8] sm:$0xff]   ;;  %v3847_v33 = vld [vmem:[%s5633_s28 + $0x50] sm:$0xff]  }
  0x13   :  { %470 = vmatprep.subr.bf16.mxu0 %v3756_v6  ;;  %3598 = vmatpush3.bf16.msra.mxu1 %v3844_v29  ;;  %v3788_v34 = vld [vmem:[%s5631_s29 + $0xd0] ss:$8 sps:$4 sm:$0xff]   ;;  %v3789_v35 = vld [vmem:[%s5631_s29 + $0xe4] ss:$8 sps:$4 sm:$0xff]   ;;  %v3791_v38 = vld [vmem:[%s5631_s29 + $0xe0] ss:$8 sps:$4 sm:$0xff]  }
  0x14   :  { %3599 = vmatprep.subr.bf16.mxu1 %v3845_v31  ;;  %v3848_v36 = vld [vmem:[%s5633_s28 + $0x10] sm:$0xff]   ;;  %v3849_v37 = vld [vmem:[%s5633_s28 + $0x58] sm:$0xff]   ;;  %v3851_v41 = vld [vmem:[%s5633_s28 + $0x60] sm:$0xff]  }
  0x15   :  { %v3792_v39 = vld [vmem:[%s5631_s29 + $0xf4] ss:$8 sps:$4 sm:$0xff]   ;;  %v3794_v42 = vld [vmem:[%s5631_s29 + $0xf0] ss:$8 sps:$4 sm:$0xff]   ;;  %v60_v43 = vld [vmem:[%s5632_s27] sm:$0xff] }
  0x16   :  { %471 = vmatpush1.bf16.msra.mxu0 %v3758_v7  ;;  %v3850_v40 = vld [vmem:[%s5633_s28 + $0x18] sm:$0xff]   ;;  %v3852_v44 = vld [vmem:[%s5633_s28 + $0x20] sm:$0xff]   ;;  %v3853_v47 = vld [vmem:[%s5633_s28 + $0x68] sm:$0xff]   ;;  %v4513_v48 = vpack.c.bf16 %v60_v43, %v60_v43 }
  0x17   :  { %472 = vmatprep.subr.bf16.mxu0 %v3759_v8  ;;  %3600 = vmatpush3.bf16.msra.mxu1 %v3846_v32  ;;  %v3797_v45 = vld [vmem:[%s5631_s29 + $0x104] ss:$8 sps:$4 sm:$0xff]   ;;  %v63_v46 = vld [vmem:[%s5632_s27 + $0x18] sm:$0xff]  ;;  %v3795_v49 = vld [vmem:[%s5631_s29 + $0x100] ss:$8 sps:$4 sm:$0xff]  }
  0x18   :  { %3601 = vmatprep.subr.bf16.mxu1 %v3847_v33  ;;  %v4518_v50 = vpack.c.bf16 %v63_v46, %v63_v46  ;;  %v3800_v51 = vld [vmem:[%s5631_s29 + $0x114] ss:$8 sps:$4 sm:$0xff]   ;;  %v3854_v52 = vld [vmem:[%s5633_s28 + $0x28] sm:$0xff]   ;;  %v3798_v53 = vld [vmem:[%s5631_s29 + $0x110] ss:$8 sps:$4 sm:$0xff]  }
  0x19   :  { %v3803_v54 = vld [vmem:[%s5631_s29 + $0x124] ss:$8 sps:$4 sm:$0xff]   ;;  %v3801_v55 = vld [vmem:[%s5631_s29 + $0x120] ss:$8 sps:$4 sm:$0xff]   ;;  %v3806_v56 = vld [vmem:[%s5631_s29 + $0x134] ss:$8 sps:$4 sm:$0xff]  }
  0x1a   :  { %473 = vmatpush1.bf16.msra.mxu0 %v3761_v9  ;;  %v3804_v57 = vld [vmem:[%s5631_s29 + $0x130] ss:$8 sps:$4 sm:$0xff]   ;;  %v3809_v58 = vld [vmem:[%s5631_s29 + $0x144] ss:$8 sps:$4 sm:$0xff]   ;;  %v3807_v59 = vld [vmem:[%s5631_s29 + $0x140] ss:$8 sps:$4 sm:$0xff]  }
  0x1b   :  { %474 = vmatprep.subr.bf16.mxu0 %v3762_v10  ;;  %3602 = vmatpush3.bf16.msra.mxu1 %v3848_v36  ;;  %v3812_v60 = vld [vmem:[%s5631_s29 + $0x154] ss:$8 sps:$4 sm:$0xff]   ;;  %v3810_v61 = vld [vmem:[%s5631_s29 + $0x150] ss:$8 sps:$4 sm:$0xff]   ;;  %v3815_v62 = vld [vmem:[%s5631_s29 + $0x164] ss:$8 sps:$4 sm:$0xff]  }
  0x1c   :  { %3603 = vmatprep.subr.bf16.mxu1 %v3849_v37  ;;  %v3813_v63 = vld [vmem:[%s5631_s29 + $0x160] ss:$8 sps:$4 sm:$0xff]   ;;  %v3818_v0 = vld [vmem:[%s5631_s29 + $0x174] ss:$8 sps:$4 sm:$0xff]   ;;  %v3816_v1 = vld [vmem:[%s5631_s29 + $0x170] ss:$8 sps:$4 sm:$0xff]  }
  0x1d   :  { %v3821_v2 = vld [vmem:[%s5631_s29 + $0x184] ss:$8 sps:$4 sm:$0xff]   ;;  %v3819_v3 = vld [vmem:[%s5631_s29 + $0x180] ss:$8 sps:$4 sm:$0xff]   ;;  %v3824_v4 = vld [vmem:[%s5631_s29 + $0x194] ss:$8 sps:$4 sm:$0xff]  }
  0x1e   :  { %475 = vmatpush1.bf16.msra.mxu0 %v3764_v11  ;;  %v3822_v5 = vld [vmem:[%s5631_s29 + $0x190] ss:$8 sps:$4 sm:$0xff]   ;;  %v3827_v6 = vld [vmem:[%s5631_s29 + $0x1a4] ss:$8 sps:$4 sm:$0xff]   ;;  %v3825_v7 = vld [vmem:[%s5631_s29 + $0x1a0] ss:$8 sps:$4 sm:$0xff]  }
  0x1f   :  { %476 = vmatprep.subr.bf16.mxu0 %v3765_v12  ;;  %3604 = vmatpush3.bf16.msra.mxu1 %v3850_v40  ;;  %v3830_v8 = vld [vmem:[%s5631_s29 + $0x1b4] ss:$8 sps:$4 sm:$0xff]   ;;  %v3828_v9 = vld [vmem:[%s5631_s29 + $0x1b0] ss:$8 sps:$4 sm:$0xff]   ;;  %v3833_v10 = vld [vmem:[%s5631_s29 + $0x1c4] ss:$8 sps:$4 sm:$0xff]  }
  0x20   :  { %3605 = vmatprep.subr.bf16.mxu1 %v3851_v41  ;;  %v3831_v11 = vld [vmem:[%s5631_s29 + $0x1c0] ss:$8 sps:$4 sm:$0xff]   ;;  %v3836_v12 = vld [vmem:[%s5631_s29 + $0x1d4] ss:$8 sps:$4 sm:$0xff]   ;;  %v3834_v13 = vld [vmem:[%s5631_s29 + $0x1d0] ss:$8 sps:$4 sm:$0xff]  }
  0x21   :  { %v132_v29 = vld [vmem:[%s5610_s2] sm:$0x3]  ;;  %v3860_v46 = vld [vmem:[%s5609_s5 + $0x8] sm:$0xff]  }
  0x22   :  { %477 = vmatpush1.bf16.msra.mxu0 %v3767_v15  ;;  %v3839_v15 = vld [vmem:[%s5631_s29 + $0x1e4] ss:$8 sps:$4 sm:$0xff]  }
  0x23   :  { %478 = vmatprep.subr.bf16.mxu0 %v3768_v16  ;;  %3606 = vmatpush3.bf16.msra.mxu1 %v3852_v44  ;;  %v3837_v16 = vld [vmem:[%s5631_s29 + $0x1e0] ss:$8 sps:$4 sm:$0xff]  }
  0x24   :  { %3607 = vmatprep.subr.bf16.mxu1 %v3853_v47  ;;  %v3859_v44 = vld [vmem:[%s5609_s5] sm:$0xff]   ;;  %v3861_v47 = vld [vmem:[%s5609_s5 + $0x10] sm:$0xff]  }
  0x26   :  { %479 = vmatpush1.bf16.msra.mxu0 %v3770_v17  ;;  %v3842_v17 = vld [vmem:[%s5631_s29 + $0x1f4] ss:$8 sps:$4 sm:$0xff]  }
  0x27   :  { %480 = vmatprep.subr.bf16.mxu0 %v3771_v18  ;;  %3608 = vmatpush3.bf16.msra.mxu1 %v3854_v52  ;;  %v3840_v18 = vld [vmem:[%s5631_s29 + $0x1f0] ss:$8 sps:$4 sm:$0xff]   ;;  %v3864_v52 = vld [vmem:[%s5609_s5 + $0x28] sm:$0xff]  }
  0x2a   :  { %481 = vmatpush1.bf16.msra.mxu0 %v3773_v19  ;;  %v62_v19 = vld [vmem:[%s5632_s27 + $0x10] sm:$0xff] }
  0x2b   :  { %482 = vmatprep.subr.bf16.mxu0 %v3774_v20  ;;  %v4618_v20 = vpack.c.bf16 %v62_v19, %v62_v19  ;;  %v3935_v19 = vld [vmem:[%s5615_s10 + $0x24] ss:$8 sps:$4 sm:$0xff]  }
  0x2e   :  { %483 = vmatpush1.bf16.msra.mxu0 %v3776_v21  ;;  %v3855_v21 = vld [vmem:[%s5633_s28 + $0x70] sm:$0xff]  }
  0x2f   :  { %484 = vmatprep.subr.bf16.mxu0 %v3777_v22  ;;  %v3856_v22 = vld [vmem:[%s5633_s28 + $0x30] sm:$0xff]   ;;  %3609 = vmatprep.subr.bf16.mxu1 %v3855_v21  ;;  %v3933_v21 = vld [vmem:[%s5615_s10 + $0x20] ss:$8 sps:$4 sm:$0xff]  }
  0x30   :  { %3610 = vmatpush3.bf16.msra.mxu1 %v3856_v22  ;;  %v3938_v22 = vld [vmem:[%s5615_s10 + $0x34] ss:$8 sps:$4 sm:$0xff]  }
  0x32   :  { %485 = vmatpush1.bf16.msra.mxu0 %v3779_v23  ;;  %v3857_v23 = vld [vmem:[%s5633_s28 + $0x78] sm:$0xff]  }
  0x33   :  { %486 = vmatprep.subr.bf16.mxu0 %v3780_v24  ;;  %v3858_v24 = vld [vmem:[%s5633_s28 + $0x38] sm:$0xff]   ;;  %3611 = vmatprep.subr.bf16.mxu1 %v3857_v23 }
  0x34   :  { %3612 = vmatpush3.bf16.msra.mxu1 %v3858_v24  ;;  %v3936_v23 = vld [vmem:[%s5615_s10 + $0x30] ss:$8 sps:$4 sm:$0xff]   ;;  %v3941_v24 = vld [vmem:[%s5615_s10 + $0x44] ss:$8 sps:$4 sm:$0xff]  }
  0x36   :  { %487 = vmatpush1.bf16.msra.mxu0 %v3782_v25  ;;  %v4271_v25 = vmov 0.0  }
  0x37   :  { %488 = vmatprep.subr.bf16.mxu0 %v3783_v26  ;;  %3686 = vmatprep.subr.bf16.mxu1 %v4271_v25  ;;  %v134_v26 = vlaneseq }
  0x39   :  { %v4634_v27 = vshrl.u32 %v134_v26, 7  ;;  %v3944_v26 = vld [vmem:[%s5615_s10 + $0x54] ss:$8 sps:$4 sm:$0xff]  }
  0x3a   :  { %489 = vmatpush1.bf16.msra.mxu0 %v3785_v28 }
  0x3b   :  { %490 = vmatprep.subr.bf16.mxu0 %v3786_v30  ;;  %v4637_v28 = vsub.s32 0, %v4634_v27  ;;  %v4643_v30 = vsub.s32 1, %v4634_v27 }
  0x3d   :  { %v137_v31 = vrot.slane %v132_v29, %v4637_v28  ;;  %v141_v32 = vrot.slane %v132_v29, %v4643_v30  ;;  %v3942_v29 = vld [vmem:[%s5615_s10 + $0x50] ss:$8 sps:$4 sm:$0xff]  }
  0x3e   :  { %491 = vmatpush1.bf16.msra.mxu0 %v3788_v34 }
  0x3f   :  { %492 = vmatprep.subr.bf16.mxu0 %v3789_v35 }
  0x42   :  { %493 = vmatpush1.bf16.msra.mxu0 %v3791_v38 }
  0x43   :  { %494 = vmatprep.subr.bf16.mxu0 %v3792_v39 }
  0x46   :  { %495 = vmatpush1.bf16.msra.mxu0 %v3794_v42 }
  0x47   :  { %505 = vmatprep.subr.bf16.mxu0 %v3797_v45 }
  0x49   :  { %497 = vmatmul.mubr.bf16.vlgmr.msra.gmra.mrb[0].mxu0 %v4513_v48 }
  0x4a   :  { %506 = vmatpush1.bf16.msra.mxu0 %v3795_v49  ;;  %537 = vmatprep.mubr.bf16.mxu0 %v4518_v50  ;;  %v3862_v49 = vld [vmem:[%s5609_s5 + $0x18] sm:$0xff]  }
  0x4b   :  { %507 = vmatprep.subr.bf16.mxu0 %v3800_v51  ;;  %v3863_v51 = vld [vmem:[%s5609_s5 + $0x20] sm:$0xff]  }
  0x4e   :  { %508 = vmatpush1.bf16.msra.mxu0 %v3798_v53  ;;  %v3865_v53 = vld [vmem:[%s5609_s5 + $0x30] sm:$0xff]  }
  0x4f   :  { %509 = vmatprep.subr.bf16.mxu0 %v3803_v54  ;;  %v3866_v54 = vld [vmem:[%s5609_s5 + $0x38] sm:$0xff]  }
  0x52   :  { %510 = vmatpush1.bf16.msra.mxu0 %v3801_v55 }
  0x53   :  { %511 = vmatprep.subr.bf16.mxu0 %v3806_v56  ;;  %v3284_v56 = vld [vmem:[%s5613_s4] ss:$0 sm:$0xff] }
  0x56   :  { %512 = vmatpush1.bf16.msra.mxu0 %v3804_v57 }
  0x57   :  { %513 = vmatprep.subr.bf16.mxu0 %v3809_v58 }
  0x5a   :  { %514 = vmatpush1.bf16.msra.mxu0 %v3807_v59 }
  0x5b   :  { %515 = vmatprep.subr.bf16.mxu0 %v3812_v60 }
  0x5e   :  { %516 = vmatpush1.bf16.msra.mxu0 %v3810_v61 }
  0x5f   :  { %517 = vmatprep.subr.bf16.mxu0 %v3815_v62 }
  0x62   :  { %518 = vmatpush1.bf16.msra.mxu0 %v3813_v63 }
  0x63   :  { %519 = vmatprep.subr.bf16.mxu0 %v3818_v0  ;;  %v3867_v0 = vld [vmem:[%s5611_s8] sm:$0xff]  }
  0x66   :  { %520 = vmatpush1.bf16.msra.mxu0 %v3816_v1 }
  0x67   :  { %521 = vmatprep.subr.bf16.mxu0 %v3821_v2  ;;  %v3868_v2 = vld [vmem:[%s5611_s8 + $0x8] sm:$0xff]  }
  0x6a   :  { %522 = vmatpush1.bf16.msra.mxu0 %v3819_v3  ;;  %v3869_v3 = vld [vmem:[%s5611_s8 + $0x10] sm:$0xff]  }
  0x6b   :  { %523 = vmatprep.subr.bf16.mxu0 %v3824_v4  ;;  %v3870_v4 = vld [vmem:[%s5611_s8 + $0x18] sm:$0xff]  }
  0x6e   :  { %524 = vmatpush1.bf16.msra.mxu0 %v3822_v5  ;;  %v3871_v5 = vld [vmem:[%s5611_s8 + $0x20] sm:$0xff]  }
  0x6f   :  { %525 = vmatprep.subr.bf16.mxu0 %v3827_v6  ;;  %v3872_v6 = vld [vmem:[%s5611_s8 + $0x28] sm:$0xff]  }
  0x72   :  { %526 = vmatpush1.bf16.msra.mxu0 %v3825_v7  ;;  %v3873_v7 = vld [vmem:[%s5611_s8 + $0x30] sm:$0xff]  }
  0x73   :  { %527 = vmatprep.subr.bf16.mxu0 %v3830_v8  ;;  %v3874_v8 = vld [vmem:[%s5611_s8 + $0x38] sm:$0xff]  }
  0x76   :  { %528 = vmatpush1.bf16.msra.mxu0 %v3828_v9  ;;  %v3875_v9 = vld [vmem:[%s5612_s7] sm:$0xff]  }
  0x77   :  { %529 = vmatprep.subr.bf16.mxu0 %v3833_v10  ;;  %v3876_v10 = vld [vmem:[%s5612_s7 + $0x8] sm:$0xff]  }
  0x7a   :  { %530 = vmatpush1.bf16.msra.mxu0 %v3831_v11  ;;  %v3877_v11 = vld [vmem:[%s5612_s7 + $0x10] sm:$0xff]  }
  0x7b   :  { %531 = vmatprep.subr.bf16.mxu0 %v3836_v12  ;;  %v3878_v12 = vld [vmem:[%s5612_s7 + $0x18] sm:$0xff]  }
  0x7e   :  { %532 = vmatpush1.bf16.msra.mxu0 %v3834_v13  ;;  %v3881_v13 = vld [vmem:[%s5614_s11 + $0x4] ss:$8 sps:$4 sm:$0xff]  }
  0x7f   :  { %533 = vmatprep.subr.bf16.mxu0 %v3839_v15  ;;  %v3927_v15 = vld [vmem:[%s5615_s10] ss:$8 sps:$4 sm:$0xff]  }
  0x82   :  { %534 = vmatpush1.bf16.msra.mxu0 %v3837_v16  ;;  %v3929_v16 = vld [vmem:[%s5615_s10 + $0x4] ss:$8 sps:$4 sm:$0xff]  }
  0x83   :  { %535 = vmatprep.subr.bf16.mxu0 %v3842_v17  ;;  %v3932_v17 = vld [vmem:[%s5615_s10 + $0x14] ss:$8 sps:$4 sm:$0xff]  }
  0x86   :  { %536 = vmatpush1.bf16.msra.mxu0 %v3840_v18  ;;  %v3930_v18 = vld [vmem:[%s5615_s10 + $0x10] ss:$8 sps:$4 sm:$0xff]  }
  0x87   :  { %1369 = vmatprep.subr.bf16.mxu0 %v3929_v16  ;;  %v3945_v16 = vld [vmem:[%s5615_s10 + $0x60] ss:$8 sps:$4 sm:$0xff]  }
  0x89   :  { %538 = vmatmul.mubr.bf16.vlgmr.msra.gmra.mrb[0].mxu0 %v4618_v20 }
  0x8a   :  { %1370 = vmatpush1.bf16.msra.mxu0 %v3927_v15  ;;  %v3947_v15 = vld [vmem:[%s5615_s10 + $0x64] ss:$8 sps:$4 sm:$0xff]  }
  0x8b   :  { %1371 = vmatprep.subr.bf16.mxu0 %v3932_v17  ;;  %v3950_v17 = vld [vmem:[%s5615_s10 + $0x74] ss:$8 sps:$4 sm:$0xff]  }
  0x8e   :  { %1372 = vmatpush1.bf16.msra.mxu0 %v3930_v18  ;;  %v4273_v18 = vmov 0  }
  0x8f   :  { %1373 = vmatprep.subr.bf16.mxu0 %v3935_v19  ;;  %1401 = vmatprep.mubr.bf16.mxu0 %v4273_v18  ;;  %v3953_v19 = vld [vmem:[%s5617_s14 + $0x4] ss:$16 sps:$4 sm:$0xff]   ;;  %v4100_v18 = vld [vmem:[%s5617_s14 + $0x30c] ss:$16 sps:$4 sm:$0xff]  }
  0x92   :  { %1374 = vmatpush1.bf16.msra.mxu0 %v3933_v21  ;;  %v3954_v21 = vld [vmem:[%s5617_s14 + $0x200] ss:$16 sps:$4 sm:$0xff]  }
  0x93   :  { %1375 = vmatprep.subr.bf16.mxu0 %v3938_v22  ;;  %v3956_v22 = vld [vmem:[%s5617_s14 + $0x204] ss:$16 sps:$4 sm:$0xff]  }
  0x96   :  { %1376 = vmatpush1.bf16.msra.mxu0 %v3936_v23  ;;  %v3960_v23 = vld [vmem:[%s5617_s14 + $0x220] ss:$16 sps:$4 sm:$0xff]  }
  0x97   :  { %1377 = vmatprep.subr.bf16.mxu0 %v3941_v24  ;;  %v3962_v24 = vld [vmem:[%s5617_s14 + $0x224] ss:$16 sps:$4 sm:$0xff]  }
 0x15c   :  { %v539_v33 = vpop.f32.mrb[0].mxu0 }
 0x15d   :  { %v3738_v34 = vadd.f32 %v539_v33, %v137_v31  ;;  %v541_v35 = vpop.f32.mrb[1].mxu0  ;;  %v3301_v31 = vld [vmem:[%s5616_s6] ss:$0 sm:$0xff] }
 0x15e   :  { %v3739_v36 = vadd.f32 %v541_v35, %v141_v32  ;;  %v543_v37 = vpop.f32.mrb[2].mxu0 }
 0x15f   :  { %vm546_vm0 = vcmp.ge.f32.partialorder %v3738_v34, 0.0  ;;  %v548_v38 = vmul.f32 0.01, %v3738_v34  ;;  %v544_v39 = vpop.f32.mrb[3].mxu0 }
 0x160   :  { %v549_v40 = vmul.f32 0.01, %v3739_v36  ;;  %vm547_vm1 = vcmp.ge.f32.partialorder %v3739_v36, 0.0  ;;  %v3879_v39 = vld [vmem:[%s5614_s11] ss:$8 sps:$4 sm:$0xff]  }
 0x161   :  { %v550_v41 = vsel %vm546_vm0, %v3738_v34, %v548_v38 }
 0x162   :  { %v551_v42 = vsel %vm547_vm1, %v3739_v36, %v549_v40  ;;  %v4652_v45 = vpack.c.bf16 %v550_v41, %v550_v41  ;;  %v3884_v41 = vld [vmem:[%s5614_s11 + $0x14] ss:$8 sps:$4 sm:$0xff]  }
 0x163   :  { %v4647_v43 = vpack.c.bf16 %v551_v42, %v551_v42  ;;  %v3882_v42 = vld [vmem:[%s5614_s11 + $0x10] ss:$8 sps:$4 sm:$0xff]  }
 0x165   :  { %721 = vmatprep.mubr.bf16.mxu1 %v4647_v43 }
 0x166   :  { %722 = vmatmul.mubr.bf16.vlgmr.msra.gmra.mrb[0].mxu1 %v4652_v45 }
 0x167   :  { %3687 = vmatpush3.bf16.msra.mxu1 %v3859_v44  ;;  %3702 = vmatprep.mubr.msk.bf16.mxu1 %vm4272_vm2, %v4271_v25  ;;  %v3887_v44 = vld [vmem:[%s5614_s11 + $0x24] ss:$8 sps:$4 sm:$0xff]  }
 0x168   :  { %3688 = vmatprep.subr.bf16.mxu1 %v4271_v25 }
 0x16b   :  { %3689 = vmatpush3.bf16.msra.mxu1 %v3860_v46  ;;  %v3885_v46 = vld [vmem:[%s5614_s11 + $0x20] ss:$8 sps:$4 sm:$0xff]  }
 0x16c   :  { %3690 = vmatprep.subr.bf16.mxu1 %v4271_v25 }
 0x16f   :  { %3691 = vmatpush3.bf16.msra.mxu1 %v3861_v47  ;;  %v3890_v47 = vld [vmem:[%s5614_s11 + $0x34] ss:$8 sps:$4 sm:$0xff]  }
 0x170   :  { %3692 = vmatprep.subr.bf16.mxu1 %v4271_v25 }
 0x173   :  { %3693 = vmatpush3.bf16.msra.mxu1 %v3862_v49  ;;  %v3893_v49 = vld [vmem:[%s5614_s11 + $0x44] ss:$8 sps:$4 sm:$0xff]  }
 0x174   :  { %3694 = vmatprep.subr.bf16.mxu1 %v4271_v25 }
 0x177   :  { %3695 = vmatpush3.bf16.msra.mxu1 %v3863_v51  ;;  %v3891_v51 = vld [vmem:[%s5614_s11 + $0x40] ss:$8 sps:$4 sm:$0xff]  }
 0x178   :  { %3696 = vmatprep.subr.bf16.mxu1 %v4271_v25 }
 0x17b   :  { %3697 = vmatpush3.bf16.msra.mxu1 %v3864_v52  ;;  %v3896_v52 = vld [vmem:[%s5614_s11 + $0x54] ss:$8 sps:$4 sm:$0xff]  }
 0x17c   :  { %3698 = vmatprep.subr.bf16.mxu1 %v4271_v25 }
 0x17f   :  { %3699 = vmatpush3.bf16.msra.mxu1 %v3865_v53  ;;  %v3894_v53 = vld [vmem:[%s5614_s11 + $0x50] ss:$8 sps:$4 sm:$0xff]  }
 0x180   :  { %3700 = vmatprep.subr.bf16.mxu1 %v4271_v25 }
 0x183   :  { %3701 = vmatpush3.bf16.msra.mxu1 %v3866_v54  ;;  %v3899_v54 = vld [vmem:[%s5614_s11 + $0x64] ss:$8 sps:$4 sm:$0xff]  }
 0x184   :  { %3706 = vmatprep.subr.bf16.mxu1 %v4271_v25 }
 0x239   :  { %v3613_v55 = vpop.f32.mrb[0].mxu1 }
 0x23a   :  { %v3614_v57 = vpop.f32.mrb[1].mxu1 }
 0x23b   :  { %v3615_v58 = vadd.f32 %v3614_v57, %v3613_v55  ;;  %v3616_v59 = vpop.f32.mrb[2].mxu1  ;;  %v3897_v55 = vld [vmem:[%s5614_s11 + $0x60] ss:$8 sps:$4 sm:$0xff]  }
 0x23c   :  { %v3617_v60 = vpop.f32.mrb[3].mxu1  ;;  %v3900_v59 = vld [vmem:[%s5614_s11 + $0x70] ss:$8 sps:$4 sm:$0xff]  }
 0x23d   :  { %v724_v61 = vadd.f32 %v3615_v58, %v3284_v56  ;;  %v3902_v56 = vld [vmem:[%s5614_s11 + $0x74] ss:$8 sps:$4 sm:$0xff]  }
 0x23f   :  { %vm729_vm3 = vcmp.ge.f32.partialorder %v724_v61, 0.0  ;;  %v730_v62 = vmul.f32 0.01, %v724_v61 }
 0x241   :  { %v731_v63 = vsel %vm729_vm3, %v724_v61, %v730_v62  ;;  %v3905_v61 = vld [vmem:[%s5614_s11 + $0x84] ss:$8 sps:$4 sm:$0xff]  }
 0x242   :  { %v732_v1 = vpack.c.bf16 %v731_v63, %v731_v63  ;;  %v3903_v63 = vld [vmem:[%s5614_s11 + $0x80] ss:$8 sps:$4 sm:$0xff]  }
 0x244   :  { %3703 = vmatmul.mubr.bf16.vlgmr.msra.gmra.mrb[4].mxu1 %v732_v1 }
 0x245   :  { %3707 = vmatpush3.bf16.msra.mxu1 %v3867_v0  ;;  %3722 = vmatprep.mubr.msk.bf16.mxu1 %vm4272_vm2, %v4271_v25  ;;  %v3908_v0 = vld [vmem:[%s5614_s11 + $0x94] ss:$8 sps:$4 sm:$0xff]  }
 0x246   :  { %3708 = vmatprep.subr.bf16.mxu1 %v4271_v25 }
 0x249   :  { %3709 = vmatpush3.bf16.msra.mxu1 %v3868_v2  ;;  %v3911_v2 = vld [vmem:[%s5614_s11 + $0xa4] ss:$8 sps:$4 sm:$0xff]  }
 0x24a   :  { %3710 = vmatprep.subr.bf16.mxu1 %v4271_v25 }
 0x24d   :  { %3711 = vmatpush3.bf16.msra.mxu1 %v3869_v3  ;;  %v3909_v3 = vld [vmem:[%s5614_s11 + $0xa0] ss:$8 sps:$4 sm:$0xff]  }
 0x24e   :  { %3712 = vmatprep.subr.bf16.mxu1 %v4271_v25 }
 0x251   :  { %3713 = vmatpush3.bf16.msra.mxu1 %v3870_v4  ;;  %v3914_v4 = vld [vmem:[%s5614_s11 + $0xb4] ss:$8 sps:$4 sm:$0xff]  }
 0x252   :  { %3714 = vmatprep.subr.bf16.mxu1 %v4271_v25 }
 0x255   :  { %3715 = vmatpush3.bf16.msra.mxu1 %v3871_v5  ;;  %v3912_v5 = vld [vmem:[%s5614_s11 + $0xb0] ss:$8 sps:$4 sm:$0xff]  }
 0x256   :  { %3716 = vmatprep.subr.bf16.mxu1 %v4271_v25 }
 0x259   :  { %3717 = vmatpush3.bf16.msra.mxu1 %v3872_v6  ;;  %v3917_v6 = vld [vmem:[%s5614_s11 + $0xc4] ss:$8 sps:$4 sm:$0xff]  }
 0x25a   :  { %3718 = vmatprep.subr.bf16.mxu1 %v4271_v25 }
 0x25d   :  { %3719 = vmatpush3.bf16.msra.mxu1 %v3873_v7  ;;  %v3915_v7 = vld [vmem:[%s5614_s11 + $0xc0] ss:$8 sps:$4 sm:$0xff]  }
 0x25e   :  { %3720 = vmatprep.subr.bf16.mxu1 %v4271_v25 }
 0x261   :  { %3721 = vmatpush3.bf16.msra.mxu1 %v3874_v8  ;;  %v3920_v8 = vld [vmem:[%s5614_s11 + $0xd4] ss:$8 sps:$4 sm:$0xff]  }
 0x262   :  { %3726 = vmatprep.subr.bf16.mxu1 %v4271_v25 }
 0x264   :  { %3723 = vmatmul.mubr.bf16.vlgmr.msra.gmra.mrb[8].mxu1 %v732_v1  ;;  %v3906_v1 = vld [vmem:[%s5614_s11 + $0x90] ss:$8 sps:$4 sm:$0xff]  }
 0x265   :  { %3727 = vmatpush3.bf16.msra.mxu1 %v3875_v9  ;;  %3734 = vmatprep.mubr.msk.bf16.mxu1 %vm4272_vm2, %v4271_v25  ;;  %v3918_v9 = vld [vmem:[%s5614_s11 + $0xd0] ss:$8 sps:$4 sm:$0xff]  }
 0x266   :  { %3728 = vmatprep.subr.bf16.mxu1 %v4271_v25 }
 0x269   :  { %3729 = vmatpush3.bf16.msra.mxu1 %v3876_v10  ;;  %v3923_v10 = vld [vmem:[%s5614_s11 + $0xe4] ss:$8 sps:$4 sm:$0xff]  }
 0x26a   :  { %3730 = vmatprep.subr.bf16.mxu1 %v4271_v25 }
 0x26d   :  { %3731 = vmatpush3.bf16.msra.mxu1 %v3877_v11  ;;  %v3921_v11 = vld [vmem:[%s5614_s11 + $0xe0] ss:$8 sps:$4 sm:$0xff]  }
 0x26e   :  { %3732 = vmatprep.subr.bf16.mxu1 %v4271_v25  ;;  %v3939_v25 = vld [vmem:[%s5615_s10 + $0x40] ss:$8 sps:$4 sm:$0xff]  }
 0x26f   :  { %1378 = vmatpush1.bf16.msra.mxu0 %v3939_v25  ;;  %v3968_v25 = vld [vmem:[%s5617_s14 + $0x244] ss:$16 sps:$4 sm:$0xff]  }
 0x270   :  { %1379 = vmatprep.subr.bf16.mxu0 %v3944_v26  ;;  %v3966_v26 = vld [vmem:[%s5617_s14 + $0x240] ss:$16 sps:$4 sm:$0xff]  }
 0x271   :  { %3733 = vmatpush3.bf16.msra.mxu1 %v3878_v12  ;;  %v3926_v12 = vld [vmem:[%s5614_s11 + $0xf4] ss:$8 sps:$4 sm:$0xff]  }
 0x272   :  { %1248 = vmatprep.subr.bf16.mxu1 %v3881_v13  ;;  %v3924_v13 = vld [vmem:[%s5614_s11 + $0xf0] ss:$8 sps:$4 sm:$0xff]  }
 0x273   :  { %1380 = vmatpush1.bf16.msra.mxu0 %v3942_v29  ;;  %v3974_v29 = vld [vmem:[%s5617_s14 + $0x264] ss:$16 sps:$4 sm:$0xff]  }
 0x274   :  { %1381 = vmatprep.subr.bf16.mxu0 %v3947_v15 }
 0x277   :  { %1382 = vmatpush1.bf16.msra.mxu0 %v3945_v16 }
 0x278   :  { %1383 = vmatprep.subr.bf16.mxu0 %v3950_v17 }
 0x317   :  { %v838_v32 = vpop.f32.mrb[4].mxu1 }
 0x318   :  { %v839_v33 = vadd.f32 %v3301_v31, %v838_v32  ;;  %v3704_v34 = vpop.f32.mrb[5].mxu1  ;;  %v3972_v31 = vld [vmem:[%s5617_s14 + $0x260] ss:$16 sps:$4 sm:$0xff]   ;;  %v3980_v32 = vld [vmem:[%s5617_s14 + $0x284] ss:$16 sps:$4 sm:$0xff]  }
 0x319   :  { %v841_v35 = vpop.f32.mrb[6].mxu1  ;;  %v3984_v34 = vld [vmem:[%s5617_s14 + $0x2a0] ss:$16 sps:$4 sm:$0xff]  }
 0x31a   :  { %vm844_vm4 = vcmp.ge.f32.partialorder %v839_v33, 0.0  ;;  %v845_v36 = vmul.f32 0.01, %v839_v33  ;;  %v3705_v37 = vpop.f32.mrb[7].mxu1  ;;  %v3986_v35 = vld [vmem:[%s5617_s14 + $0x2a4] ss:$16 sps:$4 sm:$0xff]  }
 0x31b   :  { %v3990_v37 = vld [vmem:[%s5617_s14 + $0x2c0] ss:$16 sps:$4 sm:$0xff]  }
 0x31c   :  { %v846_v38 = vsel %vm844_vm4, %v839_v33, %v845_v36  ;;  %v3978_v33 = vld [vmem:[%s5617_s14 + $0x280] ss:$16 sps:$4 sm:$0xff]   ;;  %v3992_v36 = vld [vmem:[%s5617_s14 + $0x2c4] ss:$16 sps:$4 sm:$0xff]  }
 0x31d   :  { %v847_v40 = vpack.c.bf16 %v846_v38, %v846_v38  ;;  %v3996_v38 = vld [vmem:[%s5617_s14 + $0x2e0] ss:$16 sps:$4 sm:$0xff]  }
 0x31f   :  { %3735 = vmatmul.mubr.msk.bf16.vlgmr.msra.gmra.mrb[12].mxu1 %vm984_vm5, %v847_v40  ;;  %v4004_v40 = vld [vmem:[%s5617_s14 + $0x304] ss:$16 sps:$4 sm:$0xff]  }
 0x320   :  { %1249 = vmatpush1.bf16.msra.mxu1 %v3879_v39  ;;  %1280 = vmatprep.mubr.bf16.mxu1 %v4647_v43  ;;  %v3888_v43 = vld [vmem:[%s5614_s11 + $0x30] ss:$8 sps:$4 sm:$0xff]   ;;  %v3998_v39 = vld [vmem:[%s5617_s14 + $0x2e4] ss:$16 sps:$4 sm:$0xff]  }
 0x321   :  { %1250 = vmatprep.subr.bf16.mxu1 %v3884_v41  ;;  %v4002_v41 = vld [vmem:[%s5617_s14 + $0x300] ss:$16 sps:$4 sm:$0xff]  }
 0x324   :  { %1251 = vmatpush1.bf16.msra.mxu1 %v3882_v42  ;;  %v4010_v42 = vld [vmem:[%s5617_s14 + $0x324] ss:$16 sps:$4 sm:$0xff]  }
 0x325   :  { %1252 = vmatprep.subr.bf16.mxu1 %v3887_v44  ;;  %v4008_v44 = vld [vmem:[%s5617_s14 + $0x320] ss:$16 sps:$4 sm:$0xff]  }
 0x328   :  { %1253 = vmatpush1.bf16.msra.mxu1 %v3885_v46  ;;  %v4016_v46 = vld [vmem:[%s5617_s14 + $0x344] ss:$16 sps:$4 sm:$0xff]  }
 0x329   :  { %1254 = vmatprep.subr.bf16.mxu1 %v3890_v47  ;;  %v4014_v47 = vld [vmem:[%s5617_s14 + $0x340] ss:$16 sps:$4 sm:$0xff]  }
 0x32c   :  { %1255 = vmatpush1.bf16.msra.mxu1 %v3888_v43  ;;  %v4022_v43 = vld [vmem:[%s5617_s14 + $0x364] ss:$16 sps:$4 sm:$0xff]  }
 0x32d   :  { %1256 = vmatprep.subr.bf16.mxu1 %v3893_v49  ;;  %v4020_v49 = vld [vmem:[%s5617_s14 + $0x360] ss:$16 sps:$4 sm:$0xff]  }
 0x330   :  { %1257 = vmatpush1.bf16.msra.mxu1 %v3891_v51  ;;  %v4028_v51 = vld [vmem:[%s5617_s14 + $0x384] ss:$16 sps:$4 sm:$0xff]  }
 0x331   :  { %1258 = vmatprep.subr.bf16.mxu1 %v3896_v52  ;;  %v4026_v52 = vld [vmem:[%s5617_s14 + $0x380] ss:$16 sps:$4 sm:$0xff]  }
 0x334   :  { %1259 = vmatpush1.bf16.msra.mxu1 %v3894_v53  ;;  %v4034_v53 = vld [vmem:[%s5617_s14 + $0x3a4] ss:$16 sps:$4 sm:$0xff]  }
 0x335   :  { %1260 = vmatprep.subr.bf16.mxu1 %v3899_v54  ;;  %v4032_v54 = vld [vmem:[%s5617_s14 + $0x3a0] ss:$16 sps:$4 sm:$0xff]  }
 0x337   :  { %v4826_v57 = vpop.f32.mrb[8].mxu1 }
 0x338   :  { %v3724_v58 = vpop.f32.mrb[9].mxu1  ;;  %1261 = vmatpush1.bf16.msra.mxu1 %v3897_v55  ;;  %v4040_v55 = vld [vmem:[%s5617_s14 + $0x3c4] ss:$16 sps:$4 sm:$0xff]  }
 0x339   :  { %v957_v60 = vpop.f32.mrb[10].mxu1  ;;  %1262 = vmatprep.subr.bf16.mxu1 %v3902_v56  ;;  %v4038_v56 = vld [vmem:[%s5617_s14 + $0x3c0] ss:$16 sps:$4 sm:$0xff]   ;;  %v4046_v58 = vld [vmem:[%s5617_s14 + $0x3e4] ss:$16 sps:$4 sm:$0xff]  }
 0x33a   :  { %v3725_v62 = vpop.f32.mrb[11].mxu1  ;;  %v4052_v60 = vld [vmem:[%s5617_s14 + $0x20c] ss:$16 sps:$4 sm:$0xff]  }
 0x33b   :  { %v4058_v62 = vld [vmem:[%s5617_s14 + $0x22c] ss:$16 sps:$4 sm:$0xff]  }
 0x33c   :  { %1263 = vmatpush1.bf16.msra.mxu1 %v3900_v59  ;;  %v4044_v59 = vld [vmem:[%s5617_s14 + $0x3e0] ss:$16 sps:$4 sm:$0xff]  }
 0x33d   :  { %1264 = vmatprep.subr.bf16.mxu1 %v3905_v61  ;;  %v4050_v61 = vld [vmem:[%s5617_s14 + $0x208] ss:$16 sps:$4 sm:$0xff]  }
 0x340   :  { %1265 = vmatpush1.bf16.msra.mxu1 %v3903_v63  ;;  %v4056_v63 = vld [vmem:[%s5617_s14 + $0x228] ss:$16 sps:$4 sm:$0xff]  }
 0x341   :  { %1266 = vmatprep.subr.bf16.mxu1 %v3908_v0  ;;  %v4064_v0 = vld [vmem:[%s5617_s14 + $0x24c] ss:$16 sps:$4 sm:$0xff]  }
 0x344   :  { %1267 = vmatpush1.bf16.msra.mxu1 %v3906_v1  ;;  %v4062_v1 = vld [vmem:[%s5617_s14 + $0x248] ss:$16 sps:$4 sm:$0xff]  }
 0x345   :  { %1268 = vmatprep.subr.bf16.mxu1 %v3911_v2  ;;  %v4070_v2 = vld [vmem:[%s5617_s14 + $0x26c] ss:$16 sps:$4 sm:$0xff]  }
 0x348   :  { %1269 = vmatpush1.bf16.msra.mxu1 %v3909_v3  ;;  %v4076_v3 = vld [vmem:[%s5617_s14 + $0x28c] ss:$16 sps:$4 sm:$0xff]  }
 0x349   :  { %1270 = vmatprep.subr.bf16.mxu1 %v3914_v4  ;;  %v4074_v4 = vld [vmem:[%s5617_s14 + $0x288] ss:$16 sps:$4 sm:$0xff]  }
 0x34c   :  { %1271 = vmatpush1.bf16.msra.mxu1 %v3912_v5  ;;  %v4082_v5 = vld [vmem:[%s5617_s14 + $0x2ac] ss:$16 sps:$4 sm:$0xff]  }
 0x34d   :  { %1272 = vmatprep.subr.bf16.mxu1 %v3917_v6  ;;  %v4080_v6 = vld [vmem:[%s5617_s14 + $0x2a8] ss:$16 sps:$4 sm:$0xff]  }
 0x350   :  { %1273 = vmatpush1.bf16.msra.mxu1 %v3915_v7  ;;  %v4088_v7 = vld [vmem:[%s5617_s14 + $0x2cc] ss:$16 sps:$4 sm:$0xff]  }
 0x351   :  { %1274 = vmatprep.subr.bf16.mxu1 %v3920_v8  ;;  %v4086_v8 = vld [vmem:[%s5617_s14 + $0x2c8] ss:$16 sps:$4 sm:$0xff]  }
 0x354   :  { %1275 = vmatpush1.bf16.msra.mxu1 %v3918_v9 }
 0x355   :  { %1276 = vmatprep.subr.bf16.mxu1 %v3923_v10  ;;  %v3323_v10 = vld [vmem:[%s5618_s9] ss:$0 sm:$0xff] }
 0x358   :  { %1277 = vmatpush1.bf16.msra.mxu1 %v3921_v11  ;;  %v4094_v11 = vld [vmem:[%s5617_s14 + $0x2ec] ss:$16 sps:$4 sm:$0xff]  }
 0x359   :  { %1278 = vmatprep.subr.bf16.mxu1 %v3926_v12 }
 0x35c   :  { %1279 = vmatpush1.bf16.msra.mxu1 %v3924_v13 }
 0x35d   :  { %2305 = vmatprep.subr.bf16.mxu1 %v3956_v22 }
 0x35f   :  { %1281 = vmatmul.mubr.bf16.vlgmr.msra.gmra.mrb[16].mxu1 %v4652_v45  ;;  %v3948_v45 = vld [vmem:[%s5615_s10 + $0x70] ss:$8 sps:$4 sm:$0xff]  }
 0x360   :  { %2337 = vmatprep.mubr.bf16.mxu1 %v4518_v50  ;;  %1384 = vmatpush1.bf16.msra.mxu0 %v3948_v45  ;;  %v4092_v45 = vld [vmem:[%s5617_s14 + $0x2e8] ss:$16 sps:$4 sm:$0xff]  }
 0x361   :  { %2264 = vmatprep.subr.bf16.mxu0 %v3953_v19  ;;  %2306 = vmatpush1.bf16.msra.mxu1 %v3954_v21 }
 0x362   :  { %2307 = vmatprep.subr.bf16.mxu1 %v3962_v24  ;;  %v4098_v24 = vld [vmem:[%s5617_s14 + $0x308] ss:$16 sps:$4 sm:$0xff]  }
 0x365   :  { %2308 = vmatpush1.bf16.msra.mxu1 %v3960_v23  ;;  %v3959_v23 = vld [vmem:[%s5617_s14 + $0x24] ss:$16 sps:$4 sm:$0xff]  }
 0x366   :  { %2309 = vmatprep.subr.bf16.mxu1 %v3968_v25  ;;  %v4106_v25 = vld [vmem:[%s5617_s14 + $0x32c] ss:$16 sps:$4 sm:$0xff]  }
 0x369   :  { %2310 = vmatpush1.bf16.msra.mxu1 %v3966_v26  ;;  %v3957_v26 = vld [vmem:[%s5617_s14 + $0x20] ss:$16 sps:$4 sm:$0xff]  }
 0x36a   :  { %2311 = vmatprep.subr.bf16.mxu1 %v3974_v29  ;;  %v3965_v29 = vld [vmem:[%s5617_s14 + $0x44] ss:$16 sps:$4 sm:$0xff]  }
 0x36d   :  { %2312 = vmatpush1.bf16.msra.mxu1 %v3972_v31  ;;  %v4104_v31 = vld [vmem:[%s5617_s14 + $0x328] ss:$16 sps:$4 sm:$0xff]  }
 0x36e   :  { %2313 = vmatprep.subr.bf16.mxu1 %v3980_v32  ;;  %v4112_v32 = vld [vmem:[%s5617_s14 + $0x34c] ss:$16 sps:$4 sm:$0xff]  }
 0x371   :  { %2314 = vmatpush1.bf16.msra.mxu1 %v3978_v33  ;;  %v3963_v33 = vld [vmem:[%s5617_s14 + $0x40] ss:$16 sps:$4 sm:$0xff]  }
 0x372   :  { %2315 = vmatprep.subr.bf16.mxu1 %v3986_v35  ;;  %v4110_v35 = vld [vmem:[%s5617_s14 + $0x348] ss:$16 sps:$4 sm:$0xff]  }
 0x375   :  { %2316 = vmatpush1.bf16.msra.mxu1 %v3984_v34  ;;  %v3971_v34 = vld [vmem:[%s5617_s14 + $0x64] ss:$16 sps:$4 sm:$0xff]  }
 0x376   :  { %2317 = vmatprep.subr.bf16.mxu1 %v3992_v36  ;;  %v4118_v36 = vld [vmem:[%s5617_s14 + $0x36c] ss:$16 sps:$4 sm:$0xff]  }
 0x379   :  { %2318 = vmatpush1.bf16.msra.mxu1 %v3990_v37  ;;  %v3969_v37 = vld [vmem:[%s5617_s14 + $0x60] ss:$16 sps:$4 sm:$0xff]  }
 0x37a   :  { %2319 = vmatprep.subr.bf16.mxu1 %v3998_v39  ;;  %v4116_v39 = vld [vmem:[%s5617_s14 + $0x368] ss:$16 sps:$4 sm:$0xff]  }
 0x37d   :  { %2320 = vmatpush1.bf16.msra.mxu1 %v3996_v38  ;;  %v3977_v38 = vld [vmem:[%s5617_s14 + $0x84] ss:$16 sps:$4 sm:$0xff]  }
 0x37e   :  { %2321 = vmatprep.subr.bf16.mxu1 %v4004_v40  ;;  %v4124_v40 = vld [vmem:[%s5617_s14 + $0x38c] ss:$16 sps:$4 sm:$0xff]  }
 0x381   :  { %2322 = vmatpush1.bf16.msra.mxu1 %v4002_v41  ;;  %v3975_v41 = vld [vmem:[%s5617_s14 + $0x80] ss:$16 sps:$4 sm:$0xff]  }
 0x382   :  { %2323 = vmatprep.subr.bf16.mxu1 %v4010_v42  ;;  %v3983_v42 = vld [vmem:[%s5617_s14 + $0xa4] ss:$16 sps:$4 sm:$0xff]  }
 0x385   :  { %2324 = vmatpush1.bf16.msra.mxu1 %v4008_v44  ;;  %v4122_v44 = vld [vmem:[%s5617_s14 + $0x388] ss:$16 sps:$4 sm:$0xff]  }
 0x386   :  { %2325 = vmatprep.subr.bf16.mxu1 %v4016_v46  ;;  %v4130_v46 = vld [vmem:[%s5617_s14 + $0x3ac] ss:$16 sps:$4 sm:$0xff]  }
 0x389   :  { %2326 = vmatpush1.bf16.msra.mxu1 %v4014_v47  ;;  %v3981_v47 = vld [vmem:[%s5617_s14 + $0xa0] ss:$16 sps:$4 sm:$0xff]  }
 0x38a   :  { %2327 = vmatprep.subr.bf16.mxu1 %v4022_v43  ;;  %v3989_v43 = vld [vmem:[%s5617_s14 + $0xc4] ss:$16 sps:$4 sm:$0xff]  }
 0x38d   :  { %2328 = vmatpush1.bf16.msra.mxu1 %v4020_v49  ;;  %v4128_v49 = vld [vmem:[%s5617_s14 + $0x3a8] ss:$16 sps:$4 sm:$0xff]  }
 0x38e   :  { %2329 = vmatprep.subr.bf16.mxu1 %v4028_v51  ;;  %v4136_v51 = vld [vmem:[%s5617_s14 + $0x3cc] ss:$16 sps:$4 sm:$0xff]  }
 0x391   :  { %2330 = vmatpush1.bf16.msra.mxu1 %v4026_v52  ;;  %v3987_v52 = vld [vmem:[%s5617_s14 + $0xc0] ss:$16 sps:$4 sm:$0xff]  }
 0x392   :  { %2331 = vmatprep.subr.bf16.mxu1 %v4034_v53  ;;  %v3995_v53 = vld [vmem:[%s5617_s14 + $0xe4] ss:$16 sps:$4 sm:$0xff]  }
 0x395   :  { %2332 = vmatpush1.bf16.msra.mxu1 %v4032_v54  ;;  %v4134_v54 = vld [vmem:[%s5617_s14 + $0x3c8] ss:$16 sps:$4 sm:$0xff]  }
 0x396   :  { %2333 = vmatprep.subr.bf16.mxu1 %v4040_v55  ;;  %v4142_v55 = vld [vmem:[%s5617_s14 + $0x3ec] ss:$16 sps:$4 sm:$0xff]  }
 0x399   :  { %2334 = vmatpush1.bf16.msra.mxu1 %v4038_v56  ;;  %v3993_v56 = vld [vmem:[%s5617_s14 + $0xe0] ss:$16 sps:$4 sm:$0xff]  }
 0x39a   :  { %2335 = vmatprep.subr.bf16.mxu1 %v4046_v58  ;;  %v4001_v58 = vld [vmem:[%s5617_s14 + $0x104] ss:$16 sps:$4 sm:$0xff]  }
 0x39d   :  { %2336 = vmatpush1.bf16.msra.mxu1 %v4044_v59  ;;  %v4140_v59 = vld [vmem:[%s5617_s14 + $0x3e8] ss:$16 sps:$4 sm:$0xff]  }
 0x39e   :  { %2387 = vmatprep.subr.bf16.mxu1 %v4052_v60  ;;  %v4148_v60 = vld [vmem:[%s5619_s13 + $0xc] ss:$16 sps:$4 sm:$0xff]  }
 0x3a0   :  { %2338 = vmatmul.mubr.bf16.vlgmr.msra.gmra.mrb[20].mxu1 %v4618_v20 }
 0x3a1   :  { %2388 = vmatpush1.bf16.msra.mxu1 %v4050_v61  ;;  %2419 = vmatprep.mubr.bf16.mxu1 %v4518_v50  ;;  %v4068_v50 = vld [vmem:[%s5617_s14 + $0x268] ss:$16 sps:$4 sm:$0xff]   ;;  %v3999_v61 = vld [vmem:[%s5617_s14 + $0x100] ss:$16 sps:$4 sm:$0xff]  }
 0x3a2   :  { %2389 = vmatprep.subr.bf16.mxu1 %v4058_v62  ;;  %v4007_v62 = vld [vmem:[%s5617_s14 + $0x124] ss:$16 sps:$4 sm:$0xff]  }
 0x3a5   :  { %2390 = vmatpush1.bf16.msra.mxu1 %v4056_v63  ;;  %v4146_v63 = vld [vmem:[%s5619_s13 + $0x8] ss:$16 sps:$4 sm:$0xff]  }
 0x3a6   :  { %2391 = vmatprep.subr.bf16.mxu1 %v4064_v0  ;;  %v4154_v0 = vld [vmem:[%s5619_s13 + $0x2c] ss:$16 sps:$4 sm:$0xff]  }
 0x3a9   :  { %2392 = vmatpush1.bf16.msra.mxu1 %v4062_v1  ;;  %v4005_v1 = vld [vmem:[%s5617_s14 + $0x120] ss:$16 sps:$4 sm:$0xff]  }
 0x3aa   :  { %2393 = vmatprep.subr.bf16.mxu1 %v4070_v2  ;;  %v4013_v2 = vld [vmem:[%s5617_s14 + $0x144] ss:$16 sps:$4 sm:$0xff]  }
 0x3ad   :  { %2394 = vmatpush1.bf16.msra.mxu1 %v4068_v50  ;;  %v4152_v50 = vld [vmem:[%s5619_s13 + $0x28] ss:$16 sps:$4 sm:$0xff]  }
 0x3ae   :  { %2395 = vmatprep.subr.bf16.mxu1 %v4076_v3  ;;  %v4160_v3 = vld [vmem:[%s5619_s13 + $0x4c] ss:$16 sps:$4 sm:$0xff]  }
 0x3b1   :  { %2396 = vmatpush1.bf16.msra.mxu1 %v4074_v4  ;;  %v4019_v4 = vld [vmem:[%s5617_s14 + $0x164] ss:$16 sps:$4 sm:$0xff]  }
 0x3b2   :  { %2397 = vmatprep.subr.bf16.mxu1 %v4082_v5  ;;  %v4158_v5 = vld [vmem:[%s5619_s13 + $0x48] ss:$16 sps:$4 sm:$0xff]  }
 0x3b5   :  { %2398 = vmatpush1.bf16.msra.mxu1 %v4080_v6  ;;  %v4166_v6 = vld [vmem:[%s5619_s13 + $0x6c] ss:$16 sps:$4 sm:$0xff]  }
 0x3b6   :  { %2399 = vmatprep.subr.bf16.mxu1 %v4088_v7  ;;  %v4017_v7 = vld [vmem:[%s5617_s14 + $0x160] ss:$16 sps:$4 sm:$0xff]  }
 0x3b9   :  { %2400 = vmatpush1.bf16.msra.mxu1 %v4086_v8  ;;  %v4025_v8 = vld [vmem:[%s5617_s14 + $0x184] ss:$16 sps:$4 sm:$0xff]  }
 0x3ba   :  { %2401 = vmatprep.subr.bf16.mxu1 %v4094_v11  ;;  %v4023_v11 = vld [vmem:[%s5617_s14 + $0x180] ss:$16 sps:$4 sm:$0xff]  }
 0x3bd   :  { %2402 = vmatpush1.bf16.msra.mxu1 %v4092_v45  ;;  %v4176_v45 = vld [vmem:[%s5619_s13 + $0xa8] ss:$16 sps:$4 sm:$0xff]  }
 0x3be   :  { %2403 = vmatprep.subr.bf16.mxu1 %v4100_v18  ;;  %v4184_v18 = vld [vmem:[%s5619_s13 + $0xcc] ss:$16 sps:$4 sm:$0xff]  }
 0x3c1   :  { %2404 = vmatpush1.bf16.msra.mxu1 %v4098_v24  ;;  %v4190_v24 = vld [vmem:[%s5619_s13 + $0xec] ss:$16 sps:$4 sm:$0xff]  }
 0x3c2   :  { %2405 = vmatprep.subr.bf16.mxu1 %v4106_v25 }
 0x3c5   :  { %2406 = vmatpush1.bf16.msra.mxu1 %v4104_v31  ;;  %v4049_v31 = vld [vmem:[%s5617_s14 + $0xc] ss:$16 sps:$4 sm:$0xff]  }
 0x3c6   :  { %2407 = vmatprep.subr.bf16.mxu1 %v4112_v32  ;;  %v4188_v32 = vld [vmem:[%s5619_s13 + $0xe8] ss:$16 sps:$4 sm:$0xff]  }
 0x3c9   :  { %2408 = vmatpush1.bf16.msra.mxu1 %v4110_v35  ;;  %v4055_v35 = vld [vmem:[%s5617_s14 + $0x2c] ss:$16 sps:$4 sm:$0xff]  }
 0x3ca   :  { %2409 = vmatprep.subr.bf16.mxu1 %v4118_v36  ;;  %v4194_v36 = vld [vmem:[%s5619_s13 + $0x108] ss:$16 sps:$4 sm:$0xff]  }
 0x3cd   :  { %2410 = vmatpush1.bf16.msra.mxu1 %v4116_v39  ;;  %v4061_v39 = vld [vmem:[%s5617_s14 + $0x4c] ss:$16 sps:$4 sm:$0xff]  }
 0x3ce   :  { %2411 = vmatprep.subr.bf16.mxu1 %v4124_v40  ;;  %v4200_v40 = vld [vmem:[%s5619_s13 + $0x128] ss:$16 sps:$4 sm:$0xff]  }
 0x3d1   :  { %2412 = vmatpush1.bf16.msra.mxu1 %v4122_v44  ;;  %v4206_v44 = vld [vmem:[%s5619_s13 + $0x148] ss:$16 sps:$4 sm:$0xff]  }
 0x3d2   :  { %2413 = vmatprep.subr.bf16.mxu1 %v4130_v46  ;;  %v4214_v46 = vld [vmem:[%s5619_s13 + $0x16c] ss:$16 sps:$4 sm:$0xff]  }
 0x3d5   :  { %2414 = vmatpush1.bf16.msra.mxu1 %v4128_v49  ;;  %v4212_v49 = vld [vmem:[%s5619_s13 + $0x168] ss:$16 sps:$4 sm:$0xff]  }
 0x3d6   :  { %2415 = vmatprep.subr.bf16.mxu1 %v4136_v51  ;;  %v4220_v51 = vld [vmem:[%s5619_s13 + $0x18c] ss:$16 sps:$4 sm:$0xff]  }
 0x3d9   :  { %2416 = vmatpush1.bf16.msra.mxu1 %v4134_v54  ;;  %v4218_v54 = vld [vmem:[%s5619_s13 + $0x188] ss:$16 sps:$4 sm:$0xff]  }
 0x3da   :  { %2417 = vmatprep.subr.bf16.mxu1 %v4142_v55  ;;  %v4077_v55 = vld [vmem:[%s5617_s14 + $0xa8] ss:$16 sps:$4 sm:$0xff]  }
 0x3dd   :  { %2418 = vmatpush1.bf16.msra.mxu1 %v4140_v59  ;;  %v4224_v59 = vld [vmem:[%s5619_s13 + $0x1a8] ss:$16 sps:$4 sm:$0xff]  }
 0x3de   :  { %2789 = vmatprep.subr.bf16.mxu1 %v4148_v60  ;;  %v4083_v60 = vld [vmem:[%s5617_s14 + $0xc8] ss:$16 sps:$4 sm:$0xff]  }
 0x3e0   :  { %2420 = vmatmul.mubr.bf16.vlgmr.msra.gmra.mrb[24].mxu1 %v4618_v20  ;;  %v4011_v20 = vld [vmem:[%s5617_s14 + $0x140] ss:$16 sps:$4 sm:$0xff]  }
 0x3e1   :  { %2790 = vmatpush1.bf16.msra.mxu1 %v4146_v63  ;;  %v4230_v63 = vld [vmem:[%s5619_s13 + $0x1c8] ss:$16 sps:$4 sm:$0xff]  }
 0x3e2   :  { %2791 = vmatprep.subr.bf16.mxu1 %v4154_v0  ;;  %v4089_v0 = vld [vmem:[%s5617_s14 + $0xe8] ss:$16 sps:$4 sm:$0xff]  }
 0x3e5   :  { %2792 = vmatpush1.bf16.msra.mxu1 %v4152_v50  ;;  %v4236_v50 = vld [vmem:[%s5619_s13 + $0x1e8] ss:$16 sps:$4 sm:$0xff]  }
 0x3e6   :  { %2793 = vmatprep.subr.bf16.mxu1 %v4160_v3  ;;  %v4095_v3 = vld [vmem:[%s5617_s14 + $0x108] ss:$16 sps:$4 sm:$0xff]  }
 0x3e9   :  { %2794 = vmatpush1.bf16.msra.mxu1 %v4158_v5  ;;  %v4109_v5 = vld [vmem:[%s5617_s14 + $0x14c] ss:$16 sps:$4 sm:$0xff]  }
 0x3ea   :  { %2795 = vmatprep.subr.bf16.mxu1 %v4166_v6  ;;  %v4107_v6 = vld [vmem:[%s5617_s14 + $0x148] ss:$16 sps:$4 sm:$0xff]  }
 0x3f2   :  { %v1022_v9 = vpop.f32.mrb[12].mxu1 }
 0x3f3   :  { %v1023_v12 = vadd.f32 %v1022_v9, %v4826_v57  ;;  %v3736_v13 = vpop.f32.mrb[13].mxu1  ;;  %v3951_v57 = vld [vmem:[%s5617_s14] ss:$16 sps:$4 sm:$0xff]   ;;  %v4164_v9 = vld [vmem:[%s5619_s13 + $0x68] ss:$16 sps:$4 sm:$0xff]  }
 0x3f4   :  { %v1025_v15 = vpop.f32.mrb[14].mxu1  ;;  %2796 = vmatpush1.bf16.msra.mxu1 %v4164_v9  ;;  %v4170_v13 = vld [vmem:[%s5619_s13 + $0x88] ss:$16 sps:$4 sm:$0xff]   ;;  %v4121_v9 = vld [vmem:[%s5617_s14 + $0x18c] ss:$16 sps:$4 sm:$0xff]  }
 0x3f5   :  { %v1035_v16 = vadd.f32 %v3323_v10, %v1023_v12  ;;  %v3737_v17 = vpop.f32.mrb[15].mxu1  ;;  %v4172_v10 = vld [vmem:[%s5619_s13 + $0x8c] ss:$16 sps:$4 sm:$0xff]   ;;  %v4031_v12 = vld [vmem:[%s5617_s14 + $0x1a4] ss:$16 sps:$4 sm:$0xff]  }
 0x3f6   :  { %2797 = vmatprep.subr.bf16.mxu1 %v4172_v10  ;;  %v4178_v15 = vld [vmem:[%s5619_s13 + $0xac] ss:$16 sps:$4 sm:$0xff]   ;;  %v4037_v17 = vld [vmem:[%s5617_s14 + $0x1c4] ss:$16 sps:$4 sm:$0xff]   ;;  %v4119_v10 = vld [vmem:[%s5617_s14 + $0x188] ss:$16 sps:$4 sm:$0xff]  }
 0x3f7   :  { %vm1036_vm6 = vcmp.ge.f32.partialorder %v1035_v16, 0.0  ;;  %v1037_v19 = vmul.f32 0.01, %v1035_v16 }
 0x3f8   :  { %2798 = vmatpush1.bf16.msra.mxu1 %v4170_v13  ;;  %v4133_v13 = vld [vmem:[%s5617_s14 + $0x1cc] ss:$16 sps:$4 sm:$0xff]  }
 0x3f9   :  { %v1038_v21 = vsel %vm1036_vm6, %v1035_v16, %v1037_v19  ;;  %v4029_v16 = vld [vmem:[%s5617_s14 + $0x1a0] ss:$16 sps:$4 sm:$0xff]   ;;  %2799 = vmatprep.subr.bf16.mxu1 %v4178_v15  ;;  %v4131_v15 = vld [vmem:[%s5617_s14 + $0x1c8] ss:$16 sps:$4 sm:$0xff]  }
 0x3fa   :  { %v1039_v22 = vpack.c.bf16 %v1038_v21, %v1038_v21  ;;  %v4035_v19 = vld [vmem:[%s5617_s14 + $0x1c0] ss:$16 sps:$4 sm:$0xff]  }
 0x3fc   :  { %1402 = vmatmul.mubr.bf16.vlgmr.msra.gmra.mrb[4].mxu0 %v1039_v22  ;;  %2800 = vmatpush1.bf16.msra.mxu1 %v4176_v45  ;;  %v4182_v22 = vld [vmem:[%s5619_s13 + $0xc8] ss:$16 sps:$4 sm:$0xff]   ;;  %v4145_v45 = vld [vmem:[%s5619_s13 + $0x4] ss:$16 sps:$4 sm:$0xff]  }
 0x3fd   :  { %2265 = vmatpush1.bf16.msra.mxu0 %v3951_v57  ;;  %2296 = vmatprep.mubr.bf16.mxu0 %v4411_v14  ;;  %v4043_v57 = vld [vmem:[%s5617_s14 + $0x1e4] ss:$16 sps:$4 sm:$0xff]  }
 0x3fe   :  { %2266 = vmatprep.subr.bf16.mxu0 %v3959_v23  ;;  %2801 = vmatprep.subr.bf16.mxu1 %v4184_v18  ;;  %v4143_v18 = vld [vmem:[%s5619_s13] ss:$16 sps:$4 sm:$0xff]  }
 0x400   :  { %2802 = vmatpush1.bf16.msra.mxu1 %v4182_v22  ;;  %v4157_v22 = vld [vmem:[%s5619_s13 + $0x44] ss:$16 sps:$4 sm:$0xff]  }
 0x401   :  { %2267 = vmatpush1.bf16.msra.mxu0 %v3957_v26  ;;  %2803 = vmatprep.subr.bf16.mxu1 %v4190_v24  ;;  %v4155_v24 = vld [vmem:[%s5619_s13 + $0x40] ss:$16 sps:$4 sm:$0xff]  }
 0x402   :  { %2268 = vmatprep.subr.bf16.mxu0 %v3965_v29  ;;  %v4041_v29 = vld [vmem:[%s5617_s14 + $0x1e0] ss:$16 sps:$4 sm:$0xff]  }
 0x404   :  { %2804 = vmatpush1.bf16.msra.mxu1 %v4188_v32  ;;  %v4173_v32 = vld [vmem:[%s5619_s13 + $0xa0] ss:$16 sps:$4 sm:$0xff]  }
 0x405   :  { %2269 = vmatpush1.bf16.msra.mxu0 %v3963_v33  ;;  %v4196_v33 = vld [vmem:[%s5619_s13 + $0x10c] ss:$16 sps:$4 sm:$0xff]  }
 0x406   :  { %2270 = vmatprep.subr.bf16.mxu0 %v3971_v34  ;;  %v4047_v34 = vld [vmem:[%s5617_s14 + $0x8] ss:$16 sps:$4 sm:$0xff]   ;;  %2805 = vmatprep.subr.bf16.mxu1 %v4196_v33  ;;  %v4181_v33 = vld [vmem:[%s5619_s13 + $0xc4] ss:$16 sps:$4 sm:$0xff]  }
 0x408   :  { %2806 = vmatpush1.bf16.msra.mxu1 %v4194_v36  ;;  %v4185_v36 = vld [vmem:[%s5619_s13 + $0xe0] ss:$16 sps:$4 sm:$0xff]  }
 0x409   :  { %2271 = vmatpush1.bf16.msra.mxu0 %v3969_v37  ;;  %v4202_v37 = vld [vmem:[%s5619_s13 + $0x12c] ss:$16 sps:$4 sm:$0xff]  }
 0x40a   :  { %2272 = vmatprep.subr.bf16.mxu0 %v3977_v38  ;;  %v4053_v38 = vld [vmem:[%s5617_s14 + $0x28] ss:$16 sps:$4 sm:$0xff]   ;;  %2807 = vmatprep.subr.bf16.mxu1 %v4202_v37  ;;  %v4193_v37 = vld [vmem:[%s5619_s13 + $0x104] ss:$16 sps:$4 sm:$0xff]  }
 0x40c   :  { %2808 = vmatpush1.bf16.msra.mxu1 %v4200_v40  ;;  %v4197_v40 = vld [vmem:[%s5619_s13 + $0x120] ss:$16 sps:$4 sm:$0xff]  }
 0x40d   :  { %2273 = vmatpush1.bf16.msra.mxu0 %v3975_v41  ;;  %v4208_v41 = vld [vmem:[%s5619_s13 + $0x14c] ss:$16 sps:$4 sm:$0xff]  }
 0x40e   :  { %2274 = vmatprep.subr.bf16.mxu0 %v3983_v42  ;;  %v4067_v42 = vld [vmem:[%s5617_s14 + $0x6c] ss:$16 sps:$4 sm:$0xff]   ;;  %2809 = vmatprep.subr.bf16.mxu1 %v4208_v41  ;;  %v4205_v41 = vld [vmem:[%s5619_s13 + $0x144] ss:$16 sps:$4 sm:$0xff]  }
 0x410   :  { %2810 = vmatpush1.bf16.msra.mxu1 %v4206_v44  ;;  %v4209_v44 = vld [vmem:[%s5619_s13 + $0x160] ss:$16 sps:$4 sm:$0xff]  }
 0x411   :  { %2275 = vmatpush1.bf16.msra.mxu0 %v3981_v47  ;;  %v4065_v47 = vld [vmem:[%s5617_s14 + $0x68] ss:$16 sps:$4 sm:$0xff]   ;;  %2811 = vmatprep.subr.bf16.mxu1 %v4214_v46  ;;  %v4217_v46 = vld [vmem:[%s5619_s13 + $0x184] ss:$16 sps:$4 sm:$0xff]  }
 0x412   :  { %2276 = vmatprep.subr.bf16.mxu0 %v3989_v43  ;;  %v4073_v43 = vld [vmem:[%s5617_s14 + $0x8c] ss:$16 sps:$4 sm:$0xff]  }
 0x414   :  { %2812 = vmatpush1.bf16.msra.mxu1 %v4212_v49  ;;  %v4221_v49 = vld [vmem:[%s5619_s13 + $0x1a0] ss:$16 sps:$4 sm:$0xff]  }
 0x415   :  { %2277 = vmatpush1.bf16.msra.mxu0 %v3987_v52  ;;  %v4071_v52 = vld [vmem:[%s5617_s14 + $0x88] ss:$16 sps:$4 sm:$0xff]   ;;  %2813 = vmatprep.subr.bf16.mxu1 %v4220_v51  ;;  %v4229_v51 = vld [vmem:[%s5619_s13 + $0x1c4] ss:$16 sps:$4 sm:$0xff]  }
 0x416   :  { %2278 = vmatprep.subr.bf16.mxu0 %v3995_v53  ;;  %v4079_v53 = vld [vmem:[%s5617_s14 + $0xac] ss:$16 sps:$4 sm:$0xff]  }
 0x418   :  { %2814 = vmatpush1.bf16.msra.mxu1 %v4218_v54  ;;  %v4227_v54 = vld [vmem:[%s5619_s13 + $0x1c0] ss:$16 sps:$4 sm:$0xff]  }
 0x419   :  { %2279 = vmatpush1.bf16.msra.mxu0 %v3993_v56  ;;  %v4085_v56 = vld [vmem:[%s5617_s14 + $0xcc] ss:$16 sps:$4 sm:$0xff]  }
 0x41a   :  { %2280 = vmatprep.subr.bf16.mxu0 %v4001_v58  ;;  %v4226_v58 = vld [vmem:[%s5619_s13 + $0x1ac] ss:$16 sps:$4 sm:$0xff]  }
 0x41b   :  { %2815 = vmatprep.subr.bf16.mxu1 %v4226_v58 }
 0x41c   :  { %2816 = vmatpush1.bf16.msra.mxu1 %v4224_v59  ;;  %v4233_v59 = vld [vmem:[%s5619_s13 + $0x1e0] ss:$16 sps:$4 sm:$0xff]  }
 0x41d   :  { %2281 = vmatpush1.bf16.msra.mxu0 %v3999_v61  ;;  %v4091_v61 = vld [vmem:[%s5617_s14 + $0xec] ss:$16 sps:$4 sm:$0xff]  }
 0x41e   :  { %2282 = vmatprep.subr.bf16.mxu0 %v4007_v62  ;;  %v4232_v62 = vld [vmem:[%s5619_s13 + $0x1cc] ss:$16 sps:$4 sm:$0xff]  }
 0x41f   :  { %2817 = vmatprep.subr.bf16.mxu1 %v4232_v62 }
 0x420   :  { %2818 = vmatpush1.bf16.msra.mxu1 %v4230_v63 }
 0x421   :  { %2283 = vmatpush1.bf16.msra.mxu0 %v4005_v1  ;;  %v4097_v1 = vld [vmem:[%s5617_s14 + $0x10c] ss:$16 sps:$4 sm:$0xff]  }
 0x422   :  { %2284 = vmatprep.subr.bf16.mxu0 %v4013_v2  ;;  %v4238_v2 = vld [vmem:[%s5619_s13 + $0x1ec] ss:$16 sps:$4 sm:$0xff]  }
 0x423   :  { %2819 = vmatprep.subr.bf16.mxu1 %v4238_v2 }
 0x424   :  { %2820 = vmatpush1.bf16.msra.mxu1 %v4236_v50 }
 0x425   :  { %2285 = vmatpush1.bf16.msra.mxu0 %v4011_v20  ;;  %v4103_v20 = vld [vmem:[%s5617_s14 + $0x12c] ss:$16 sps:$4 sm:$0xff]  }
 0x426   :  { %2286 = vmatprep.subr.bf16.mxu0 %v4019_v4  ;;  %v4101_v4 = vld [vmem:[%s5617_s14 + $0x128] ss:$16 sps:$4 sm:$0xff]  }
 0x429   :  { %2287 = vmatpush1.bf16.msra.mxu0 %v4017_v7  ;;  %v4115_v7 = vld [vmem:[%s5617_s14 + $0x16c] ss:$16 sps:$4 sm:$0xff]  }
 0x42a   :  { %2288 = vmatprep.subr.bf16.mxu0 %v4025_v8  ;;  %v4113_v8 = vld [vmem:[%s5617_s14 + $0x168] ss:$16 sps:$4 sm:$0xff]  }
 0x42d   :  { %2289 = vmatpush1.bf16.msra.mxu0 %v4023_v11  ;;  %v4127_v11 = vld [vmem:[%s5617_s14 + $0x1ac] ss:$16 sps:$4 sm:$0xff]  }
 0x42e   :  { %2290 = vmatprep.subr.bf16.mxu0 %v4031_v12  ;;  %v4125_v12 = vld [vmem:[%s5617_s14 + $0x1a8] ss:$16 sps:$4 sm:$0xff]  }
 0x431   :  { %2291 = vmatpush1.bf16.msra.mxu0 %v4029_v16  ;;  %v4139_v16 = vld [vmem:[%s5617_s14 + $0x1ec] ss:$16 sps:$4 sm:$0xff]  }
 0x432   :  { %v5222_v21 = vpop.f32.mrb[16].mxu1  ;;  %2292 = vmatprep.subr.bf16.mxu0 %v4037_v17  ;;  %v4137_v17 = vld [vmem:[%s5617_s14 + $0x1e8] ss:$16 sps:$4 sm:$0xff]  }
 0x433   :  { %v5230_v23 = vpop.f32.mrb[17].mxu1 }
 0x434   :  { %v1286_v25 = vpop.f32.mrb[18].mxu1 }
 0x435   :  { %v1287_v26 = vpop.f32.mrb[19].mxu1  ;;  %2293 = vmatpush1.bf16.msra.mxu0 %v4035_v19  ;;  %v4151_v19 = vld [vmem:[%s5619_s13 + $0x24] ss:$16 sps:$4 sm:$0xff]   ;;  %v4161_v25 = vld [vmem:[%s5619_s13 + $0x60] ss:$16 sps:$4 sm:$0xff]  }
 0x436   :  { %2294 = vmatprep.subr.bf16.mxu0 %v4043_v57  ;;  %v4149_v57 = vld [vmem:[%s5619_s13 + $0x20] ss:$16 sps:$4 sm:$0xff]   ;;  %v4169_v26 = vld [vmem:[%s5619_s13 + $0x84] ss:$16 sps:$4 sm:$0xff]  }
 0x439   :  { %2295 = vmatpush1.bf16.msra.mxu0 %v4041_v29  ;;  %v4167_v29 = vld [vmem:[%s5619_s13 + $0x80] ss:$16 sps:$4 sm:$0xff]  }
 0x43a   :  { %2346 = vmatprep.subr.bf16.mxu0 %v4049_v31  ;;  %v4175_v31 = vld [vmem:[%s5619_s13 + $0xa4] ss:$16 sps:$4 sm:$0xff]  }
 0x43c   :  { %2297 = vmatmul.mubr.bf16.vlgmr.msra.gmra.mrb[8].mxu0 %v4513_v48 }
 0x43d   :  { %2347 = vmatpush1.bf16.msra.mxu0 %v4047_v34  ;;  %2378 = vmatprep.mubr.bf16.mxu0 %v4411_v14  ;;  %v4059_v14 = vld [vmem:[%s5617_s14 + $0x48] ss:$16 sps:$4 sm:$0xff]   ;;  %v4179_v34 = vld [vmem:[%s5619_s13 + $0xc0] ss:$16 sps:$4 sm:$0xff]  }
 0x43e   :  { %2348 = vmatprep.subr.bf16.mxu0 %v4055_v35  ;;  %v4187_v35 = vld [vmem:[%s5619_s13 + $0xe4] ss:$16 sps:$4 sm:$0xff]  }
 0x441   :  { %2349 = vmatpush1.bf16.msra.mxu0 %v4053_v38  ;;  %v4191_v38 = vld [vmem:[%s5619_s13 + $0x100] ss:$16 sps:$4 sm:$0xff]  }
 0x442   :  { %2350 = vmatprep.subr.bf16.mxu0 %v4061_v39  ;;  %v4199_v39 = vld [vmem:[%s5619_s13 + $0x124] ss:$16 sps:$4 sm:$0xff]  }
 0x445   :  { %2351 = vmatpush1.bf16.msra.mxu0 %v4059_v14  ;;  %v4203_v14 = vld [vmem:[%s5619_s13 + $0x140] ss:$16 sps:$4 sm:$0xff]  }
 0x446   :  { %2352 = vmatprep.subr.bf16.mxu0 %v4067_v42  ;;  %v4211_v42 = vld [vmem:[%s5619_s13 + $0x164] ss:$16 sps:$4 sm:$0xff]  }
 0x449   :  { %2353 = vmatpush1.bf16.msra.mxu0 %v4065_v47  ;;  %v4215_v47 = vld [vmem:[%s5619_s13 + $0x180] ss:$16 sps:$4 sm:$0xff]  }
 0x44a   :  { %2354 = vmatprep.subr.bf16.mxu0 %v4073_v43  ;;  %v4223_v43 = vld [vmem:[%s5619_s13 + $0x1a4] ss:$16 sps:$4 sm:$0xff]  }
 0x44d   :  { %2355 = vmatpush1.bf16.msra.mxu0 %v4071_v52 }
 0x44e   :  { %2356 = vmatprep.subr.bf16.mxu0 %v4079_v53 }
 0x451   :  { %2357 = vmatpush1.bf16.msra.mxu0 %v4077_v55 }
 0x452   :  { %2358 = vmatprep.subr.bf16.mxu0 %v4085_v56  ;;  %v4235_v56 = vld [vmem:[%s5619_s13 + $0x1e4] ss:$16 sps:$4 sm:$0xff]  }
 0x455   :  { %2359 = vmatpush1.bf16.msra.mxu0 %v4083_v60  ;;  %v1410_v60 = vld [vmem:[%s5620_s12] sm:$0x3] }
 0x456   :  { %2360 = vmatprep.subr.bf16.mxu0 %v4091_v61  ;;  %v1415_v61 = vrot.slane %v1410_v60, %v4637_v28  ;;  %v1419_v63 = vrot.slane %v1410_v60, %v4643_v30 }
 0x459   :  { %2361 = vmatpush1.bf16.msra.mxu0 %v4089_v0 }
 0x45a   :  { %2362 = vmatprep.subr.bf16.mxu0 %v4097_v1 }
 0x45d   :  { %2363 = vmatpush1.bf16.msra.mxu0 %v4095_v3 }
 0x45e   :  { %2364 = vmatprep.subr.bf16.mxu0 %v4103_v20 }
 0x461   :  { %2365 = vmatpush1.bf16.msra.mxu0 %v4101_v4 }
 0x462   :  { %2366 = vmatprep.subr.bf16.mxu0 %v4109_v5  ;;  %v4239_v5 = vld [vmem:[%s5621_s16 + $0x40] sm:$0xff]  }
 0x465   :  { %2367 = vmatpush1.bf16.msra.mxu0 %v4107_v6 }
 0x466   :  { %2368 = vmatprep.subr.bf16.mxu0 %v4115_v7  ;;  %v4240_v7 = vld [vmem:[%s5621_s16 + $0xc0] sm:$0xff]  }
 0x467   :  { %3664 = vmatprep.subr.bf16.mxu1 %v4240_v7 }
 0x469   :  { %2369 = vmatpush1.bf16.msra.mxu0 %v4113_v8 }
 0x46a   :  { %2370 = vmatprep.subr.bf16.mxu0 %v4121_v9 }
 0x46d   :  { %2371 = vmatpush1.bf16.msra.mxu0 %v4119_v10  ;;  %v4242_v10 = vld [vmem:[%s5621_s16 + $0x80] sm:$0xff]  }
 0x46e   :  { %2372 = vmatprep.subr.bf16.mxu0 %v4127_v11 }
 0x471   :  { %2373 = vmatpush1.bf16.msra.mxu0 %v4125_v12  ;;  %v4243_v12 = vld [vmem:[%s5621_s16 + $0x48] sm:$0xff]  }
 0x472   :  { %2374 = vmatprep.subr.bf16.mxu0 %v4133_v13 }
 0x473   :  { %v5475_v52 = vpop.f32.mrb[20].mxu1 }
 0x474   :  { %v5477_v53 = vpop.f32.mrb[21].mxu1 }
 0x475   :  { %2375 = vmatpush1.bf16.msra.mxu0 %v4131_v15  ;;  %v2343_v55 = vpop.f32.mrb[22].mxu1  ;;  %v4244_v15 = vld [vmem:[%s5621_s16 + $0xc8] sm:$0xff]  }
 0x476   :  { %2376 = vmatprep.subr.bf16.mxu0 %v4139_v16  ;;  %v2344_v58 = vpop.f32.mrb[23].mxu1  ;;  %v4245_v16 = vld [vmem:[%s5621_s16 + $0x8] sm:$0xff]   ;;  %v4269_v55 = vld [vmem:[%s5621_s16 + $0x38] sm:$0xff]  }
 0x479   :  { %2377 = vmatpush1.bf16.msra.mxu0 %v4137_v17  ;;  %v4246_v17 = vld [vmem:[%s5621_s16 + $0x88] sm:$0xff]  }
 0x47a   :  { %2748 = vmatprep.subr.bf16.mxu0 %v4145_v45  ;;  %v4247_v45 = vld [vmem:[%s5621_s16 + $0x50] sm:$0xff]  }
 0x47c   :  { %2379 = vmatmul.mubr.bf16.vlgmr.msra.gmra.mrb[12].mxu0 %v4513_v48  ;;  %v4163_v48 = vld [vmem:[%s5619_s13 + $0x64] ss:$16 sps:$4 sm:$0xff]  }
 0x47d   :  { %2749 = vmatpush1.bf16.msra.mxu0 %v4143_v18  ;;  %v4248_v18 = vld [vmem:[%s5621_s16 + $0xd0] sm:$0xff]  }
 0x47e   :  { %2750 = vmatprep.subr.bf16.mxu0 %v4151_v19  ;;  %v4249_v19 = vld [vmem:[%s5621_s16 + $0x10] sm:$0xff]  }
 0x481   :  { %2751 = vmatpush1.bf16.msra.mxu0 %v4149_v57  ;;  %v4250_v57 = vld [vmem:[%s5621_s16 + $0x90] sm:$0xff]  }
 0x482   :  { %2752 = vmatprep.subr.bf16.mxu0 %v4157_v22  ;;  %v4251_v22 = vld [vmem:[%s5621_s16 + $0x58] sm:$0xff]  }
 0x485   :  { %2753 = vmatpush1.bf16.msra.mxu0 %v4155_v24  ;;  %v4252_v24 = vld [vmem:[%s5621_s16 + $0xd8] sm:$0xff]  }
 0x486   :  { %2754 = vmatprep.subr.bf16.mxu0 %v4163_v48  ;;  %v4253_v48 = vld [vmem:[%s5621_s16 + $0x18] sm:$0xff]  }
 0x489   :  { %2755 = vmatpush1.bf16.msra.mxu0 %v4161_v25  ;;  %v4254_v25 = vld [vmem:[%s5621_s16 + $0x98] sm:$0xff]  }
 0x48a   :  { %2756 = vmatprep.subr.bf16.mxu0 %v4169_v26  ;;  %v4255_v26 = vld [vmem:[%s5621_s16 + $0x60] sm:$0xff]  }
 0x48d   :  { %2757 = vmatpush1.bf16.msra.mxu0 %v4167_v29  ;;  %v4256_v29 = vld [vmem:[%s5621_s16 + $0xe0] sm:$0xff]  }
 0x48e   :  { %2758 = vmatprep.subr.bf16.mxu0 %v4175_v31  ;;  %v4257_v31 = vld [vmem:[%s5621_s16 + $0x20] sm:$0xff]  }
 0x491   :  { %2759 = vmatpush1.bf16.msra.mxu0 %v4173_v32  ;;  %v4258_v32 = vld [vmem:[%s5621_s16 + $0xa0] sm:$0xff]  }
 0x492   :  { %2760 = vmatprep.subr.bf16.mxu0 %v4181_v33 }
 0x495   :  { %2761 = vmatpush1.bf16.msra.mxu0 %v4179_v34 }
 0x496   :  { %2762 = vmatprep.subr.bf16.mxu0 %v4187_v35 }
 0x499   :  { %2763 = vmatpush1.bf16.msra.mxu0 %v4185_v36 }
 0x49a   :  { %2764 = vmatprep.subr.bf16.mxu0 %v4193_v37 }
 0x49d   :  { %2765 = vmatpush1.bf16.msra.mxu0 %v4191_v38 }
 0x49e   :  { %2766 = vmatprep.subr.bf16.mxu0 %v4199_v39 }
 0x4a1   :  { %2767 = vmatpush1.bf16.msra.mxu0 %v4197_v40 }
 0x4a2   :  { %2768 = vmatprep.subr.bf16.mxu0 %v4205_v41 }
 0x4a5   :  { %2769 = vmatpush1.bf16.msra.mxu0 %v4203_v14 }
 0x4a6   :  { %2770 = vmatprep.subr.bf16.mxu0 %v4211_v42  ;;  %v4259_v42 = vld [vmem:[%s5621_s16 + $0x68] sm:$0xff]  }
 0x4a9   :  { %2771 = vmatpush1.bf16.msra.mxu0 %v4209_v44  ;;  %v4260_v44 = vld [vmem:[%s5621_s16 + $0xe8] sm:$0xff]  }
 0x4aa   :  { %2772 = vmatprep.subr.bf16.mxu0 %v4217_v46  ;;  %v4261_v46 = vld [vmem:[%s5621_s16 + $0x28] sm:$0xff]  }
 0x4ad   :  { %2773 = vmatpush1.bf16.msra.mxu0 %v4215_v47  ;;  %v4262_v47 = vld [vmem:[%s5621_s16 + $0xa8] sm:$0xff]  }
 0x4ae   :  { %2774 = vmatprep.subr.bf16.mxu0 %v4223_v43  ;;  %v4263_v43 = vld [vmem:[%s5621_s16 + $0x70] sm:$0xff]  }
 0x4b1   :  { %2775 = vmatpush1.bf16.msra.mxu0 %v4221_v49  ;;  %v4264_v49 = vld [vmem:[%s5621_s16 + $0xf0] sm:$0xff]  }
 0x4b2   :  { %2776 = vmatprep.subr.bf16.mxu0 %v4229_v51  ;;  %v4265_v51 = vld [vmem:[%s5621_s16 + $0x30] sm:$0xff]  }
 0x4b3   :  { %v2421_v33 = vpop.f32.mrb[24].mxu1 }
 0x4b4   :  { %v2423_v34 = vpop.f32.mrb[25].mxu1 }
 0x4b5   :  { %2777 = vmatpush1.bf16.msra.mxu0 %v4227_v54  ;;  %v2425_v35 = vpop.f32.mrb[26].mxu1  ;;  %v4268_v54 = vld [vmem:[%s5621_s16 + $0xf8] sm:$0xff]  }
 0x4b6   :  { %2778 = vmatprep.subr.bf16.mxu0 %v4235_v56  ;;  %v2426_v36 = vpop.f32.mrb[27].mxu1  ;;  %v4270_v56 = vld [vmem:[%s5621_s16 + $0xb8] sm:$0xff]  }
 0x4b9   :  { %2779 = vmatpush1.bf16.msra.mxu0 %v4233_v59 }
 0x4ba   :  { %3642 = vmatprep.subr.bf16.mxu0 %v4239_v5 }
 0x4cf   :  { %v1403_v62 = vpop.f32.mrb[4].mxu0 }
 0x4d0   :  { %v1404_v0 = vadd.f32 %v1403_v62, %v5222_v21  ;;  %v1405_v1 = vpop.f32.mrb[5].mxu0 }
 0x4d1   :  { %v1406_v2 = vadd.f32 %v1405_v1, %v5230_v23  ;;  %v1407_v50 = vpop.f32.mrb[6].mxu0  ;;  %v4241_v23 = vld [vmem:[%s5621_s16] sm:$0xff]  }
 0x4d2   :  { %v1422_v3 = vadd.f32 %v1415_v61, %v1404_v0  ;;  %v1408_v20 = vpop.f32.mrb[7].mxu0  ;;  %v2842_v0 = vsub.s32 2, %v4634_v27  ;;  %v2830_v1 = vld [vmem:[%s5622_s15] sm:$0xf] }
 0x4d3   :  { %v1423_v4 = vadd.f32 %v1419_v63, %v1406_v2  ;;  %v2846_v2 = vsub.s32 3, %v4634_v27  ;;  %v2835_v50 = vrot.slane %v2830_v1, %v4637_v28  ;;  %v2839_v5 = vrot.slane %v2830_v1, %v4643_v30 }
 0x4d4   :  { %vm1424_vm7 = vcmp.ge.f32.partialorder %v1422_v3, 0.0  ;;  %v1426_v6 = vmul.f32 0.01, %v1422_v3 }
 0x4d5   :  { %v1427_v8 = vmul.f32 0.01, %v1423_v4  ;;  %vm1425_vm8 = vcmp.ge.f32.partialorder %v1423_v4, 0.0 }
 0x4d6   :  { %v1428_v21 = vsel %vm1424_vm7, %v1422_v3, %v1426_v6  ;;  %v2843_v3 = vrot.slane %v2830_v1, %v2842_v0  ;;  %v2847_v6 = vrot.slane %v2830_v1, %v2846_v2 }
 0x4d7   :  { %v1429_v9 = vsel %vm1425_vm8, %v1423_v4, %v1427_v8  ;;  %v1430_v13 = vpack.c.bf16 %v1428_v21, %v1428_v21 }
 0x4d8   :  { %v1431_v11 = vpack.c.bf16 %v1429_v9, %v1429_v9 }
 0x4da   :  { %2780 = vmatprep.mubr.bf16.mxu0 %v1431_v11  ;;  %2821 = vmatprep.mubr.bf16.mxu1 %v1431_v11 }
 0x4db   :  { %2781 = vmatmul.mubr.bf16.vlgmr.msra.gmra.mrb[16].mxu0 %v1430_v13  ;;  %2822 = vmatmul.mubr.bf16.vlgmr.msra.gmra.mrb[28].mxu1 %v1430_v13 }
 0x4dc   :  { %3643 = vmatpush3.bf16.msra.mxu0 %v4241_v23  ;;  %3665 = vmatpush3.bf16.msra.mxu1 %v4242_v10 }
 0x4dd   :  { %3644 = vmatprep.subr.bf16.mxu0 %v4243_v12  ;;  %3666 = vmatprep.subr.bf16.mxu1 %v4244_v15 }
 0x4e0   :  { %3645 = vmatpush3.bf16.msra.mxu0 %v4245_v16  ;;  %3667 = vmatpush3.bf16.msra.mxu1 %v4246_v17 }
 0x4e1   :  { %3646 = vmatprep.subr.bf16.mxu0 %v4247_v45  ;;  %3668 = vmatprep.subr.bf16.mxu1 %v4248_v18 }
 0x4e4   :  { %3647 = vmatpush3.bf16.msra.mxu0 %v4249_v19  ;;  %3669 = vmatpush3.bf16.msra.mxu1 %v4250_v57 }
 0x4e5   :  { %3648 = vmatprep.subr.bf16.mxu0 %v4251_v22  ;;  %3670 = vmatprep.subr.bf16.mxu1 %v4252_v24 }
 0x4e8   :  { %3649 = vmatpush3.bf16.msra.mxu0 %v4253_v48  ;;  %3671 = vmatpush3.bf16.msra.mxu1 %v4254_v25 }
 0x4e9   :  { %3650 = vmatprep.subr.bf16.mxu0 %v4255_v26  ;;  %3672 = vmatprep.subr.bf16.mxu1 %v4256_v29 }
 0x4ec   :  { %3651 = vmatpush3.bf16.msra.mxu0 %v4257_v31  ;;  %3673 = vmatpush3.bf16.msra.mxu1 %v4258_v32 }
 0x4ed   :  { %3652 = vmatprep.subr.bf16.mxu0 %v4259_v42  ;;  %3674 = vmatprep.subr.bf16.mxu1 %v4260_v44 }
 0x4f0   :  { %3653 = vmatpush3.bf16.msra.mxu0 %v4261_v46  ;;  %3675 = vmatpush3.bf16.msra.mxu1 %v4262_v47 }
 0x4f1   :  { %3654 = vmatprep.subr.bf16.mxu0 %v4263_v43  ;;  %3676 = vmatprep.subr.bf16.mxu1 %v4264_v49 }
 0x4f4   :  { %3655 = vmatpush3.bf16.msra.mxu0 %v4265_v51 }
 0x50f   :  { %v2298_v37 = vpop.f32.mrb[8].mxu0 }
 0x510   :  { %v2300_v38 = vpop.f32.mrb[9].mxu0  ;;  %v2340_v39 = vadd.f32 %v5475_v52, %v2298_v37  ;;  %v4266_v52 = vld [vmem:[%s5621_s16 + $0xb0] sm:$0xff]  }
 0x511   :  { %v2302_v40 = vpop.f32.mrb[10].mxu0  ;;  %v2342_v41 = vadd.f32 %v5477_v53, %v2300_v38  ;;  %3677 = vmatpush3.bf16.msra.mxu1 %v4266_v52  ;;  %v4267_v53 = vld [vmem:[%s5621_s16 + $0x78] sm:$0xff]  }
 0x512   :  { %v2303_v14 = vpop.f32.mrb[11].mxu0  ;;  %3656 = vmatprep.subr.bf16.mxu0 %v4267_v53  ;;  %3678 = vmatprep.subr.bf16.mxu1 %v4268_v54 }
 0x513   :  { %3657 = vmatpush3.bf16.msra.mxu0 %v4269_v55 }
 0x515   :  { %3679 = vmatpush3.bf16.msra.mxu1 %v4270_v56 }
 0x54f   :  { %v2380_v58 = vpop.f32.mrb[12].mxu0 }
 0x550   :  { %v2382_v59 = vpop.f32.mrb[13].mxu0  ;;  %v2422_v60 = vadd.f32 %v2421_v33, %v2380_v58 }
 0x551   :  { %v2384_v61 = vpop.f32.mrb[14].mxu0  ;;  %v2424_v62 = vadd.f32 %v2423_v34, %v2382_v59  ;;  %v3564_v34 = vld [vmem:[%s5623_s17] ss:$0 sm:$0xff] }
 0x552   :  { %v2385_v63 = vpop.f32.mrb[15].mxu0 }
 0x5ae   :  { %v2782_v20 = vpop.f32.mrb[16].mxu0  ;;  %v2823_v4 = vpop.f32.mrb[28].mxu1 }
 0x5af   :  { %v2783_v7 = vadd.f32 %v2782_v20, %v2340_v39  ;;  %v2824_v8 = vadd.f32 %v2823_v4, %v2422_v60  ;;  %v2784_v21 = vpop.f32.mrb[17].mxu0  ;;  %v2825_v23 = vpop.f32.mrb[29].mxu1 }
 0x5b0   :  { %v2785_v9 = vadd.f32 %v2784_v21, %v2342_v41  ;;  %v2826_v10 = vadd.f32 %v2825_v23, %v2424_v62  ;;  %v2786_v11 = vpop.f32.mrb[18].mxu0  ;;  %v2827_v12 = vpop.f32.mrb[30].mxu1 }
 0x5b1   :  { %v2852_v13 = vadd.f32 %v2835_v50, %v2783_v7  ;;  %v2854_v15 = vadd.f32 %v2843_v3, %v2824_v8  ;;  %v2787_v16 = vpop.f32.mrb[19].mxu0  ;;  %v2828_v27 = vpop.f32.mrb[31].mxu1 }
 0x5b2   :  { %v2853_v17 = vadd.f32 %v2839_v5, %v2785_v9  ;;  %v2855_v28 = vadd.f32 %v2847_v6, %v2826_v10 }
 0x5b3   :  { %vm2856_vm9 = vcmp.ge.f32.partialorder %v2852_v13, 0.0  ;;  %v2860_v45 = vmul.f32 0.01, %v2852_v13  ;;  %vm2858_vm10 = vcmp.ge.f32.partialorder %v2854_v15, 0.0  ;;  %v2862_v18 = vmul.f32 0.01, %v2854_v15 }
 0x5b4   :  { %v2861_v30 = vmul.f32 0.01, %v2853_v17  ;;  %v2863_v19 = vmul.f32 0.01, %v2855_v28  ;;  %vm2857_vm11 = vcmp.ge.f32.partialorder %v2853_v17, 0.0  ;;  %vm2859_vm12 = vcmp.ge.f32.partialorder %v2855_v28, 0.0 }
 0x5b5   :  { %v2864_v57 = vsel %vm2856_vm9, %v2852_v13, %v2860_v45  ;;  %v2866_v22 = vsel %vm2858_vm10, %v2854_v15, %v2862_v18 }
 0x5b6   :  { %v2865_v24 = vsel %vm2857_vm11, %v2853_v17, %v2861_v30  ;;  %v2867_v48 = vsel %vm2859_vm12, %v2855_v28, %v2863_v19  ;;  %v2868_v29 = vpack.c.bf16 %v2864_v57, %v2864_v57  ;;  %v2870_v31 = vpack.c.bf16 %v2866_v22, %v2866_v22 }
 0x5b7   :  { %v2869_v25 = vpack.c.bf16 %v2865_v24, %v2865_v24  ;;  %v2871_v26 = vpack.c.bf16 %v2867_v48, %v2867_v48 }
 0x5b9   :  { %3167 = vmatprep.mubr.bf16.mxu0 %v2869_v25  ;;  %3207 = vmatprep.mubr.bf16.mxu1 %v2871_v26 }
 0x5ba   :  { %3168 = vmatmul.mubr.bf16.vlgmr.msra.gmra.mrb[20].mxu0 %v2868_v29  ;;  %3208 = vmatmul.mubr.bf16.vlgmr.msra.gmra.mrb[32].mxu1 %v2870_v31 }
 0x68d   :  { %v3658_v32 = vpop.f32.mrb[20].mxu0  ;;  %v3680_v33 = vpop.f32.mrb[32].mxu1 }
 0x68e   :  { %v3659_v35 = vpop.f32.mrb[21].mxu0  ;;  %v3681_v36 = vpop.f32.mrb[33].mxu1 }
 0x68f   :  { %v3660_v37 = vadd.f32 %v3659_v35, %v3658_v32  ;;  %v3682_v38 = vadd.f32 %v3681_v36, %v3680_v33  ;;  %v3661_v39 = vpop.f32.mrb[22].mxu0  ;;  %v3683_v40 = vpop.f32.mrb[34].mxu1 }
 0x690   :  { %v3662_v41 = vpop.f32.mrb[23].mxu0  ;;  %v3684_v14 = vpop.f32.mrb[35].mxu1 }
 0x691   :  { %v3170_v42 = vadd.f32 %v3660_v37, %v3564_v34 }
 0x693   :  { %v3210_v44 = vadd.f32 %v3682_v38, %v3170_v42 }
 0x695   :  { %3215 = vst [vmem:[%s5624_s18] sm:$0xff] %v3210_v44 }

</bundles_post_ra>
